<compile_context>
chip_gen: v7x
topology: tpu7x:2x2x1
jax: 0.10.0
libtpu: 0.0.40
codegen_flags: <defaults>
</compile_context>

<pallas_src>
import numpy as np

import jax
import jax.numpy as jnp
from jax.experimental import pallas as pl
from jax.experimental.pallas import tpu as pltpu

CHANNELS = 3
NDF = 8
BATCH = 2
SPATIAL = 64
LRELU_SLOPE = 0.2
BN_EPS = 1e-5


# ----------------------------- layer geometry --------------------------------

def _layer_dims():
    """(Cin, Cout, Hin, Win, Hout, Wout, stride, pad) for the 5 conv layers."""
    chans = [CHANNELS, NDF, NDF * 2, NDF * 4, NDF * 8, 1]
    strides = [2, 2, 2, 2, 1]
    pads = [1, 1, 1, 1, 0]
    dims = []
    h = SPATIAL
    for l in range(5):
        st, pd = strides[l], pads[l]
        ho = (h + 2 * pd - 4) // st + 1
        dims.append((chans[l], chans[l + 1], h, h, ho, ho, st, pd))
        h = ho
    return dims


# ------------------------------ Pallas kernel ---------------------------------

def _disc_kernel(x_ref,
                 m1, r1,
                 m2, r2, g2, b2, bs2, bc2,
                 m3, r3, g3, b3, bs3, bc3,
                 m4, r4, g4, b4, bs4, bc4,
                 m5, r5,
                 out_ref):
    """Entire Discriminator forward; every ref is a full-array VMEM block."""

    def conv(x_bf16, m_ref, r_ref):
        # sum_i (R_i @ X) @ M_i  -- R_i: 0/1 row selection, M_i: folded weights.
        acc = None
        for i in range(4):
            sel = jnp.dot(r_ref[i], x_bf16, preferred_element_type=jnp.float32)
            sel = sel.astype(jnp.bfloat16)     # exact: pure selection of bf16 values
            t = jnp.dot(sel, m_ref[i], preferred_element_type=jnp.float32)
            acc = t if acc is None else acc + t
        return acc                              # f32, (N*Hout, Cout*Wout)

    def lrelu(y):
        return jnp.maximum(y, LRELU_SLOPE * y)

    def bn_lrelu(y, g_ref, b_ref, bsum_ref, bcast_ref):
        # Training-mode BatchNorm2d (biased batch variance); per-channel stats
        # via tiny 0/1 block-sum matmuls; gamma folded into the rsqrt scale.
        c_out = g_ref.shape[-1]
        count = y.shape[0] * (y.shape[1] // c_out)   # N * Hout * Wout (static)
        bsum = bsum_ref[...]                          # (Cout*Wout, Cout)
        s1 = jnp.sum(jnp.dot(y, bsum, preferred_element_type=jnp.float32),
                     axis=0, keepdims=True)           # (1, Cout) sum
        s2 = jnp.sum(jnp.dot(y * y, bsum, preferred_element_type=jnp.float32),
                     axis=0, keepdims=True)           # (1, Cout) sum of squares
        inv = 1.0 / float(count)
        mean = s1 * inv
        var = jnp.maximum(s2 * inv - mean * mean, 0.0)
        scale = g_ref[...] * jax.lax.rsqrt(var + BN_EPS)
        shift = b_ref[...] - mean * scale
        bcast = bcast_ref[...]                        # (Cout, Cout*Wout)
        scale_c = jnp.dot(scale, bcast, preferred_element_type=jnp.float32)
        shift_c = jnp.dot(shift, bcast, preferred_element_type=jnp.float32)
        return lrelu(y * scale_c + shift_c)

    a = lrelu(conv(x_ref[...], m1, r1)).astype(jnp.bfloat16)          # 32x32, ndf
    a = bn_lrelu(conv(a, m2, r2), g2, b2, bs2, bc2).astype(jnp.bfloat16)   # 16x16
    a = bn_lrelu(conv(a, m3, r3), g3, b3, bs3, bc3).astype(jnp.bfloat16)   # 8x8
    a = bn_lrelu(conv(a, m4, r4), g4, b4, bs4, bc4).astype(jnp.bfloat16)   # 4x4
    z = conv(a, m5, r5)                                               # (N, 1) logits
    out_ref[...] = 1.0 / (1.0 + jnp.exp(-z))                          # sigmoid


# -------------------------- host-side preparation -----------------------------

def init_params(key):
    """Deterministic synthetic parameters (shapes match the PyTorch module)."""
    ks = jax.random.split(key, 5)
    std = 0.02
    return {
        "w1": jax.random.normal(ks[0], (NDF, CHANNELS, 4, 4), jnp.float32) * std,
        "w2": jax.random.normal(ks[1], (NDF * 2, NDF, 4, 4), jnp.float32) * std,
        "w3": jax.random.normal(ks[2], (NDF * 4, NDF * 2, 4, 4), jnp.float32) * std,
        "w4": jax.random.normal(ks[3], (NDF * 8, NDF * 4, 4, 4), jnp.float32) * std,
        "w5": jax.random.normal(ks[4], (1, NDF * 8, 4, 4), jnp.float32) * std,
        # BatchNorm2d default init: gamma=1, beta=0
        "g2": jnp.ones((NDF * 2,), jnp.float32), "b2": jnp.zeros((NDF * 2,), jnp.float32),
        "g3": jnp.ones((NDF * 4,), jnp.float32), "b3": jnp.zeros((NDF * 4,), jnp.float32),
        "g4": jnp.ones((NDF * 8,), jnp.float32), "b4": jnp.zeros((NDF * 8,), jnp.float32),
    }


def prepare_params(p):
    """Fold conv weights + stride/pad geometry into the kernel's GEMM operands."""
    prep = {}
    ws = [p["w1"], p["w2"], p["w3"], p["w4"], p["w5"]]
    for l, ((ci, co, h_in, w_in, h_out, w_out, st, pd), wgt) in enumerate(
            zip(_layer_dims(), ws), start=1):
        k = wgt.shape[-1]  # 4
        # Width selection (stride + zero pad) folded with the weights -> M_i.
        a_sel = np.zeros((k, w_in, w_out), np.float32)
        for j in range(k):
            for wo in range(w_out):
                w_idx = st * wo + j - pd
                if 0 <= w_idx < w_in:
                    a_sel[j, w_idx, wo] = 1.0
        m = jnp.einsum("ocij,jwv->icwov", wgt, jnp.asarray(a_sel))
        prep[f"m{l}"] = m.reshape(k, ci * w_in, co * w_out).astype(jnp.bfloat16)
        # Height selection (0/1, block-diagonal over batch) -> R_i.
        r = np.zeros((k, BATCH * h_out, BATCH * h_in), np.float32)
        for i in range(k):
            for b in range(BATCH):
                for ho in range(h_out):
                    h_idx = st * ho + i - pd
                    if 0 <= h_idx < h_in:
                        r[i, b * h_out + ho, b * h_in + h_idx] = 1.0
        prep[f"r{l}"] = jnp.asarray(r, dtype=jnp.bfloat16)
        # BatchNorm helpers: per-channel block-sum / broadcast matrices.
        if l in (2, 3, 4):
            bsum = np.kron(np.eye(co, dtype=np.float32),
                           np.ones((w_out, 1), np.float32))   # (Co*Wo, Co)
            prep[f"bs{l}"] = jnp.asarray(bsum)
            prep[f"bc{l}"] = jnp.asarray(np.ascontiguousarray(bsum.T))
            prep[f"g{l}"] = p[f"g{l}"].reshape(1, -1).astype(jnp.float32)
            prep[f"b{l}"] = p[f"b{l}"].reshape(1, -1).astype(jnp.float32)
    return prep


# ------------------------------- forward pass ---------------------------------

def discriminator_forward(x, prep):
    n, c, h, w = x.shape
    assert n == BATCH and c == CHANNELS and h == SPATIAL and w == SPATIAL
    # Lane-dense activation layout: A[n*H + h, c*W + w]  (last dim = C*W >= 128).
    x2 = x.transpose(0, 2, 1, 3).reshape(n * h, c * w).astype(jnp.bfloat16)
    args = (x2,
            prep["m1"], prep["r1"],
            prep["m2"], prep["r2"], prep["g2"], prep["b2"], prep["bs2"], prep["bc2"],
            prep["m3"], prep["r3"], prep["g3"], prep["b3"], prep["bs3"], prep["bc3"],
            prep["m4"], prep["r4"], prep["g4"], prep["b4"], prep["bs4"], prep["bc4"],
            prep["m5"], prep["r5"])
    out = pl.pallas_call(
        _disc_kernel,
        out_shape=jax.ShapeDtypeStruct((n, 1), jnp.float32),
        in_specs=[pl.BlockSpec(memory_space=pltpu.MemorySpace.VMEM)] * len(args),
        out_specs=pl.BlockSpec(memory_space=pltpu.MemorySpace.VMEM),
        compiler_params=pltpu.CompilerParams(vmem_limit_bytes=32 * 1024 * 1024),
    )(*args)
    # .view(-1, 1).squeeze(1)
    return out.reshape(-1)


# TODO(synk): BatchNorm2d running_mean / running_var tracking (eval-mode stats)
# is not emitted; the forward uses train-mode batch statistics only, matching
# the PyTorch module's training forward output.


# ------------------------------ XLA reference ---------------------------------

def _reference_forward(x, p):
    """Pure-JAX/XLA f32 reference of the same module (train-mode BN)."""
    def conv(h, w, s, pad):
        return jax.lax.conv_general_dilated(
            h, w, window_strides=(s, s), padding=[(pad, pad), (pad, pad)],
            dimension_numbers=("NCHW", "OIHW", "NCHW"))

    def bn(h, g, b):
        m = jnp.mean(h, axis=(0, 2, 3), keepdims=True)
        v = jnp.mean(jnp.square(h - m), axis=(0, 2, 3), keepdims=True)
        return ((h - m) * jax.lax.rsqrt(v + BN_EPS) * g.reshape(1, -1, 1, 1)
                + b.reshape(1, -1, 1, 1))

    def lrelu(h):
        return jnp.maximum(h, LRELU_SLOPE * h)

    h = lrelu(conv(x, p["w1"], 2, 1))
    h = lrelu(bn(conv(h, p["w2"], 2, 1), p["g2"], p["b2"]))
    h = lrelu(bn(conv(h, p["w3"], 2, 1), p["g3"], p["b3"]))
    h = lrelu(bn(conv(h, p["w4"], 2, 1), p["g4"], p["b4"]))
    h = conv(h, p["w5"], 1, 0)
    return jax.nn.sigmoid(h).reshape(-1)


# ----------------------------------- main --------------------------------------

if __name__ == "__main__":
    key = jax.random.PRNGKey(0)
    k_x, k_p = jax.random.split(key)
    x = jax.random.normal(k_x, (BATCH, CHANNELS, SPATIAL, SPATIAL), jnp.float32)
    params = init_params(k_p)
    prep = prepare_params(params)

    fwd = jax.jit(discriminator_forward)
    out = jax.block_until_ready(fwd(x, prep))

    assert out.shape == (BATCH,), out.shape
    assert bool(jnp.all(jnp.isfinite(out)))

    # correctness vs an XLA f32 reference (kernel uses bf16 conv operands)
    ref = jax.block_until_ready(jax.jit(_reference_forward)(x, params))
    max_err = float(jnp.max(jnp.abs(out - ref)))
    assert max_err < 3e-2, (max_err, out, ref)

    print("KERNEL_OK")
</pallas_src>

<mosaic_0001>
module attributes {stable_mosaic.version = 11 : i64} {
  func.func @_disc_kernel(%arg0: memref<128x192xbf16, #tpu.memory_space<vmem>>, %arg1: memref<4x192x256xbf16, #tpu.memory_space<vmem>>, %arg2: memref<4x64x128xbf16, #tpu.memory_space<vmem>>, %arg3: memref<4x256x256xbf16, #tpu.memory_space<vmem>>, %arg4: memref<4x32x64xbf16, #tpu.memory_space<vmem>>, %arg5: memref<1x16xf32, #tpu.memory_space<vmem>>, %arg6: memref<1x16xf32, #tpu.memory_space<vmem>>, %arg7: memref<256x16xf32, #tpu.memory_space<vmem>>, %arg8: memref<16x256xf32, #tpu.memory_space<vmem>>, %arg9: memref<4x256x256xbf16, #tpu.memory_space<vmem>>, %arg10: memref<4x16x32xbf16, #tpu.memory_space<vmem>>, %arg11: memref<1x32xf32, #tpu.memory_space<vmem>>, %arg12: memref<1x32xf32, #tpu.memory_space<vmem>>, %arg13: memref<256x32xf32, #tpu.memory_space<vmem>>, %arg14: memref<32x256xf32, #tpu.memory_space<vmem>>, %arg15: memref<4x256x256xbf16, #tpu.memory_space<vmem>>, %arg16: memref<4x8x16xbf16, #tpu.memory_space<vmem>>, %arg17: memref<1x64xf32, #tpu.memory_space<vmem>>, %arg18: memref<1x64xf32, #tpu.memory_space<vmem>>, %arg19: memref<256x64xf32, #tpu.memory_space<vmem>>, %arg20: memref<64x256xf32, #tpu.memory_space<vmem>>, %arg21: memref<4x256x1xbf16, #tpu.memory_space<vmem>>, %arg22: memref<4x2x8xbf16, #tpu.memory_space<vmem>>, %arg23: memref<2x1xf32, #tpu.memory_space<vmem>>) attributes {dimension_semantics = [], scalar_prefetch = 0 : i64, scratch_operands = 0 : i64, tpu.core_type = #tpu.core_type<tc>} {
    %c0 = arith.constant 0 : index
    %c0_0 = arith.constant 0 : index
    %0 = vector.load %arg0[%c0, %c0_0] : memref<128x192xbf16, #tpu.memory_space<vmem>>, vector<128x192xbf16>
    %c0_1 = arith.constant 0 : index
    %c0_2 = arith.constant 0 : index
    %c0_3 = arith.constant 0 : index
    %1 = vector.load %arg2[%c0_1, %c0_2, %c0_3] : memref<4x64x128xbf16, #tpu.memory_space<vmem>>, vector<1x64x128xbf16>
    %2 = vector.shape_cast %1 : vector<1x64x128xbf16> to vector<64x128xbf16>
    %cst = arith.constant dense<0.000000e+00> : vector<64x192xf32>
    %3 = tpu.matmul %2, %0, %cst {dimension_numbers = #tpu.dot_dimension_numbers<[1], [0], [0], [1], [0, 0, 1, 1], [], []>} : vector<64x128xbf16>, vector<128x192xbf16>, vector<64x192xf32> -> vector<64x192xf32>
    %4 = arith.truncf %3 : vector<64x192xf32> to vector<64x192xbf16>
    %c0_4 = arith.constant 0 : index
    %c0_5 = arith.constant 0 : index
    %c0_6 = arith.constant 0 : index
    %5 = vector.load %arg1[%c0_4, %c0_5, %c0_6] : memref<4x192x256xbf16, #tpu.memory_space<vmem>>, vector<1x192x256xbf16>
    %6 = vector.shape_cast %5 : vector<1x192x256xbf16> to vector<192x256xbf16>
    %cst_7 = arith.constant dense<0.000000e+00> : vector<64x256xf32>
    %7 = tpu.matmul %4, %6, %cst_7 {dimension_numbers = #tpu.dot_dimension_numbers<[1], [0], [0], [1], [0, 0, 1, 1], [], []>} : vector<64x192xbf16>, vector<192x256xbf16>, vector<64x256xf32> -> vector<64x256xf32>
    %c1 = arith.constant 1 : index
    %c0_8 = arith.constant 0 : index
    %c0_9 = arith.constant 0 : index
    %8 = vector.load %arg2[%c1, %c0_8, %c0_9] : memref<4x64x128xbf16, #tpu.memory_space<vmem>>, vector<1x64x128xbf16>
    %9 = vector.shape_cast %8 : vector<1x64x128xbf16> to vector<64x128xbf16>
    %cst_10 = arith.constant dense<0.000000e+00> : vector<64x192xf32>
    %10 = tpu.matmul %9, %0, %cst_10 {dimension_numbers = #tpu.dot_dimension_numbers<[1], [0], [0], [1], [0, 0, 1, 1], [], []>} : vector<64x128xbf16>, vector<128x192xbf16>, vector<64x192xf32> -> vector<64x192xf32>
    %11 = arith.truncf %10 : vector<64x192xf32> to vector<64x192xbf16>
    %c1_11 = arith.constant 1 : index
    %c0_12 = arith.constant 0 : index
    %c0_13 = arith.constant 0 : index
    %12 = vector.load %arg1[%c1_11, %c0_12, %c0_13] : memref<4x192x256xbf16, #tpu.memory_space<vmem>>, vector<1x192x256xbf16>
    %13 = vector.shape_cast %12 : vector<1x192x256xbf16> to vector<192x256xbf16>
    %cst_14 = arith.constant dense<0.000000e+00> : vector<64x256xf32>
    %14 = tpu.matmul %11, %13, %cst_14 {dimension_numbers = #tpu.dot_dimension_numbers<[1], [0], [0], [1], [0, 0, 1, 1], [], []>} : vector<64x192xbf16>, vector<192x256xbf16>, vector<64x256xf32> -> vector<64x256xf32>
    %15 = arith.addf %7, %14 : vector<64x256xf32>
    %c2 = arith.constant 2 : index
    %c0_15 = arith.constant 0 : index
    %c0_16 = arith.constant 0 : index
    %16 = vector.load %arg2[%c2, %c0_15, %c0_16] : memref<4x64x128xbf16, #tpu.memory_space<vmem>>, vector<1x64x128xbf16>
    %17 = vector.shape_cast %16 : vector<1x64x128xbf16> to vector<64x128xbf16>
    %cst_17 = arith.constant dense<0.000000e+00> : vector<64x192xf32>
    %18 = tpu.matmul %17, %0, %cst_17 {dimension_numbers = #tpu.dot_dimension_numbers<[1], [0], [0], [1], [0, 0, 1, 1], [], []>} : vector<64x128xbf16>, vector<128x192xbf16>, vector<64x192xf32> -> vector<64x192xf32>
    %19 = arith.truncf %18 : vector<64x192xf32> to vector<64x192xbf16>
    %c2_18 = arith.constant 2 : index
    %c0_19 = arith.constant 0 : index
    %c0_20 = arith.constant 0 : index
    %20 = vector.load %arg1[%c2_18, %c0_19, %c0_20] : memref<4x192x256xbf16, #tpu.memory_space<vmem>>, vector<1x192x256xbf16>
    %21 = vector.shape_cast %20 : vector<1x192x256xbf16> to vector<192x256xbf16>
    %cst_21 = arith.constant dense<0.000000e+00> : vector<64x256xf32>
    %22 = tpu.matmul %19, %21, %cst_21 {dimension_numbers = #tpu.dot_dimension_numbers<[1], [0], [0], [1], [0, 0, 1, 1], [], []>} : vector<64x192xbf16>, vector<192x256xbf16>, vector<64x256xf32> -> vector<64x256xf32>
    %23 = arith.addf %15, %22 : vector<64x256xf32>
    %c3 = arith.constant 3 : index
    %c0_22 = arith.constant 0 : index
    %c0_23 = arith.constant 0 : index
    %24 = vector.load %arg2[%c3, %c0_22, %c0_23] : memref<4x64x128xbf16, #tpu.memory_space<vmem>>, vector<1x64x128xbf16>
    %25 = vector.shape_cast %24 : vector<1x64x128xbf16> to vector<64x128xbf16>
    %cst_24 = arith.constant dense<0.000000e+00> : vector<64x192xf32>
    %26 = tpu.matmul %25, %0, %cst_24 {dimension_numbers = #tpu.dot_dimension_numbers<[1], [0], [0], [1], [0, 0, 1, 1], [], []>} : vector<64x128xbf16>, vector<128x192xbf16>, vector<64x192xf32> -> vector<64x192xf32>
    %27 = arith.truncf %26 : vector<64x192xf32> to vector<64x192xbf16>
    %c3_25 = arith.constant 3 : index
    %c0_26 = arith.constant 0 : index
    %c0_27 = arith.constant 0 : index
    %28 = vector.load %arg1[%c3_25, %c0_26, %c0_27] : memref<4x192x256xbf16, #tpu.memory_space<vmem>>, vector<1x192x256xbf16>
    %29 = vector.shape_cast %28 : vector<1x192x256xbf16> to vector<192x256xbf16>
    %cst_28 = arith.constant dense<0.000000e+00> : vector<64x256xf32>
    %30 = tpu.matmul %27, %29, %cst_28 {dimension_numbers = #tpu.dot_dimension_numbers<[1], [0], [0], [1], [0, 0, 1, 1], [], []>} : vector<64x192xbf16>, vector<192x256xbf16>, vector<64x256xf32> -> vector<64x256xf32>
    %31 = arith.addf %23, %30 : vector<64x256xf32>
    %cst_29 = arith.constant 2.000000e-01 : f32
    %32 = vector.broadcast %cst_29 : f32 to vector<64x256xf32>
    %33 = arith.mulf %32, %31 : vector<64x256xf32>
    %34 = arith.maximumf %31, %33 : vector<64x256xf32>
    %35 = arith.truncf %34 : vector<64x256xf32> to vector<64x256xbf16>
    %c0_30 = arith.constant 0 : index
    %c0_31 = arith.constant 0 : index
    %c0_32 = arith.constant 0 : index
    %36 = vector.load %arg4[%c0_30, %c0_31, %c0_32] : memref<4x32x64xbf16, #tpu.memory_space<vmem>>, vector<1x32x64xbf16>
    %37 = vector.shape_cast %36 : vector<1x32x64xbf16> to vector<32x64xbf16>
    %cst_33 = arith.constant dense<0.000000e+00> : vector<32x256xf32>
    %38 = tpu.matmul %37, %35, %cst_33 {dimension_numbers = #tpu.dot_dimension_numbers<[1], [0], [0], [1], [0, 0, 1, 1], [], []>} : vector<32x64xbf16>, vector<64x256xbf16>, vector<32x256xf32> -> vector<32x256xf32>
    %39 = arith.truncf %38 : vector<32x256xf32> to vector<32x256xbf16>
    %c0_34 = arith.constant 0 : index
    %c0_35 = arith.constant 0 : index
    %c0_36 = arith.constant 0 : index
    %40 = vector.load %arg3[%c0_34, %c0_35, %c0_36] : memref<4x256x256xbf16, #tpu.memory_space<vmem>>, vector<1x256x256xbf16>
    %41 = vector.shape_cast %40 : vector<1x256x256xbf16> to vector<256x256xbf16>
    %cst_37 = arith.constant dense<0.000000e+00> : vector<32x256xf32>
    %42 = tpu.matmul %39, %41, %cst_37 {dimension_numbers = #tpu.dot_dimension_numbers<[1], [0], [0], [1], [0, 0, 1, 1], [], []>} : vector<32x256xbf16>, vector<256x256xbf16>, vector<32x256xf32> -> vector<32x256xf32>
    %c1_38 = arith.constant 1 : index
    %c0_39 = arith.constant 0 : index
    %c0_40 = arith.constant 0 : index
    %43 = vector.load %arg4[%c1_38, %c0_39, %c0_40] : memref<4x32x64xbf16, #tpu.memory_space<vmem>>, vector<1x32x64xbf16>
    %44 = vector.shape_cast %43 : vector<1x32x64xbf16> to vector<32x64xbf16>
    %cst_41 = arith.constant dense<0.000000e+00> : vector<32x256xf32>
    %45 = tpu.matmul %44, %35, %cst_41 {dimension_numbers = #tpu.dot_dimension_numbers<[1], [0], [0], [1], [0, 0, 1, 1], [], []>} : vector<32x64xbf16>, vector<64x256xbf16>, vector<32x256xf32> -> vector<32x256xf32>
    %46 = arith.truncf %45 : vector<32x256xf32> to vector<32x256xbf16>
    %c1_42 = arith.constant 1 : index
    %c0_43 = arith.constant 0 : index
    %c0_44 = arith.constant 0 : index
    %47 = vector.load %arg3[%c1_42, %c0_43, %c0_44] : memref<4x256x256xbf16, #tpu.memory_space<vmem>>, vector<1x256x256xbf16>
    %48 = vector.shape_cast %47 : vector<1x256x256xbf16> to vector<256x256xbf16>
    %cst_45 = arith.constant dense<0.000000e+00> : vector<32x256xf32>
    %49 = tpu.matmul %46, %48, %cst_45 {dimension_numbers = #tpu.dot_dimension_numbers<[1], [0], [0], [1], [0, 0, 1, 1], [], []>} : vector<32x256xbf16>, vector<256x256xbf16>, vector<32x256xf32> -> vector<32x256xf32>
    %50 = arith.addf %42, %49 : vector<32x256xf32>
    %c2_46 = arith.constant 2 : index
    %c0_47 = arith.constant 0 : index
    %c0_48 = arith.constant 0 : index
    %51 = vector.load %arg4[%c2_46, %c0_47, %c0_48] : memref<4x32x64xbf16, #tpu.memory_space<vmem>>, vector<1x32x64xbf16>
    %52 = vector.shape_cast %51 : vector<1x32x64xbf16> to vector<32x64xbf16>
    %cst_49 = arith.constant dense<0.000000e+00> : vector<32x256xf32>
    %53 = tpu.matmul %52, %35, %cst_49 {dimension_numbers = #tpu.dot_dimension_numbers<[1], [0], [0], [1], [0, 0, 1, 1], [], []>} : vector<32x64xbf16>, vector<64x256xbf16>, vector<32x256xf32> -> vector<32x256xf32>
    %54 = arith.truncf %53 : vector<32x256xf32> to vector<32x256xbf16>
    %c2_50 = arith.constant 2 : index
    %c0_51 = arith.constant 0 : index
    %c0_52 = arith.constant 0 : index
    %55 = vector.load %arg3[%c2_50, %c0_51, %c0_52] : memref<4x256x256xbf16, #tpu.memory_space<vmem>>, vector<1x256x256xbf16>
    %56 = vector.shape_cast %55 : vector<1x256x256xbf16> to vector<256x256xbf16>
    %cst_53 = arith.constant dense<0.000000e+00> : vector<32x256xf32>
    %57 = tpu.matmul %54, %56, %cst_53 {dimension_numbers = #tpu.dot_dimension_numbers<[1], [0], [0], [1], [0, 0, 1, 1], [], []>} : vector<32x256xbf16>, vector<256x256xbf16>, vector<32x256xf32> -> vector<32x256xf32>
    %58 = arith.addf %50, %57 : vector<32x256xf32>
    %c3_54 = arith.constant 3 : index
    %c0_55 = arith.constant 0 : index
    %c0_56 = arith.constant 0 : index
    %59 = vector.load %arg4[%c3_54, %c0_55, %c0_56] : memref<4x32x64xbf16, #tpu.memory_space<vmem>>, vector<1x32x64xbf16>
    %60 = vector.shape_cast %59 : vector<1x32x64xbf16> to vector<32x64xbf16>
    %cst_57 = arith.constant dense<0.000000e+00> : vector<32x256xf32>
    %61 = tpu.matmul %60, %35, %cst_57 {dimension_numbers = #tpu.dot_dimension_numbers<[1], [0], [0], [1], [0, 0, 1, 1], [], []>} : vector<32x64xbf16>, vector<64x256xbf16>, vector<32x256xf32> -> vector<32x256xf32>
    %62 = arith.truncf %61 : vector<32x256xf32> to vector<32x256xbf16>
    %c3_58 = arith.constant 3 : index
    %c0_59 = arith.constant 0 : index
    %c0_60 = arith.constant 0 : index
    %63 = vector.load %arg3[%c3_58, %c0_59, %c0_60] : memref<4x256x256xbf16, #tpu.memory_space<vmem>>, vector<1x256x256xbf16>
    %64 = vector.shape_cast %63 : vector<1x256x256xbf16> to vector<256x256xbf16>
    %cst_61 = arith.constant dense<0.000000e+00> : vector<32x256xf32>
    %65 = tpu.matmul %62, %64, %cst_61 {dimension_numbers = #tpu.dot_dimension_numbers<[1], [0], [0], [1], [0, 0, 1, 1], [], []>} : vector<32x256xbf16>, vector<256x256xbf16>, vector<32x256xf32> -> vector<32x256xf32>
    %66 = arith.addf %58, %65 : vector<32x256xf32>
    %c0_62 = arith.constant 0 : index
    %c0_63 = arith.constant 0 : index
    %67 = vector.load %arg7[%c0_62, %c0_63] : memref<256x16xf32, #tpu.memory_space<vmem>>, vector<256x16xf32>
    %cst_64 = arith.constant dense<0.000000e+00> : vector<32x16xf32>
    %68 = tpu.matmul %66, %67, %cst_64 {dimension_numbers = #tpu.dot_dimension_numbers<[1], [0], [0], [1], [0, 0, 1, 1], [], []>} : vector<32x256xf32>, vector<256x16xf32>, vector<32x16xf32> -> vector<32x16xf32>
    %cst_65 = arith.constant dense<0.000000e+00> : vector<16xf32>
    %69 = vector.multi_reduction <add>, %68, %cst_65 [0] : vector<32x16xf32> to vector<16xf32>
    %70 = vector.shape_cast %69 : vector<16xf32> to vector<1x16xf32>
    %71 = arith.mulf %66, %66 : vector<32x256xf32>
    %cst_66 = arith.constant dense<0.000000e+00> : vector<32x16xf32>
    %72 = tpu.matmul %71, %67, %cst_66 {dimension_numbers = #tpu.dot_dimension_numbers<[1], [0], [0], [1], [0, 0, 1, 1], [], []>} : vector<32x256xf32>, vector<256x16xf32>, vector<32x16xf32> -> vector<32x16xf32>
    %cst_67 = arith.constant dense<0.000000e+00> : vector<16xf32>
    %73 = vector.multi_reduction <add>, %72, %cst_67 [0] : vector<32x16xf32> to vector<16xf32>
    %74 = vector.shape_cast %73 : vector<16xf32> to vector<1x16xf32>
    %cst_68 = arith.constant 0.001953125 : f32
    %75 = vector.broadcast %cst_68 : f32 to vector<1x16xf32>
    %76 = arith.mulf %70, %75 : vector<1x16xf32>
    %cst_69 = arith.constant 0.001953125 : f32
    %77 = vector.broadcast %cst_69 : f32 to vector<1x16xf32>
    %78 = arith.mulf %74, %77 : vector<1x16xf32>
    %79 = arith.mulf %76, %76 : vector<1x16xf32>
    %80 = arith.subf %78, %79 : vector<1x16xf32>
    %cst_70 = arith.constant 0.000000e+00 : f32
    %81 = vector.broadcast %cst_70 : f32 to vector<1x16xf32>
    %82 = arith.maximumf %80, %81 : vector<1x16xf32>
    %c0_71 = arith.constant 0 : index
    %c0_72 = arith.constant 0 : index
    %83 = vector.load %arg5[%c0_71, %c0_72] : memref<1x16xf32, #tpu.memory_space<vmem>>, vector<1x16xf32>
    %cst_73 = arith.constant 9.99999974E-6 : f32
    %84 = vector.broadcast %cst_73 : f32 to vector<1x16xf32>
    %85 = arith.addf %82, %84 : vector<1x16xf32>
    %86 = math.rsqrt %85 : vector<1x16xf32>
    %87 = arith.mulf %83, %86 : vector<1x16xf32>
    %c0_74 = arith.constant 0 : index
    %c0_75 = arith.constant 0 : index
    %88 = vector.load %arg6[%c0_74, %c0_75] : memref<1x16xf32, #tpu.memory_space<vmem>>, vector<1x16xf32>
    %89 = arith.mulf %76, %87 : vector<1x16xf32>
    %90 = arith.subf %88, %89 : vector<1x16xf32>
    %c0_76 = arith.constant 0 : index
    %c0_77 = arith.constant 0 : index
    %91 = vector.load %arg8[%c0_76, %c0_77] : memref<16x256xf32, #tpu.memory_space<vmem>>, vector<16x256xf32>
    %cst_78 = arith.constant dense<0.000000e+00> : vector<1x256xf32>
    %92 = tpu.matmul %87, %91, %cst_78 {dimension_numbers = #tpu.dot_dimension_numbers<[1], [0], [0], [1], [0, 0, 1, 1], [], []>} : vector<1x16xf32>, vector<16x256xf32>, vector<1x256xf32> -> vector<1x256xf32>
    %cst_79 = arith.constant dense<0.000000e+00> : vector<1x256xf32>
    %93 = tpu.matmul %90, %91, %cst_79 {dimension_numbers = #tpu.dot_dimension_numbers<[1], [0], [0], [1], [0, 0, 1, 1], [], []>} : vector<1x16xf32>, vector<16x256xf32>, vector<1x256xf32> -> vector<1x256xf32>
    %94 = vector.broadcast %92 : vector<1x256xf32> to vector<32x256xf32>
    %95 = arith.mulf %66, %94 : vector<32x256xf32>
    %96 = vector.broadcast %93 : vector<1x256xf32> to vector<32x256xf32>
    %97 = arith.addf %95, %96 : vector<32x256xf32>
    %cst_80 = arith.constant 2.000000e-01 : f32
    %98 = vector.broadcast %cst_80 : f32 to vector<32x256xf32>
    %99 = arith.mulf %98, %97 : vector<32x256xf32>
    %100 = arith.maximumf %97, %99 : vector<32x256xf32>
    %101 = arith.truncf %100 : vector<32x256xf32> to vector<32x256xbf16>
    %c0_81 = arith.constant 0 : index
    %c0_82 = arith.constant 0 : index
    %c0_83 = arith.constant 0 : index
    %102 = vector.load %arg10[%c0_81, %c0_82, %c0_83] : memref<4x16x32xbf16, #tpu.memory_space<vmem>>, vector<1x16x32xbf16>
    %103 = vector.shape_cast %102 : vector<1x16x32xbf16> to vector<16x32xbf16>
    %cst_84 = arith.constant dense<0.000000e+00> : vector<16x256xf32>
    %104 = tpu.matmul %103, %101, %cst_84 {dimension_numbers = #tpu.dot_dimension_numbers<[1], [0], [0], [1], [0, 0, 1, 1], [], []>} : vector<16x32xbf16>, vector<32x256xbf16>, vector<16x256xf32> -> vector<16x256xf32>
    %105 = arith.truncf %104 : vector<16x256xf32> to vector<16x256xbf16>
    %c0_85 = arith.constant 0 : index
    %c0_86 = arith.constant 0 : index
    %c0_87 = arith.constant 0 : index
    %106 = vector.load %arg9[%c0_85, %c0_86, %c0_87] : memref<4x256x256xbf16, #tpu.memory_space<vmem>>, vector<1x256x256xbf16>
    %107 = vector.shape_cast %106 : vector<1x256x256xbf16> to vector<256x256xbf16>
    %cst_88 = arith.constant dense<0.000000e+00> : vector<16x256xf32>
    %108 = tpu.matmul %105, %107, %cst_88 {dimension_numbers = #tpu.dot_dimension_numbers<[1], [0], [0], [1], [0, 0, 1, 1], [], []>} : vector<16x256xbf16>, vector<256x256xbf16>, vector<16x256xf32> -> vector<16x256xf32>
    %c1_89 = arith.constant 1 : index
    %c0_90 = arith.constant 0 : index
    %c0_91 = arith.constant 0 : index
    %109 = vector.load %arg10[%c1_89, %c0_90, %c0_91] : memref<4x16x32xbf16, #tpu.memory_space<vmem>>, vector<1x16x32xbf16>
    %110 = vector.shape_cast %109 : vector<1x16x32xbf16> to vector<16x32xbf16>
    %cst_92 = arith.constant dense<0.000000e+00> : vector<16x256xf32>
    %111 = tpu.matmul %110, %101, %cst_92 {dimension_numbers = #tpu.dot_dimension_numbers<[1], [0], [0], [1], [0, 0, 1, 1], [], []>} : vector<16x32xbf16>, vector<32x256xbf16>, vector<16x256xf32> -> vector<16x256xf32>
    %112 = arith.truncf %111 : vector<16x256xf32> to vector<16x256xbf16>
    %c1_93 = arith.constant 1 : index
    %c0_94 = arith.constant 0 : index
    %c0_95 = arith.constant 0 : index
    %113 = vector.load %arg9[%c1_93, %c0_94, %c0_95] : memref<4x256x256xbf16, #tpu.memory_space<vmem>>, vector<1x256x256xbf16>
    %114 = vector.shape_cast %113 : vector<1x256x256xbf16> to vector<256x256xbf16>
    %cst_96 = arith.constant dense<0.000000e+00> : vector<16x256xf32>
    %115 = tpu.matmul %112, %114, %cst_96 {dimension_numbers = #tpu.dot_dimension_numbers<[1], [0], [0], [1], [0, 0, 1, 1], [], []>} : vector<16x256xbf16>, vector<256x256xbf16>, vector<16x256xf32> -> vector<16x256xf32>
    %116 = arith.addf %108, %115 : vector<16x256xf32>
    %c2_97 = arith.constant 2 : index
    %c0_98 = arith.constant 0 : index
    %c0_99 = arith.constant 0 : index
    %117 = vector.load %arg10[%c2_97, %c0_98, %c0_99] : memref<4x16x32xbf16, #tpu.memory_space<vmem>>, vector<1x16x32xbf16>
    %118 = vector.shape_cast %117 : vector<1x16x32xbf16> to vector<16x32xbf16>
    %cst_100 = arith.constant dense<0.000000e+00> : vector<16x256xf32>
    %119 = tpu.matmul %118, %101, %cst_100 {dimension_numbers = #tpu.dot_dimension_numbers<[1], [0], [0], [1], [0, 0, 1, 1], [], []>} : vector<16x32xbf16>, vector<32x256xbf16>, vector<16x256xf32> -> vector<16x256xf32>
    %120 = arith.truncf %119 : vector<16x256xf32> to vector<16x256xbf16>
    %c2_101 = arith.constant 2 : index
    %c0_102 = arith.constant 0 : index
    %c0_103 = arith.constant 0 : index
    %121 = vector.load %arg9[%c2_101, %c0_102, %c0_103] : memref<4x256x256xbf16, #tpu.memory_space<vmem>>, vector<1x256x256xbf16>
    %122 = vector.shape_cast %121 : vector<1x256x256xbf16> to vector<256x256xbf16>
    %cst_104 = arith.constant dense<0.000000e+00> : vector<16x256xf32>
    %123 = tpu.matmul %120, %122, %cst_104 {dimension_numbers = #tpu.dot_dimension_numbers<[1], [0], [0], [1], [0, 0, 1, 1], [], []>} : vector<16x256xbf16>, vector<256x256xbf16>, vector<16x256xf32> -> vector<16x256xf32>
    %124 = arith.addf %116, %123 : vector<16x256xf32>
    %c3_105 = arith.constant 3 : index
    %c0_106 = arith.constant 0 : index
    %c0_107 = arith.constant 0 : index
    %125 = vector.load %arg10[%c3_105, %c0_106, %c0_107] : memref<4x16x32xbf16, #tpu.memory_space<vmem>>, vector<1x16x32xbf16>
    %126 = vector.shape_cast %125 : vector<1x16x32xbf16> to vector<16x32xbf16>
    %cst_108 = arith.constant dense<0.000000e+00> : vector<16x256xf32>
    %127 = tpu.matmul %126, %101, %cst_108 {dimension_numbers = #tpu.dot_dimension_numbers<[1], [0], [0], [1], [0, 0, 1, 1], [], []>} : vector<16x32xbf16>, vector<32x256xbf16>, vector<16x256xf32> -> vector<16x256xf32>
    %128 = arith.truncf %127 : vector<16x256xf32> to vector<16x256xbf16>
    %c3_109 = arith.constant 3 : index
    %c0_110 = arith.constant 0 : index
    %c0_111 = arith.constant 0 : index
    %129 = vector.load %arg9[%c3_109, %c0_110, %c0_111] : memref<4x256x256xbf16, #tpu.memory_space<vmem>>, vector<1x256x256xbf16>
    %130 = vector.shape_cast %129 : vector<1x256x256xbf16> to vector<256x256xbf16>
    %cst_112 = arith.constant dense<0.000000e+00> : vector<16x256xf32>
    %131 = tpu.matmul %128, %130, %cst_112 {dimension_numbers = #tpu.dot_dimension_numbers<[1], [0], [0], [1], [0, 0, 1, 1], [], []>} : vector<16x256xbf16>, vector<256x256xbf16>, vector<16x256xf32> -> vector<16x256xf32>
    %132 = arith.addf %124, %131 : vector<16x256xf32>
    %c0_113 = arith.constant 0 : index
    %c0_114 = arith.constant 0 : index
    %133 = vector.load %arg13[%c0_113, %c0_114] : memref<256x32xf32, #tpu.memory_space<vmem>>, vector<256x32xf32>
    %cst_115 = arith.constant dense<0.000000e+00> : vector<16x32xf32>
    %134 = tpu.matmul %132, %133, %cst_115 {dimension_numbers = #tpu.dot_dimension_numbers<[1], [0], [0], [1], [0, 0, 1, 1], [], []>} : vector<16x256xf32>, vector<256x32xf32>, vector<16x32xf32> -> vector<16x32xf32>
    %cst_116 = arith.constant dense<0.000000e+00> : vector<32xf32>
    %135 = vector.multi_reduction <add>, %134, %cst_116 [0] : vector<16x32xf32> to vector<32xf32>
    %136 = vector.shape_cast %135 : vector<32xf32> to vector<1x32xf32>
    %137 = arith.mulf %132, %132 : vector<16x256xf32>
    %cst_117 = arith.constant dense<0.000000e+00> : vector<16x32xf32>
    %138 = tpu.matmul %137, %133, %cst_117 {dimension_numbers = #tpu.dot_dimension_numbers<[1], [0], [0], [1], [0, 0, 1, 1], [], []>} : vector<16x256xf32>, vector<256x32xf32>, vector<16x32xf32> -> vector<16x32xf32>
    %cst_118 = arith.constant dense<0.000000e+00> : vector<32xf32>
    %139 = vector.multi_reduction <add>, %138, %cst_118 [0] : vector<16x32xf32> to vector<32xf32>
    %140 = vector.shape_cast %139 : vector<32xf32> to vector<1x32xf32>
    %cst_119 = arith.constant 7.812500e-03 : f32
    %141 = vector.broadcast %cst_119 : f32 to vector<1x32xf32>
    %142 = arith.mulf %136, %141 : vector<1x32xf32>
    %cst_120 = arith.constant 7.812500e-03 : f32
    %143 = vector.broadcast %cst_120 : f32 to vector<1x32xf32>
    %144 = arith.mulf %140, %143 : vector<1x32xf32>
    %145 = arith.mulf %142, %142 : vector<1x32xf32>
    %146 = arith.subf %144, %145 : vector<1x32xf32>
    %cst_121 = arith.constant 0.000000e+00 : f32
    %147 = vector.broadcast %cst_121 : f32 to vector<1x32xf32>
    %148 = arith.maximumf %146, %147 : vector<1x32xf32>
    %c0_122 = arith.constant 0 : index
    %c0_123 = arith.constant 0 : index
    %149 = vector.load %arg11[%c0_122, %c0_123] : memref<1x32xf32, #tpu.memory_space<vmem>>, vector<1x32xf32>
    %cst_124 = arith.constant 9.99999974E-6 : f32
    %150 = vector.broadcast %cst_124 : f32 to vector<1x32xf32>
    %151 = arith.addf %148, %150 : vector<1x32xf32>
    %152 = math.rsqrt %151 : vector<1x32xf32>
    %153 = arith.mulf %149, %152 : vector<1x32xf32>
    %c0_125 = arith.constant 0 : index
    %c0_126 = arith.constant 0 : index
    %154 = vector.load %arg12[%c0_125, %c0_126] : memref<1x32xf32, #tpu.memory_space<vmem>>, vector<1x32xf32>
    %155 = arith.mulf %142, %153 : vector<1x32xf32>
    %156 = arith.subf %154, %155 : vector<1x32xf32>
    %c0_127 = arith.constant 0 : index
    %c0_128 = arith.constant 0 : index
    %157 = vector.load %arg14[%c0_127, %c0_128] : memref<32x256xf32, #tpu.memory_space<vmem>>, vector<32x256xf32>
    %cst_129 = arith.constant dense<0.000000e+00> : vector<1x256xf32>
    %158 = tpu.matmul %153, %157, %cst_129 {dimension_numbers = #tpu.dot_dimension_numbers<[1], [0], [0], [1], [0, 0, 1, 1], [], []>} : vector<1x32xf32>, vector<32x256xf32>, vector<1x256xf32> -> vector<1x256xf32>
    %cst_130 = arith.constant dense<0.000000e+00> : vector<1x256xf32>
    %159 = tpu.matmul %156, %157, %cst_130 {dimension_numbers = #tpu.dot_dimension_numbers<[1], [0], [0], [1], [0, 0, 1, 1], [], []>} : vector<1x32xf32>, vector<32x256xf32>, vector<1x256xf32> -> vector<1x256xf32>
    %160 = vector.broadcast %158 : vector<1x256xf32> to vector<16x256xf32>
    %161 = arith.mulf %132, %160 : vector<16x256xf32>
    %162 = vector.broadcast %159 : vector<1x256xf32> to vector<16x256xf32>
    %163 = arith.addf %161, %162 : vector<16x256xf32>
    %cst_131 = arith.constant 2.000000e-01 : f32
    %164 = vector.broadcast %cst_131 : f32 to vector<16x256xf32>
    %165 = arith.mulf %164, %163 : vector<16x256xf32>
    %166 = arith.maximumf %163, %165 : vector<16x256xf32>
    %167 = arith.truncf %166 : vector<16x256xf32> to vector<16x256xbf16>
    %c0_132 = arith.constant 0 : index
    %c0_133 = arith.constant 0 : index
    %c0_134 = arith.constant 0 : index
    %168 = vector.load %arg16[%c0_132, %c0_133, %c0_134] : memref<4x8x16xbf16, #tpu.memory_space<vmem>>, vector<1x8x16xbf16>
    %169 = vector.shape_cast %168 : vector<1x8x16xbf16> to vector<8x16xbf16>
    %cst_135 = arith.constant dense<0.000000e+00> : vector<8x256xf32>
    %170 = tpu.matmul %169, %167, %cst_135 {dimension_numbers = #tpu.dot_dimension_numbers<[1], [0], [0], [1], [0, 0, 1, 1], [], []>} : vector<8x16xbf16>, vector<16x256xbf16>, vector<8x256xf32> -> vector<8x256xf32>
    %171 = arith.truncf %170 : vector<8x256xf32> to vector<8x256xbf16>
    %c0_136 = arith.constant 0 : index
    %c0_137 = arith.constant 0 : index
    %c0_138 = arith.constant 0 : index
    %172 = vector.load %arg15[%c0_136, %c0_137, %c0_138] : memref<4x256x256xbf16, #tpu.memory_space<vmem>>, vector<1x256x256xbf16>
    %173 = vector.shape_cast %172 : vector<1x256x256xbf16> to vector<256x256xbf16>
    %cst_139 = arith.constant dense<0.000000e+00> : vector<8x256xf32>
    %174 = tpu.matmul %171, %173, %cst_139 {dimension_numbers = #tpu.dot_dimension_numbers<[1], [0], [0], [1], [0, 0, 1, 1], [], []>} : vector<8x256xbf16>, vector<256x256xbf16>, vector<8x256xf32> -> vector<8x256xf32>
    %c1_140 = arith.constant 1 : index
    %c0_141 = arith.constant 0 : index
    %c0_142 = arith.constant 0 : index
    %175 = vector.load %arg16[%c1_140, %c0_141, %c0_142] : memref<4x8x16xbf16, #tpu.memory_space<vmem>>, vector<1x8x16xbf16>
    %176 = vector.shape_cast %175 : vector<1x8x16xbf16> to vector<8x16xbf16>
    %cst_143 = arith.constant dense<0.000000e+00> : vector<8x256xf32>
    %177 = tpu.matmul %176, %167, %cst_143 {dimension_numbers = #tpu.dot_dimension_numbers<[1], [0], [0], [1], [0, 0, 1, 1], [], []>} : vector<8x16xbf16>, vector<16x256xbf16>, vector<8x256xf32> -> vector<8x256xf32>
    %178 = arith.truncf %177 : vector<8x256xf32> to vector<8x256xbf16>
    %c1_144 = arith.constant 1 : index
    %c0_145 = arith.constant 0 : index
    %c0_146 = arith.constant 0 : index
    %179 = vector.load %arg15[%c1_144, %c0_145, %c0_146] : memref<4x256x256xbf16, #tpu.memory_space<vmem>>, vector<1x256x256xbf16>
    %180 = vector.shape_cast %179 : vector<1x256x256xbf16> to vector<256x256xbf16>
    %cst_147 = arith.constant dense<0.000000e+00> : vector<8x256xf32>
    %181 = tpu.matmul %178, %180, %cst_147 {dimension_numbers = #tpu.dot_dimension_numbers<[1], [0], [0], [1], [0, 0, 1, 1], [], []>} : vector<8x256xbf16>, vector<256x256xbf16>, vector<8x256xf32> -> vector<8x256xf32>
    %182 = arith.addf %174, %181 : vector<8x256xf32>
    %c2_148 = arith.constant 2 : index
    %c0_149 = arith.constant 0 : index
    %c0_150 = arith.constant 0 : index
    %183 = vector.load %arg16[%c2_148, %c0_149, %c0_150] : memref<4x8x16xbf16, #tpu.memory_space<vmem>>, vector<1x8x16xbf16>
    %184 = vector.shape_cast %183 : vector<1x8x16xbf16> to vector<8x16xbf16>
    %cst_151 = arith.constant dense<0.000000e+00> : vector<8x256xf32>
    %185 = tpu.matmul %184, %167, %cst_151 {dimension_numbers = #tpu.dot_dimension_numbers<[1], [0], [0], [1], [0, 0, 1, 1], [], []>} : vector<8x16xbf16>, vector<16x256xbf16>, vector<8x256xf32> -> vector<8x256xf32>
    %186 = arith.truncf %185 : vector<8x256xf32> to vector<8x256xbf16>
    %c2_152 = arith.constant 2 : index
    %c0_153 = arith.constant 0 : index
    %c0_154 = arith.constant 0 : index
    %187 = vector.load %arg15[%c2_152, %c0_153, %c0_154] : memref<4x256x256xbf16, #tpu.memory_space<vmem>>, vector<1x256x256xbf16>
    %188 = vector.shape_cast %187 : vector<1x256x256xbf16> to vector<256x256xbf16>
    %cst_155 = arith.constant dense<0.000000e+00> : vector<8x256xf32>
    %189 = tpu.matmul %186, %188, %cst_155 {dimension_numbers = #tpu.dot_dimension_numbers<[1], [0], [0], [1], [0, 0, 1, 1], [], []>} : vector<8x256xbf16>, vector<256x256xbf16>, vector<8x256xf32> -> vector<8x256xf32>
    %190 = arith.addf %182, %189 : vector<8x256xf32>
    %c3_156 = arith.constant 3 : index
    %c0_157 = arith.constant 0 : index
    %c0_158 = arith.constant 0 : index
    %191 = vector.load %arg16[%c3_156, %c0_157, %c0_158] : memref<4x8x16xbf16, #tpu.memory_space<vmem>>, vector<1x8x16xbf16>
    %192 = vector.shape_cast %191 : vector<1x8x16xbf16> to vector<8x16xbf16>
    %cst_159 = arith.constant dense<0.000000e+00> : vector<8x256xf32>
    %193 = tpu.matmul %192, %167, %cst_159 {dimension_numbers = #tpu.dot_dimension_numbers<[1], [0], [0], [1], [0, 0, 1, 1], [], []>} : vector<8x16xbf16>, vector<16x256xbf16>, vector<8x256xf32> -> vector<8x256xf32>
    %194 = arith.truncf %193 : vector<8x256xf32> to vector<8x256xbf16>
    %c3_160 = arith.constant 3 : index
    %c0_161 = arith.constant 0 : index
    %c0_162 = arith.constant 0 : index
    %195 = vector.load %arg15[%c3_160, %c0_161, %c0_162] : memref<4x256x256xbf16, #tpu.memory_space<vmem>>, vector<1x256x256xbf16>
    %196 = vector.shape_cast %195 : vector<1x256x256xbf16> to vector<256x256xbf16>
    %cst_163 = arith.constant dense<0.000000e+00> : vector<8x256xf32>
    %197 = tpu.matmul %194, %196, %cst_163 {dimension_numbers = #tpu.dot_dimension_numbers<[1], [0], [0], [1], [0, 0, 1, 1], [], []>} : vector<8x256xbf16>, vector<256x256xbf16>, vector<8x256xf32> -> vector<8x256xf32>
    %198 = arith.addf %190, %197 : vector<8x256xf32>
    %c0_164 = arith.constant 0 : index
    %c0_165 = arith.constant 0 : index
    %199 = vector.load %arg19[%c0_164, %c0_165] : memref<256x64xf32, #tpu.memory_space<vmem>>, vector<256x64xf32>
    %cst_166 = arith.constant dense<0.000000e+00> : vector<8x64xf32>
    %200 = tpu.matmul %198, %199, %cst_166 {dimension_numbers = #tpu.dot_dimension_numbers<[1], [0], [0], [1], [0, 0, 1, 1], [], []>} : vector<8x256xf32>, vector<256x64xf32>, vector<8x64xf32> -> vector<8x64xf32>
    %cst_167 = arith.constant dense<0.000000e+00> : vector<64xf32>
    %201 = vector.multi_reduction <add>, %200, %cst_167 [0] : vector<8x64xf32> to vector<64xf32>
    %202 = vector.shape_cast %201 : vector<64xf32> to vector<1x64xf32>
    %203 = arith.mulf %198, %198 : vector<8x256xf32>
    %cst_168 = arith.constant dense<0.000000e+00> : vector<8x64xf32>
    %204 = tpu.matmul %203, %199, %cst_168 {dimension_numbers = #tpu.dot_dimension_numbers<[1], [0], [0], [1], [0, 0, 1, 1], [], []>} : vector<8x256xf32>, vector<256x64xf32>, vector<8x64xf32> -> vector<8x64xf32>
    %cst_169 = arith.constant dense<0.000000e+00> : vector<64xf32>
    %205 = vector.multi_reduction <add>, %204, %cst_169 [0] : vector<8x64xf32> to vector<64xf32>
    %206 = vector.shape_cast %205 : vector<64xf32> to vector<1x64xf32>
    %cst_170 = arith.constant 3.125000e-02 : f32
    %207 = vector.broadcast %cst_170 : f32 to vector<1x64xf32>
    %208 = arith.mulf %202, %207 : vector<1x64xf32>
    %cst_171 = arith.constant 3.125000e-02 : f32
    %209 = vector.broadcast %cst_171 : f32 to vector<1x64xf32>
    %210 = arith.mulf %206, %209 : vector<1x64xf32>
    %211 = arith.mulf %208, %208 : vector<1x64xf32>
    %212 = arith.subf %210, %211 : vector<1x64xf32>
    %cst_172 = arith.constant 0.000000e+00 : f32
    %213 = vector.broadcast %cst_172 : f32 to vector<1x64xf32>
    %214 = arith.maximumf %212, %213 : vector<1x64xf32>
    %c0_173 = arith.constant 0 : index
    %c0_174 = arith.constant 0 : index
    %215 = vector.load %arg17[%c0_173, %c0_174] : memref<1x64xf32, #tpu.memory_space<vmem>>, vector<1x64xf32>
    %cst_175 = arith.constant 9.99999974E-6 : f32
    %216 = vector.broadcast %cst_175 : f32 to vector<1x64xf32>
    %217 = arith.addf %214, %216 : vector<1x64xf32>
    %218 = math.rsqrt %217 : vector<1x64xf32>
    %219 = arith.mulf %215, %218 : vector<1x64xf32>
    %c0_176 = arith.constant 0 : index
    %c0_177 = arith.constant 0 : index
    %220 = vector.load %arg18[%c0_176, %c0_177] : memref<1x64xf32, #tpu.memory_space<vmem>>, vector<1x64xf32>
    %221 = arith.mulf %208, %219 : vector<1x64xf32>
    %222 = arith.subf %220, %221 : vector<1x64xf32>
    %c0_178 = arith.constant 0 : index
    %c0_179 = arith.constant 0 : index
    %223 = vector.load %arg20[%c0_178, %c0_179] : memref<64x256xf32, #tpu.memory_space<vmem>>, vector<64x256xf32>
    %cst_180 = arith.constant dense<0.000000e+00> : vector<1x256xf32>
    %224 = tpu.matmul %219, %223, %cst_180 {dimension_numbers = #tpu.dot_dimension_numbers<[1], [0], [0], [1], [0, 0, 1, 1], [], []>} : vector<1x64xf32>, vector<64x256xf32>, vector<1x256xf32> -> vector<1x256xf32>
    %cst_181 = arith.constant dense<0.000000e+00> : vector<1x256xf32>
    %225 = tpu.matmul %222, %223, %cst_181 {dimension_numbers = #tpu.dot_dimension_numbers<[1], [0], [0], [1], [0, 0, 1, 1], [], []>} : vector<1x64xf32>, vector<64x256xf32>, vector<1x256xf32> -> vector<1x256xf32>
    %226 = vector.broadcast %224 : vector<1x256xf32> to vector<8x256xf32>
    %227 = arith.mulf %198, %226 : vector<8x256xf32>
    %228 = vector.broadcast %225 : vector<1x256xf32> to vector<8x256xf32>
    %229 = arith.addf %227, %228 : vector<8x256xf32>
    %cst_182 = arith.constant 2.000000e-01 : f32
    %230 = vector.broadcast %cst_182 : f32 to vector<8x256xf32>
    %231 = arith.mulf %230, %229 : vector<8x256xf32>
    %232 = arith.maximumf %229, %231 : vector<8x256xf32>
    %233 = arith.truncf %232 : vector<8x256xf32> to vector<8x256xbf16>
    %c0_183 = arith.constant 0 : index
    %c0_184 = arith.constant 0 : index
    %c0_185 = arith.constant 0 : index
    %234 = vector.load %arg22[%c0_183, %c0_184, %c0_185] : memref<4x2x8xbf16, #tpu.memory_space<vmem>>, vector<1x2x8xbf16>
    %235 = vector.shape_cast %234 : vector<1x2x8xbf16> to vector<2x8xbf16>
    %cst_186 = arith.constant dense<0.000000e+00> : vector<2x256xf32>
    %236 = tpu.matmul %235, %233, %cst_186 {dimension_numbers = #tpu.dot_dimension_numbers<[1], [0], [0], [1], [0, 0, 1, 1], [], []>} : vector<2x8xbf16>, vector<8x256xbf16>, vector<2x256xf32> -> vector<2x256xf32>
    %237 = arith.truncf %236 : vector<2x256xf32> to vector<2x256xbf16>
    %c0_187 = arith.constant 0 : index
    %c0_188 = arith.constant 0 : index
    %c0_189 = arith.constant 0 : index
    %238 = vector.load %arg21[%c0_187, %c0_188, %c0_189] : memref<4x256x1xbf16, #tpu.memory_space<vmem>>, vector<1x256x1xbf16>
    %239 = vector.shape_cast %238 : vector<1x256x1xbf16> to vector<256x1xbf16>
    %cst_190 = arith.constant dense<0.000000e+00> : vector<2x1xf32>
    %240 = tpu.matmul %237, %239, %cst_190 {dimension_numbers = #tpu.dot_dimension_numbers<[1], [0], [0], [1], [0, 0, 1, 1], [], []>} : vector<2x256xbf16>, vector<256x1xbf16>, vector<2x1xf32> -> vector<2x1xf32>
    %c1_191 = arith.constant 1 : index
    %c0_192 = arith.constant 0 : index
    %c0_193 = arith.constant 0 : index
    %241 = vector.load %arg22[%c1_191, %c0_192, %c0_193] : memref<4x2x8xbf16, #tpu.memory_space<vmem>>, vector<1x2x8xbf16>
    %242 = vector.shape_cast %241 : vector<1x2x8xbf16> to vector<2x8xbf16>
    %cst_194 = arith.constant dense<0.000000e+00> : vector<2x256xf32>
    %243 = tpu.matmul %242, %233, %cst_194 {dimension_numbers = #tpu.dot_dimension_numbers<[1], [0], [0], [1], [0, 0, 1, 1], [], []>} : vector<2x8xbf16>, vector<8x256xbf16>, vector<2x256xf32> -> vector<2x256xf32>
    %244 = arith.truncf %243 : vector<2x256xf32> to vector<2x256xbf16>
    %c1_195 = arith.constant 1 : index
    %c0_196 = arith.constant 0 : index
    %c0_197 = arith.constant 0 : index
    %245 = vector.load %arg21[%c1_195, %c0_196, %c0_197] : memref<4x256x1xbf16, #tpu.memory_space<vmem>>, vector<1x256x1xbf16>
    %246 = vector.shape_cast %245 : vector<1x256x1xbf16> to vector<256x1xbf16>
    %cst_198 = arith.constant dense<0.000000e+00> : vector<2x1xf32>
    %247 = tpu.matmul %244, %246, %cst_198 {dimension_numbers = #tpu.dot_dimension_numbers<[1], [0], [0], [1], [0, 0, 1, 1], [], []>} : vector<2x256xbf16>, vector<256x1xbf16>, vector<2x1xf32> -> vector<2x1xf32>
    %248 = arith.addf %240, %247 : vector<2x1xf32>
    %c2_199 = arith.constant 2 : index
    %c0_200 = arith.constant 0 : index
    %c0_201 = arith.constant 0 : index
    %249 = vector.load %arg22[%c2_199, %c0_200, %c0_201] : memref<4x2x8xbf16, #tpu.memory_space<vmem>>, vector<1x2x8xbf16>
    %250 = vector.shape_cast %249 : vector<1x2x8xbf16> to vector<2x8xbf16>
    %cst_202 = arith.constant dense<0.000000e+00> : vector<2x256xf32>
    %251 = tpu.matmul %250, %233, %cst_202 {dimension_numbers = #tpu.dot_dimension_numbers<[1], [0], [0], [1], [0, 0, 1, 1], [], []>} : vector<2x8xbf16>, vector<8x256xbf16>, vector<2x256xf32> -> vector<2x256xf32>
    %252 = arith.truncf %251 : vector<2x256xf32> to vector<2x256xbf16>
    %c2_203 = arith.constant 2 : index
    %c0_204 = arith.constant 0 : index
    %c0_205 = arith.constant 0 : index
    %253 = vector.load %arg21[%c2_203, %c0_204, %c0_205] : memref<4x256x1xbf16, #tpu.memory_space<vmem>>, vector<1x256x1xbf16>
    %254 = vector.shape_cast %253 : vector<1x256x1xbf16> to vector<256x1xbf16>
    %cst_206 = arith.constant dense<0.000000e+00> : vector<2x1xf32>
    %255 = tpu.matmul %252, %254, %cst_206 {dimension_numbers = #tpu.dot_dimension_numbers<[1], [0], [0], [1], [0, 0, 1, 1], [], []>} : vector<2x256xbf16>, vector<256x1xbf16>, vector<2x1xf32> -> vector<2x1xf32>
    %256 = arith.addf %248, %255 : vector<2x1xf32>
    %c3_207 = arith.constant 3 : index
    %c0_208 = arith.constant 0 : index
    %c0_209 = arith.constant 0 : index
    %257 = vector.load %arg22[%c3_207, %c0_208, %c0_209] : memref<4x2x8xbf16, #tpu.memory_space<vmem>>, vector<1x2x8xbf16>
    %258 = vector.shape_cast %257 : vector<1x2x8xbf16> to vector<2x8xbf16>
    %cst_210 = arith.constant dense<0.000000e+00> : vector<2x256xf32>
    %259 = tpu.matmul %258, %233, %cst_210 {dimension_numbers = #tpu.dot_dimension_numbers<[1], [0], [0], [1], [0, 0, 1, 1], [], []>} : vector<2x8xbf16>, vector<8x256xbf16>, vector<2x256xf32> -> vector<2x256xf32>
    %260 = arith.truncf %259 : vector<2x256xf32> to vector<2x256xbf16>
    %c3_211 = arith.constant 3 : index
    %c0_212 = arith.constant 0 : index
    %c0_213 = arith.constant 0 : index
    %261 = vector.load %arg21[%c3_211, %c0_212, %c0_213] : memref<4x256x1xbf16, #tpu.memory_space<vmem>>, vector<1x256x1xbf16>
    %262 = vector.shape_cast %261 : vector<1x256x1xbf16> to vector<256x1xbf16>
    %cst_214 = arith.constant dense<0.000000e+00> : vector<2x1xf32>
    %263 = tpu.matmul %260, %262, %cst_214 {dimension_numbers = #tpu.dot_dimension_numbers<[1], [0], [0], [1], [0, 0, 1, 1], [], []>} : vector<2x256xbf16>, vector<256x1xbf16>, vector<2x1xf32> -> vector<2x1xf32>
    %264 = arith.addf %256, %263 : vector<2x1xf32>
    %cst_215 = arith.constant 0.000000e+00 : f32
    %265 = vector.broadcast %cst_215 : f32 to vector<2x1xf32>
    %266 = arith.subf %265, %264 : vector<2x1xf32>
    %267 = math.exp %266 : vector<2x1xf32>
    %cst_216 = arith.constant 1.000000e+00 : f32
    %268 = vector.broadcast %cst_216 : f32 to vector<2x1xf32>
    %269 = arith.addf %268, %267 : vector<2x1xf32>
    %cst_217 = arith.constant 1.000000e+00 : f32
    %270 = vector.broadcast %cst_217 : f32 to vector<2x1xf32>
    %271 = arith.divf %270, %269 : vector<2x1xf32>
    %c0_218 = arith.constant 0 : index
    %c0_219 = arith.constant 0 : index
    %272 = vector.load %arg23[%c0_218, %c0_219] : memref<2x1xf32, #tpu.memory_space<vmem>>, vector<2x1xf32>
    tpu.vector_store %arg23[%c0_218, %c0_219], %271 {strides = array<i32>} : memref<2x1xf32, #tpu.memory_space<vmem>>, vector<2x1xf32>,
    return
  }
}

</mosaic_0001>

<bundles_post_ra>
// kernel: discriminator_forward.1
= control target key start
LH: loop header
LB: loop body
LE: loop exit
PB: predicated region body
PF: predicated region fallthrough
CT: control target
= control target key end

     0   :  { %s13273_s0 = inlined_call_operand.vmem [shape: bf16[128,192], index: 0, kind: input, shape index: {}]   ;;  %s13274_s1 = inlined_call_operand.vmem [shape: bf16[4,192,256], index: 1, kind: input, shape index: {}]   ;;  %s13275_s2 = inlined_call_operand.vmem [shape: bf16[4,64,128], index: 2, kind: input, shape index: {}]   ;;  %s13276_s3 = inlined_call_operand.vmem [shape: bf16[4,256,256], index: 3, kind: input, shape index: {}]   ;;  %s13277_s4 = inlined_call_operand.hbm [shape: bf16[4,32,64], index: 4, kind: input, shape index: {}]   ;;  %s13278_s5 = inlined_call_operand.hbm [shape: f32[1,16], index: 5, kind: input, shape index: {}]   ;;  %s13279_s6 = inlined_call_operand.hbm [shape: f32[1,16], index: 6, kind: input, shape index: {}]   ;;  %s13280_s7 = inlined_call_operand.vmem [shape: f32[256,16], index: 7, kind: input, shape index: {}]   ;;  %s13281_s8 = inlined_call_operand.hbm [shape: f32[16,256], index: 8, kind: input, shape index: {}]   ;;  %s13282_s9 = inlined_call_operand.vmem [shape: bf16[4,256,256], index: 9, kind: input, shape index: {}]   ;;  %s13283_s10 = inlined_call_operand.vmem [shape: bf16[4,16,32], index: 10, kind: input, shape index: {}]   ;;  %s13284_s11 = inlined_call_operand.hbm [shape: f32[1,32], index: 11, kind: input, shape index: {}]   ;;  %s13285_s12 = inlined_call_operand.hbm [shape: f32[1,32], index: 12, kind: input, shape index: {}]   ;;  %s13286_s13 = inlined_call_operand.vmem [shape: f32[256,32], index: 13, kind: input, shape index: {}]   ;;  %s13287_s14 = inlined_call_operand.hbm [shape: f32[32,256], index: 14, kind: input, shape index: {}]   ;;  %s13288_s15 = inlined_call_operand.hbm [shape: bf16[4,256,256], index: 15, kind: input, shape index: {}]   ;;  %s13289_s16 = inlined_call_operand.hbm [shape: bf16[4,8,16], index: 16, kind: input, shape index: {}]   ;;  %s13290_s17 = inlined_call_operand.hbm [shape: f32[1,64], index: 17, kind: input, shape index: {}]   ;;  %s13291_s18 = inlined_call_operand.hbm [shape: f32[1,64], index: 18, kind: input, shape index: {}]   ;;  %s13292_s19 = inlined_call_operand.vmem [shape: f32[256,64], index: 19, kind: input, shape index: {}]   ;;  %s13293_s20 = inlined_call_operand.hbm [shape: f32[64,256], index: 20, kind: input, shape index: {}]   ;;  %s13294_s21 = inlined_call_operand.vmem [shape: bf16[4,256,1], index: 21, kind: input, shape index: {}]   ;;  %s13295_s22 = inlined_call_operand.hbm [shape: bf16[4,2,8], index: 22, kind: input, shape index: {}]   ;;  %s13296_s23 = inlined_call_operand.vmem [shape: f32[2,1], index: 23, kind: output, shape index: {}]  }
   0x1   :  { %13305 = sst [smem:[#allocation29_spill]] %s13273_s0 }
   0x2   :  { %13306 = sst [smem:[#allocation30_spill]] %s13274_s1 }
   0x3   :  { %13307 = sst [smem:[#allocation31_spill]] %s13275_s2 }
   0x4   :  { %13308 = sst [smem:[#allocation32_spill]] %s13276_s3 }
   0x5   :  { %13309 = sst [smem:[#allocation33_spill]] %s13277_s4 }
   0x6   :  { %13310 = sst [smem:[#allocation34_spill]] %s13278_s5 }
   0x7   :  { %13311 = sst [smem:[#allocation35_spill]] %s13279_s6 }
   0x8   :  { %13312 = sst [smem:[#allocation36_spill]] %s13280_s7 }
   0x9   :  { %13313 = sst [smem:[#allocation37_spill]] %s13296_s23 }
   0xa   :  { %28 = vsyncpa [#allocation3], 0 }
   0xb   :  { %29 = vsyncpa [#allocation5], 0 }
   0xc   :  { %30 = vsyncpa [#allocation8], 0 }
   0xd   :  { %31 = vsyncpa [#allocation11], 0 }
   0xe   :  { %32 = vsyncpa [#allocation14], 0 }
   0xf   :  { %33 = vsyncpa [#allocation17], 0 }
  0x10   :  { %34 = vsyncpa [#allocation20], 0  ;;  %s10399_s4 = smov [#allocation4]   ;;  %s10400_s24 = smov [#allocation7]  }
  0x11   :  { %s61_s30 = sshll.u32 %s10399_s4, 4  ;;  %s82_s25 = sshll.u32 %s10400_s24, 4  ;;  %s62_s30 = int_to_ptr.vmem [resolvable:$true] %s61_s30  ;;  %s10541_s25 = int_to_ptr.vmem [resolvable:$true] %s82_s25 }
  0x12   :  { %s13314_s26 = sld [smem:[#allocation34_spill]] }
  0x18   :  { %s10099_s2 = scalar_lea.hbm %s13314_s26, 16 }
  0x19   :  { %p10100_p0 = scmp.ne.s32.totalorder %s13314_s26, %s10099_s2  ;;  %p10103_p1 = scmp.lt.u32.totalorder %s10099_s2, %s13314_s26 }
  0x1b   :  { %p10105_p2 = pnand %p10103_p1, %p10100_p0 }
  0x1d   :  { %10108 = shalt.err (!%p10105_p2)
}
  0x1e   :  { %s10109_s29 = scalar_lea.vmem %s62_s30, 16  ;;  %s10113_s3 = scalar_lea.vmem %s62_s30, 32 }
  0x1f   :  { %p10110_p3 = scmp.ne.s32.totalorder %s62_s30, %s10109_s29  ;;  %p10114_p4 = scmp.lt.s32.totalorder %s62_s30, %s62_s30 }
  0x20   :  { %p10115_p5 = scmp.lt.s32.totalorder %s10113_s3, %s10109_s29 }
  0x22   :  { %p10116_p6 = por %p10115_p5, %p10114_p4 }
  0x24   :  { %p10117_p7 = pnand %p10116_p6, %p10110_p3 }
  0x26   :  { %10120 = shalt.err (!%p10117_p7)
}
  0x27   :  { %64 = dma.hbm_to_vmem [thread:$0]  %s13314_s26, 16, %s62_s30, [#allocation5]  }
  0x28   :  { %s10121_s1 = scalar_lea.hbm %s13281_s8, 512 }
  0x29   :  { %p10122_p8 = scmp.ne.s32.totalorder %s13281_s8, %s10121_s1  ;;  %p10125_p9 = scmp.lt.u32.totalorder %s10121_s1, %s13281_s8 }
  0x2b   :  { %p10127_p10 = pnand %p10125_p9, %p10122_p8 }
  0x2d   :  { %10130 = shalt.err (!%p10127_p10)
}
  0x2e   :  { %s10131_s28 = scalar_lea.vmem %s10541_s25, 512  ;;  %p10136_p12 = scmp.lt.s32.totalorder %s10541_s25, %s10541_s25 }
  0x2f   :  { %p10132_p11 = scmp.ne.s32.totalorder %s10541_s25, %s10131_s28  ;;  %p10137_p13 = scmp.lt.s32.totalorder %s10131_s28, %s10131_s28 }
  0x31   :  { %p10138_p0 = por %p10137_p13, %p10136_p12 }
  0x33   :  { %p10139_p1 = pnand %p10138_p0, %p10132_p11 }
  0x35   :  { %10142 = shalt.err (!%p10139_p1)
}
  0x36   :  { %s10401_s30 = smov 256   ;;  %s10402_s26 = smov 16  }
  0x37   :  { %88 = dma.hbm_to_vmem [thread:$0]  %s13281_s8, 512, %s10541_s25, [#allocation8], %s10401_s30, %s10401_s30, %s10402_s26  }
  0x38   :  { %s10403_s0 = smov [#allocation10]   ;;  %s10404_s24 = smov [#allocation13]  }
  0x39   :  { %s109_s4 = sshll.u32 %s10403_s0, 4  ;;  %s132_s5 = sshll.u32 %s10404_s24, 4  ;;  %s110_s4 = int_to_ptr.vmem [resolvable:$true] %s109_s4  ;;  %s10575_s5 = int_to_ptr.vmem [resolvable:$true] %s132_s5 }
  0x3a   :  { %s10143_s2 = scalar_lea.hbm %s13285_s12, 16 }
  0x3b   :  { %p10144_p2 = scmp.ne.s32.totalorder %s13285_s12, %s10143_s2  ;;  %p10147_p3 = scmp.lt.u32.totalorder %s10143_s2, %s13285_s12 }
  0x3d   :  { %p10149_p4 = pnand %p10147_p3, %p10144_p2 }
  0x3f   :  { %10152 = shalt.err (!%p10149_p4)
}
  0x40   :  { %s10153_s8 = scalar_lea.vmem %s110_s4, 16  ;;  %s10157_s25 = scalar_lea.vmem %s110_s4, 32 }
  0x41   :  { %p10154_p5 = scmp.ne.s32.totalorder %s110_s4, %s10153_s8  ;;  %p10158_p6 = scmp.lt.s32.totalorder %s110_s4, %s110_s4 }
  0x42   :  { %p10159_p7 = scmp.lt.s32.totalorder %s10157_s25, %s10153_s8 }
  0x44   :  { %p10160_p8 = por %p10159_p7, %p10158_p6 }
  0x46   :  { %p10161_p9 = pnand %p10160_p8, %p10154_p5 }
  0x48   :  { %10164 = shalt.err (!%p10161_p9)
}
  0x49   :  { %112 = dma.hbm_to_vmem [thread:$0]  %s13285_s12, 16, %s110_s4, [#allocation11]  }
  0x4a   :  { %s10165_s1 = scalar_lea.hbm %s13288_s15, 16384 }
  0x4b   :  { %p10166_p10 = scmp.ne.s32.totalorder %s13288_s15, %s10165_s1  ;;  %p10169_p11 = scmp.lt.u32.totalorder %s10165_s1, %s13288_s15 }
  0x4d   :  { %p10171_p12 = pnand %p10169_p11, %p10166_p10 }
  0x4f   :  { %10174 = shalt.err (!%p10171_p12)
}
  0x50   :  { %s10175_s7 = scalar_lea.vmem %s10575_s5, 16384  ;;  %p10180_p0 = scmp.lt.s32.totalorder %s10575_s5, %s10575_s5 }
  0x51   :  { %p10176_p13 = scmp.ne.s32.totalorder %s10575_s5, %s10175_s7  ;;  %p10181_p1 = scmp.lt.s32.totalorder %s10175_s7, %s10175_s7 }
  0x53   :  { %p10182_p2 = por %p10181_p1, %p10180_p0 }
  0x55   :  { %p10183_p3 = pnand %p10182_p2, %p10176_p13 }
  0x57   :  { %10186 = shalt.err (!%p10183_p3)
}
  0x58   :  { %s10405_s12 = smov 128   ;;  %s10406_s4 = smov 8  }
  0x59   :  { %138 = dma.hbm_to_vmem [thread:$0]  %s13288_s15, 16384, %s10575_s5, [#allocation14], %s10405_s12, %s10405_s12, %s10406_s4  }
  0x5a   :  { %s10407_s25 = smov [#allocation16]   ;;  %s10408_s3 = smov [#allocation19]  }
  0x5b   :  { %s157_s29 = sshll.u32 %s10407_s25, 4  ;;  %s178_s0 = sshll.u32 %s10408_s3, 4  ;;  %s158_s29 = int_to_ptr.vmem [resolvable:$true] %s157_s29  ;;  %s10606_s0 = int_to_ptr.vmem [resolvable:$true] %s178_s0 }
  0x5c   :  { %s10187_s23 = scalar_lea.hbm %s13290_s17, 16 }
  0x5d   :  { %p10188_p4 = scmp.ne.s32.totalorder %s13290_s17, %s10187_s23  ;;  %p10191_p5 = scmp.lt.u32.totalorder %s10187_s23, %s13290_s17 }
  0x5f   :  { %p10193_p6 = pnand %p10191_p5, %p10188_p4 }
  0x61   :  { %10196 = shalt.err (!%p10193_p6)
}
  0x62   :  { %s10197_s15 = scalar_lea.vmem %s158_s29, 16  ;;  %s10201_s5 = scalar_lea.vmem %s158_s29, 32 }
  0x63   :  { %p10198_p7 = scmp.ne.s32.totalorder %s158_s29, %s10197_s15  ;;  %p10202_p8 = scmp.lt.s32.totalorder %s158_s29, %s158_s29 }
  0x64   :  { %p10203_p9 = scmp.lt.s32.totalorder %s10201_s5, %s10197_s15 }
  0x66   :  { %p10204_p10 = por %p10203_p9, %p10202_p8 }
  0x68   :  { %p10205_p11 = pnand %p10204_p10, %p10198_p7 }
  0x6a   :  { %10208 = shalt.err (!%p10205_p11)
}
  0x6b   :  { %160 = dma.hbm_to_vmem [thread:$0]  %s13290_s17, 16, %s158_s29, [#allocation17]  }
  0x6c   :  { %s10209_s25 = scalar_lea.hbm %s13293_s20, 2048 }
  0x6d   :  { %p10210_p12 = scmp.ne.s32.totalorder %s13293_s20, %s10209_s25  ;;  %p10213_p13 = scmp.lt.u32.totalorder %s10209_s25, %s13293_s20 }
  0x6f   :  { %p10215_p0 = pnand %p10213_p13, %p10210_p12 }
  0x71   :  { %10218 = shalt.err (!%p10215_p0)
}
  0x72   :  { %s10219_s6 = scalar_lea.vmem %s10606_s0, 2048  ;;  %p10224_p2 = scmp.lt.s32.totalorder %s10606_s0, %s10606_s0 }
  0x73   :  { %p10220_p1 = scmp.ne.s32.totalorder %s10606_s0, %s10219_s6  ;;  %p10225_p3 = scmp.lt.s32.totalorder %s10219_s6, %s10219_s6 }
  0x75   :  { %p10226_p4 = por %p10225_p3, %p10224_p2 }
  0x77   :  { %p10227_p5 = pnand %p10226_p4, %p10220_p1 }
  0x79   :  { %10230 = shalt.err (!%p10227_p5)
}
  0x7a   :  { %184 = dma.hbm_to_vmem [thread:$0]  %s13293_s20, 2048, %s10606_s0, [#allocation20], %s10401_s30, %s10401_s30, %s10402_s26  }
  0x7b   :  { %s10409_s2 = smov [#allocation2]   ;;  %s13315_s5 = sld [smem:[#allocation33_spill]] }
  0x7c   :  { %s48_s27 = sshll.u32 %s10409_s2, 4  ;;  %s49_s27 = int_to_ptr.vmem [resolvable:$true] %s48_s27 }
  0x81   :  { %s10231_s12 = scalar_lea.hbm %s13315_s5, 1024 }
  0x82   :  { %p10232_p6 = scmp.ne.s32.totalorder %s13315_s5, %s10231_s12  ;;  %p10235_p7 = scmp.lt.u32.totalorder %s10231_s12, %s13315_s5 }
  0x84   :  { %p10237_p8 = pnand %p10235_p7, %p10232_p6 }
  0x86   :  { %10240 = shalt.err (!%p10237_p8)
}
  0x87   :  { %s10241_s3 = scalar_lea.vmem %s49_s27, 1024  ;;  %p10246_p10 = scmp.lt.s32.totalorder %s49_s27, %s49_s27 }
  0x88   :  { %p10242_p9 = scmp.ne.s32.totalorder %s49_s27, %s10241_s3  ;;  %p10247_p11 = scmp.lt.s32.totalorder %s10241_s3, %s10241_s3 }
  0x8a   :  { %p10248_p12 = por %p10247_p11, %p10246_p10 }
  0x8c   :  { %p10249_p13 = pnand %p10248_p12, %p10242_p9 }
  0x8e   :  { %10252 = shalt.err (!%p10249_p13)
}
  0x8f   :  { %s10410_s20 = smov 64   ;;  %s10411_s0 = smov 4  }
  0x90   :  { %54 = dma.hbm_to_vmem [thread:$0]  %s13315_s5, 1024, %s49_s27, [#allocation3], %s10410_s20, %s10410_s20, %s10411_s0  }
  0x91   :  { %s10412_s23 = smov [#allocation6]   ;;  %s10413_s17 = smov [#allocation9]  }
  0x92   :  { %s71_s6 = sshll.u32 %s10412_s23, 4  ;;  %s99_s29 = sshll.u32 %s10413_s17, 4  ;;  %s72_s6 = int_to_ptr.vmem [resolvable:$true] %s71_s6  ;;  %s100_s29 = int_to_ptr.vmem [resolvable:$true] %s99_s29 }
  0x93   :  { %s13316_s15 = sld [smem:[#allocation35_spill]] }
  0x99   :  { %s10253_s12 = scalar_lea.hbm %s13316_s15, 16 }
  0x9a   :  { %p10254_p0 = scmp.ne.s32.totalorder %s13316_s15, %s10253_s12  ;;  %p10257_p1 = scmp.lt.u32.totalorder %s10253_s12, %s13316_s15 }
  0x9c   :  { %p10259_p2 = pnand %p10257_p1, %p10254_p0 }
  0x9e   :  { %10262 = shalt.err (!%p10259_p2)
}
  0x9f   :  { %s10263_s27 = scalar_lea.vmem %s72_s6, 16  ;;  %s10267_s5 = scalar_lea.vmem %s72_s6, 32 }
  0xa0   :  { %p10264_p3 = scmp.ne.s32.totalorder %s72_s6, %s10263_s27  ;;  %p10268_p4 = scmp.lt.s32.totalorder %s72_s6, %s72_s6 }
  0xa1   :  { %p10269_p5 = scmp.lt.s32.totalorder %s10267_s5, %s10263_s27 }
  0xa3   :  { %p10270_p6 = por %p10269_p5, %p10268_p4 }
  0xa5   :  { %p10271_p7 = pnand %p10270_p6, %p10264_p3 }
  0xa7   :  { %10274 = shalt.err (!%p10271_p7)
}
  0xa8   :  { %74 = dma.hbm_to_vmem [thread:$0]  %s13316_s15, 16, %s72_s6, [#allocation5]  }
  0xa9   :  { %s10275_s17 = scalar_lea.hbm %s13284_s11, 16 }
  0xaa   :  { %p10276_p8 = scmp.ne.s32.totalorder %s13284_s11, %s10275_s17  ;;  %p10279_p9 = scmp.lt.u32.totalorder %s10275_s17, %s13284_s11 }
  0xac   :  { %p10281_p10 = pnand %p10279_p9, %p10276_p8 }
  0xae   :  { %10284 = shalt.err (!%p10281_p10)
}
  0xaf   :  { %s10285_s28 = scalar_lea.vmem %s100_s29, 16  ;;  %s10289_s8 = scalar_lea.vmem %s100_s29, 32 }
  0xb0   :  { %p10286_p11 = scmp.ne.s32.totalorder %s100_s29, %s10285_s28  ;;  %p10290_p12 = scmp.lt.s32.totalorder %s100_s29, %s100_s29 }
  0xb1   :  { %p10291_p13 = scmp.lt.s32.totalorder %s10289_s8, %s10285_s28 }
  0xb3   :  { %p10292_p0 = por %p10291_p13, %p10290_p12 }
  0xb5   :  { %p10293_p1 = pnand %p10292_p0, %p10286_p11 }
  0xb7   :  { %10296 = shalt.err (!%p10293_p1)
}
  0xb8   :  { %102 = dma.hbm_to_vmem [thread:$0]  %s13284_s11, 16, %s100_s29, [#allocation8]  }
  0xb9   :  { %s10414_s25 = smov [#allocation12]   ;;  %s10415_s5 = smov [#allocation15]  }
  0xba   :  { %s120_s27 = sshll.u32 %s10414_s25, 4  ;;  %s144_s3 = sshll.u32 %s10415_s5, 4  ;;  %s121_s27 = int_to_ptr.vmem [resolvable:$true] %s120_s27  ;;  %s145_s3 = int_to_ptr.vmem [resolvable:$true] %s144_s3 }
  0xbb   :  { %s10297_s23 = scalar_lea.hbm %s13287_s14, 1024 }
  0xbc   :  { %p10298_p2 = scmp.ne.s32.totalorder %s13287_s14, %s10297_s23  ;;  %p10301_p3 = scmp.lt.u32.totalorder %s10297_s23, %s13287_s14 }
  0xbe   :  { %p10303_p4 = pnand %p10301_p3, %p10298_p2 }
  0xc0   :  { %10306 = shalt.err (!%p10303_p4)
}
  0xc1   :  { %s10307_s11 = scalar_lea.vmem %s121_s27, 1024  ;;  %p10312_p6 = scmp.lt.s32.totalorder %s121_s27, %s121_s27 }
  0xc2   :  { %p10308_p5 = scmp.ne.s32.totalorder %s121_s27, %s10307_s11  ;;  %p10313_p7 = scmp.lt.s32.totalorder %s10307_s11, %s10307_s11 }
  0xc4   :  { %p10314_p8 = por %p10313_p7, %p10312_p6 }
  0xc6   :  { %p10315_p9 = pnand %p10314_p8, %p10308_p5 }
  0xc8   :  { %10318 = shalt.err (!%p10315_p9)
}
  0xc9   :  { %126 = dma.hbm_to_vmem [thread:$0]  %s13287_s14, 1024, %s121_s27, [#allocation11], %s10401_s30, %s10401_s30, %s10402_s26  }
  0xca   :  { %s10319_s6 = scalar_lea.hbm %s13289_s16, 256 }
  0xcb   :  { %p10320_p10 = scmp.ne.s32.totalorder %s13289_s16, %s10319_s6  ;;  %p10323_p11 = scmp.lt.u32.totalorder %s10319_s6, %s13289_s16 }
  0xcd   :  { %p10325_p12 = pnand %p10323_p11, %p10320_p10 }
  0xcf   :  { %10328 = shalt.err (!%p10325_p12)
}
  0xd0   :  { %s10329_s1 = scalar_lea.vmem %s145_s3, 256  ;;  %p10334_p0 = scmp.lt.s32.totalorder %s145_s3, %s145_s3 }
  0xd1   :  { %p10330_p13 = scmp.ne.s32.totalorder %s145_s3, %s10329_s1  ;;  %p10335_p1 = scmp.lt.s32.totalorder %s10329_s1, %s10329_s1 }
  0xd3   :  { %p10336_p2 = por %p10335_p1, %p10334_p0 }
  0xd5   :  { %p10337_p3 = pnand %p10336_p2, %p10330_p13 }
  0xd7   :  { %10340 = shalt.err (!%p10337_p3)
}
  0xd8   :  { %150 = dma.hbm_to_vmem [thread:$0]  %s13289_s16, 256, %s145_s3, [#allocation14], %s10410_s20, %s10410_s20, %s10411_s0  }
  0xd9   :  { %s10416_s27 = smov [#allocation18]   ;;  %s10417_s17 = smov [#allocation21]  }
  0xda   :  { %s167_s23 = sshll.u32 %s10416_s27, 4  ;;  %s192_s2 = sshll.u32 %s10417_s17, 4  ;;  %s168_s23 = int_to_ptr.vmem [resolvable:$true] %s167_s23  ;;  %s193_s2 = int_to_ptr.vmem [resolvable:$true] %s192_s2 }
  0xdb   :  { %s10341_s11 = scalar_lea.hbm %s13291_s18, 16 }
  0xdc   :  { %p10342_p4 = scmp.ne.s32.totalorder %s13291_s18, %s10341_s11  ;;  %p10345_p5 = scmp.lt.u32.totalorder %s10341_s11, %s13291_s18 }
  0xde   :  { %p10347_p6 = pnand %p10345_p5, %p10342_p4 }
  0xe0   :  { %10350 = shalt.err (!%p10347_p6)
}
  0xe1   :  { %s10351_s16 = scalar_lea.vmem %s168_s23, 16  ;;  %s10355_s20 = scalar_lea.vmem %s168_s23, 32 }
  0xe2   :  { %p10352_p7 = scmp.ne.s32.totalorder %s168_s23, %s10351_s16  ;;  %p10356_p8 = scmp.lt.s32.totalorder %s168_s23, %s168_s23 }
  0xe3   :  { %p10357_p9 = scmp.lt.s32.totalorder %s10355_s20, %s10351_s16 }
  0xe5   :  { %p10358_p10 = por %p10357_p9, %p10356_p8 }
  0xe7   :  { %p10359_p11 = pnand %p10358_p10, %p10352_p7 }
  0xe9   :  { %10362 = shalt.err (!%p10359_p11)
}
  0xea   :  { %170 = dma.hbm_to_vmem [thread:$0]  %s13291_s18, 16, %s168_s23, [#allocation17]  }
  0xeb   :  { %s10363_s25 = scalar_lea.hbm %s13295_s22, 64 }
  0xec   :  { %p10364_p12 = scmp.ne.s32.totalorder %s13295_s22, %s10363_s25  ;;  %p10367_p13 = scmp.lt.u32.totalorder %s10363_s25, %s13295_s22 }
  0xee   :  { %p10369_p0 = pnand %p10367_p13, %p10364_p12 }
  0xf0   :  { %10372 = shalt.err (!%p10369_p0)
}
  0xf1   :  { %s10373_s30 = scalar_lea.vmem %s193_s2, 64  ;;  %p10378_p2 = scmp.lt.s32.totalorder %s193_s2, %s193_s2 }
  0xf2   :  { %p10374_p1 = scmp.ne.s32.totalorder %s193_s2, %s10373_s30  ;;  %p10379_p3 = scmp.lt.s32.totalorder %s10373_s30, %s10373_s30 }
  0xf4   :  { %p10380_p4 = por %p10379_p3, %p10378_p2 }
  0xf6   :  { %p10381_p5 = pnand %p10380_p4, %p10374_p1 }
  0xf8   :  { %10384 = shalt.err (!%p10381_p5)
}
  0xf9   :  { %s10418_s18 = smov 1  }
  0xfa   :  { %198 = dma.hbm_to_vmem [thread:$0]  %s13295_s22, 64, %s193_s2, [#allocation20], %s10402_s26, %s10402_s26, %s10418_s18  }
  0xfb   :  { %10385 = dma.done.wait [#allocation3], 1024  }
  0xfc   :  { %10386 = vsyncadd [#allocation3], 4294966272 }
  0xfd   :  { %10387 = dma.done.wait [#allocation5], 32  }
  0xfe   :  { %10388 = vsyncadd [#allocation5], 4294967264 }
  0xff   :  { %10389 = dma.done.wait [#allocation8], 528  }
 0x100   :  { %10390 = vsyncadd [#allocation8], 4294966768 }
 0x101   :  { %10391 = dma.done.wait [#allocation11], 1040  }
 0x102   :  { %10392 = vsyncadd [#allocation11], 4294966256 }
 0x103   :  { %10393 = dma.done.wait [#allocation14], 16640  }
 0x104   :  { %10394 = vsyncadd [#allocation14], 4294950656 }
 0x105   :  { %10395 = dma.done.wait [#allocation17], 32  }
 0x106   :  { %10396 = vsyncadd [#allocation17], 4294967264 }
 0x107   :  { %10397 = dma.done.wait [#allocation20], 2112  }
 0x108   :  { %10398 = vsyncadd [#allocation20], 4294965184  ;;  %v10419_v0 = vmov 0   ;;  %s13317_s17 = sld [smem:[#allocation29_spill]]  ;;  %s13318_s8 = sld [smem:[#allocation30_spill]]  ;;  %vm731_vm0 = vcmask 523264  }
 0x109   :  { %537 = vmatprep.mubr.bf16.mxu1 %v10419_v0  ;;  %399 = vmatprep.mubr.bf16.mxu0 %v10419_v0  ;;  %s13319_s0 = sld [smem:[#allocation31_spill]]  ;;  %s13320_s20 = sld [smem:[#allocation32_spill]]  ;;  %vm3209_vm1 = vcmask 130048   ;;  %vm3552_vm2 = vcmask 261120   ;;  %vm6651_vm3 = vcmask 1043456   ;;  %vm6647_vm4 = vcmask 64512  }
 0x10a   :  { %s13321_s4 = sld [smem:[#allocation36_spill]]  ;;  %vm7528_vm5 = vcmask 1024   ;;  %s13322_s22 = sld [smem:[#allocation37_spill]] }
 0x10e   :  { %v10740_v1 = vld [vmem:[%s13317_s17 + $0x4] ss:$8 sps:$4 sm:$0xff]   ;;  %v10745_v2 = vld [vmem:[%s13317_s17] ss:$8 sps:$4 sm:$0xff]   ;;  %v10751_v3 = vld [vmem:[%s13317_s17 + $0x14] ss:$8 sps:$4 sm:$0xff]  }
 0x10f   :  { %505 = vmatprep.subr.bf16.mxu1 %v10740_v1  ;;  %367 = vmatprep.subr.bf16.mxu0 %v10740_v1  ;;  %v10758_v4 = vld [vmem:[%s13317_s17 + $0x10] ss:$8 sps:$4 sm:$0xff]   ;;  %v10765_v5 = vld [vmem:[%s13317_s17 + $0x24] ss:$8 sps:$4 sm:$0xff]   ;;  %v10772_v6 = vld [vmem:[%s13317_s17 + $0x20] ss:$8 sps:$4 sm:$0xff]  }
 0x110   :  { %506 = vmatpush1.bf16.msra.mxu1 %v10745_v2  ;;  %368 = vmatpush1.bf16.msra.mxu0 %v10745_v2  ;;  %v10779_v7 = vld [vmem:[%s13317_s17 + $0x34] ss:$8 sps:$4 sm:$0xff]   ;;  %v10786_v8 = vld [vmem:[%s13317_s17 + $0x30] ss:$8 sps:$4 sm:$0xff]   ;;  %v10793_v9 = vld [vmem:[%s13317_s17 + $0x44] ss:$8 sps:$4 sm:$0xff]  }
 0x111   :  { %507 = vmatprep.subr.bf16.mxu1 %v10751_v3  ;;  %369 = vmatprep.subr.bf16.mxu0 %v10751_v3  ;;  %v10800_v10 = vld [vmem:[%s13317_s17 + $0x40] ss:$8 sps:$4 sm:$0xff]   ;;  %v10807_v11 = vld [vmem:[%s13317_s17 + $0x54] ss:$8 sps:$4 sm:$0xff]   ;;  %v10814_v12 = vld [vmem:[%s13317_s17 + $0x50] ss:$8 sps:$4 sm:$0xff]  }
 0x112   :  { %v10821_v13 = vld [vmem:[%s13317_s17 + $0x64] ss:$8 sps:$4 sm:$0xff]   ;;  %v10828_v14 = vld [vmem:[%s13317_s17 + $0x60] ss:$8 sps:$4 sm:$0xff]   ;;  %v10835_v15 = vld [vmem:[%s13317_s17 + $0x74] ss:$8 sps:$4 sm:$0xff]  }
 0x113   :  { %v10842_v16 = vld [vmem:[%s13317_s17 + $0x70] ss:$8 sps:$4 sm:$0xff]   ;;  %v9295_v17 = vld [vmem:[%s13318_s8 + $0xc4] ss:$8 sps:$4 sm:$0xff]   ;;  %v9293_v20 = vld [vmem:[%s13318_s8 + $0xc0] ss:$8 sps:$4 sm:$0xff]  }
 0x114   :  { %508 = vmatpush1.bf16.msra.mxu1 %v10758_v4  ;;  %370 = vmatpush1.bf16.msra.mxu0 %v10758_v4  ;;  %v9277_v18 = vld [vmem:[%s13319_s0 + $0x20] sm:$0xff]   ;;  %v9298_v21 = vld [vmem:[%s13318_s8 + $0xd4] ss:$8 sps:$4 sm:$0xff]   ;;  %v9296_v22 = vld [vmem:[%s13318_s8 + $0xd0] ss:$8 sps:$4 sm:$0xff]  }
 0x115   :  { %509 = vmatprep.subr.bf16.mxu1 %v10765_v5  ;;  %371 = vmatprep.subr.bf16.mxu0 %v10765_v5  ;;  %v9281_v19 = vld [vmem:[%s13319_s0] sm:$0xff]   ;;  %v9278_v23 = vld [vmem:[%s13319_s0 + $0x28] sm:$0xff]   ;;  %v9304_v27 = vld [vmem:[%s13318_s8 + $0xf4] ss:$8 sps:$4 sm:$0xff]  }
 0x116   :  { %v9282_v24 = vld [vmem:[%s13319_s0 + $0x8] sm:$0xff]   ;;  %v9279_v28 = vld [vmem:[%s13319_s0 + $0x30] sm:$0xff]   ;;  %v9280_v33 = vld [vmem:[%s13319_s0 + $0x38] sm:$0xff]  }
 0x117   :  { %v9299_v25 = vld [vmem:[%s13318_s8 + $0xe0] ss:$8 sps:$4 sm:$0xff]   ;;  %v9301_v26 = vld [vmem:[%s13318_s8 + $0xe4] ss:$8 sps:$4 sm:$0xff]   ;;  %v9283_v29 = vld [vmem:[%s13319_s0 + $0x10] sm:$0xff]  }
 0x118   :  { %510 = vmatpush1.bf16.msra.mxu1 %v10772_v6  ;;  %372 = vmatpush1.bf16.msra.mxu0 %v10772_v6  ;;  %v9302_v30 = vld [vmem:[%s13318_s8 + $0xf0] ss:$8 sps:$4 sm:$0xff]   ;;  %v9307_v31 = vld [vmem:[%s13318_s8 + $0x104] ss:$8 sps:$4 sm:$0xff]   ;;  %v9305_v32 = vld [vmem:[%s13318_s8 + $0x100] ss:$8 sps:$4 sm:$0xff]  }
 0x119   :  { %511 = vmatprep.subr.bf16.mxu1 %v10779_v7  ;;  %373 = vmatprep.subr.bf16.mxu0 %v10779_v7  ;;  %v9284_v34 = vld [vmem:[%s13319_s0 + $0x18] sm:$0xff]   ;;  %v9313_v37 = vld [vmem:[%s13318_s8 + $0x124] ss:$8 sps:$4 sm:$0xff]   ;;  %v9311_v38 = vld [vmem:[%s13318_s8 + $0x120] ss:$8 sps:$4 sm:$0xff]  }
 0x11a   :  { %v9310_v35 = vld [vmem:[%s13318_s8 + $0x114] ss:$8 sps:$4 sm:$0xff]   ;;  %v9308_v36 = vld [vmem:[%s13318_s8 + $0x110] ss:$8 sps:$4 sm:$0xff]   ;;  %v9285_v39 = vld [vmem:[%s13319_s0 + $0x40] sm:$0xff]  }
 0x11b   :  { %v9316_v40 = vld [vmem:[%s13318_s8 + $0x134] ss:$8 sps:$4 sm:$0xff]   ;;  %v9314_v41 = vld [vmem:[%s13318_s8 + $0x130] ss:$8 sps:$4 sm:$0xff]   ;;  %v9319_v42 = vld [vmem:[%s13318_s8 + $0x144] ss:$8 sps:$4 sm:$0xff]  }
 0x11c   :  { %512 = vmatpush1.bf16.msra.mxu1 %v10786_v8  ;;  %374 = vmatpush1.bf16.msra.mxu0 %v10786_v8  ;;  %v9317_v43 = vld [vmem:[%s13318_s8 + $0x140] ss:$8 sps:$4 sm:$0xff]   ;;  %v9322_v45 = vld [vmem:[%s13318_s8 + $0x154] ss:$8 sps:$4 sm:$0xff]   ;;  %v9320_v46 = vld [vmem:[%s13318_s8 + $0x150] ss:$8 sps:$4 sm:$0xff]  }
 0x11d   :  { %513 = vmatprep.subr.bf16.mxu1 %v10793_v9  ;;  %375 = vmatprep.subr.bf16.mxu0 %v10793_v9  ;;  %v9286_v44 = vld [vmem:[%s13319_s0 + $0x48] sm:$0xff]   ;;  %v9287_v49 = vld [vmem:[%s13319_s0 + $0x50] sm:$0xff]   ;;  %v9288_v50 = vld [vmem:[%s13319_s0 + $0x58] sm:$0xff]  }
 0x11e   :  { %v9325_v47 = vld [vmem:[%s13318_s8 + $0x164] ss:$8 sps:$4 sm:$0xff]   ;;  %v9323_v48 = vld [vmem:[%s13318_s8 + $0x160] ss:$8 sps:$4 sm:$0xff]   ;;  %v9291_v53 = vld [vmem:[%s13319_s0 + $0x70] sm:$0xff]  }
 0x11f   :  { %v9289_v51 = vld [vmem:[%s13319_s0 + $0x60] sm:$0xff]   ;;  %v9290_v52 = vld [vmem:[%s13319_s0 + $0x68] sm:$0xff]   ;;  %v9292_v54 = vld [vmem:[%s13319_s0 + $0x78] sm:$0xff]  }
 0x120   :  { %514 = vmatpush1.bf16.msra.mxu1 %v10800_v10  ;;  %376 = vmatpush1.bf16.msra.mxu0 %v10800_v10  ;;  %v9328_v55 = vld [vmem:[%s13318_s8 + $0x174] ss:$8 sps:$4 sm:$0xff]   ;;  %v9326_v56 = vld [vmem:[%s13318_s8 + $0x170] ss:$8 sps:$4 sm:$0xff]   ;;  %v9331_v57 = vld [vmem:[%s13318_s8 + $0x4] ss:$8 sps:$4 sm:$0xff]  }
 0x121   :  { %515 = vmatprep.subr.bf16.mxu1 %v10807_v11  ;;  %377 = vmatprep.subr.bf16.mxu0 %v10807_v11 }
 0x124   :  { %516 = vmatpush1.bf16.msra.mxu1 %v10814_v12  ;;  %378 = vmatpush1.bf16.msra.mxu0 %v10814_v12 }
 0x125   :  { %517 = vmatprep.subr.bf16.mxu1 %v10821_v13  ;;  %379 = vmatprep.subr.bf16.mxu0 %v10821_v13 }
 0x128   :  { %518 = vmatpush1.bf16.msra.mxu1 %v10828_v14  ;;  %380 = vmatpush1.bf16.msra.mxu0 %v10828_v14 }
 0x129   :  { %519 = vmatprep.subr.bf16.mxu1 %v10835_v15  ;;  %381 = vmatprep.subr.bf16.mxu0 %v10835_v15 }
 0x12c   :  { %520 = vmatpush1.bf16.msra.mxu1 %v10842_v16  ;;  %382 = vmatpush1.bf16.msra.mxu0 %v10842_v16 }
 0x12d   :  { %1055 = vmatprep.subr.bf16.mxu1 %v10740_v1  ;;  %744 = vmatprep.subr.bf16.mxu0 %v9295_v17 }
 0x12f   :  { %538 = vmatmul.mubr.bf16.vlgmr.msra.gmra.mrb[0].mxu1 %v9277_v18  ;;  %400 = vmatmul.mubr.bf16.vlgmr.msra.gmra.mrb[0].mxu0 %v9281_v19 }
 0x130   :  { %547 = vmatprep.mubr.bf16.mxu1 %v10419_v0  ;;  %1056 = vmatpush1.bf16.msra.mxu1 %v10745_v2 }
 0x131   :  { %1057 = vmatprep.subr.bf16.mxu1 %v10751_v3  ;;  %409 = vmatprep.mubr.bf16.mxu0 %v10419_v0 }
 0x132   :  { %745 = vmatpush1.bf16.msra.mxu0 %v9293_v20 }
 0x133   :  { %746 = vmatprep.subr.bf16.mxu0 %v9298_v21  ;;  %v9335_v21 = vld [vmem:[%s13318_s8 + $0x20] ss:$8 sps:$4 sm:$0xff]  }
 0x134   :  { %1058 = vmatpush1.bf16.msra.mxu1 %v10758_v4 }
 0x135   :  { %1059 = vmatprep.subr.bf16.mxu1 %v10765_v5 }
 0x136   :  { %747 = vmatpush1.bf16.msra.mxu0 %v9296_v22  ;;  %v9340_v22 = vld [vmem:[%s13318_s8 + $0x34] ss:$8 sps:$4 sm:$0xff]  }
 0x137   :  { %548 = vmatmul.mubr.bf16.gmra.mrb[4].mxu1 %v9278_v23  ;;  %410 = vmatmul.mubr.bf16.gmra.mrb[4].mxu0 %v9282_v24 }
 0x138   :  { %557 = vmatprep.mubr.bf16.mxu1 %v10419_v0  ;;  %1060 = vmatpush1.bf16.msra.mxu1 %v10772_v6 }
 0x139   :  { %1061 = vmatprep.subr.bf16.mxu1 %v10779_v7  ;;  %419 = vmatprep.mubr.bf16.mxu0 %v10419_v0 }
 0x13a   :  { %748 = vmatprep.subr.bf16.mxu0 %v9301_v26  ;;  %v9343_v26 = vld [vmem:[%s13318_s8 + $0x44] ss:$8 sps:$4 sm:$0xff]  }
 0x13b   :  { %749 = vmatpush1.bf16.msra.mxu0 %v9299_v25  ;;  %v9338_v25 = vld [vmem:[%s13318_s8 + $0x30] ss:$8 sps:$4 sm:$0xff]  }
 0x13c   :  { %1062 = vmatpush1.bf16.msra.mxu1 %v10786_v8  ;;  %750 = vmatprep.subr.bf16.mxu0 %v9304_v27 }
 0x13d   :  { %1063 = vmatprep.subr.bf16.mxu1 %v10793_v9 }
 0x13f   :  { %558 = vmatmul.mubr.bf16.gmra.mrb[8].mxu1 %v9279_v28  ;;  %420 = vmatmul.mubr.bf16.gmra.mrb[8].mxu0 %v9283_v29 }
 0x140   :  { %567 = vmatprep.mubr.bf16.mxu1 %v10419_v0  ;;  %1064 = vmatpush1.bf16.msra.mxu1 %v10800_v10 }
 0x141   :  { %1065 = vmatprep.subr.bf16.mxu1 %v10807_v11  ;;  %429 = vmatprep.mubr.bf16.mxu0 %v10419_v0 }
 0x142   :  { %751 = vmatpush1.bf16.msra.mxu0 %v9302_v30 }
 0x143   :  { %752 = vmatprep.subr.bf16.mxu0 %v9307_v31  ;;  %v9341_v31 = vld [vmem:[%s13318_s8 + $0x40] ss:$8 sps:$4 sm:$0xff]  }
 0x144   :  { %1066 = vmatpush1.bf16.msra.mxu1 %v10814_v12 }
 0x145   :  { %1067 = vmatprep.subr.bf16.mxu1 %v10821_v13 }
 0x146   :  { %753 = vmatpush1.bf16.msra.mxu0 %v9305_v32 }
 0x147   :  { %568 = vmatmul.mubr.bf16.gmra.mrb[12].mxu1 %v9280_v33  ;;  %430 = vmatmul.mubr.bf16.gmra.mrb[12].mxu0 %v9284_v34  ;;  %v9346_v34 = vld [vmem:[%s13318_s8 + $0x54] ss:$8 sps:$4 sm:$0xff]  }
 0x148   :  { %1068 = vmatpush1.bf16.msra.mxu1 %v10828_v14  ;;  %1087 = vmatprep.mubr.bf16.mxu1 %v10419_v0 }
 0x149   :  { %1069 = vmatprep.subr.bf16.mxu1 %v10835_v15  ;;  %754 = vmatprep.subr.bf16.mxu0 %v9310_v35 }
 0x14a   :  { %755 = vmatpush1.bf16.msra.mxu0 %v9308_v36 }
 0x14b   :  { %756 = vmatprep.subr.bf16.mxu0 %v9313_v37 }
 0x14c   :  { %1070 = vmatpush1.bf16.msra.mxu1 %v10842_v16 }
 0x14d   :  { %1415 = vmatprep.subr.bf16.mxu1 %v10740_v1 }
 0x14e   :  { %757 = vmatpush1.bf16.msra.mxu0 %v9311_v38 }
 0x14f   :  { %1088 = vmatmul.mubr.bf16.vlgmr.msra.gmra.mrb[16].mxu1 %v9285_v39  ;;  %758 = vmatprep.subr.bf16.mxu0 %v9316_v40 }
 0x150   :  { %1416 = vmatpush1.bf16.msra.mxu1 %v10745_v2  ;;  %1097 = vmatprep.mubr.bf16.mxu1 %v10419_v0 }
 0x151   :  { %1417 = vmatprep.subr.bf16.mxu1 %v10751_v3 }
 0x152   :  { %759 = vmatpush1.bf16.msra.mxu0 %v9314_v41  ;;  %v9344_v41 = vld [vmem:[%s13318_s8 + $0x50] ss:$8 sps:$4 sm:$0xff]  }
 0x153   :  { %760 = vmatprep.subr.bf16.mxu0 %v9319_v42  ;;  %v9349_v42 = vld [vmem:[%s13318_s8 + $0x64] ss:$8 sps:$4 sm:$0xff]  }
 0x154   :  { %1418 = vmatpush1.bf16.msra.mxu1 %v10758_v4 }
 0x155   :  { %1419 = vmatprep.subr.bf16.mxu1 %v10765_v5 }
 0x156   :  { %761 = vmatpush1.bf16.msra.mxu0 %v9317_v43 }
 0x157   :  { %1098 = vmatmul.mubr.bf16.gmra.mrb[20].mxu1 %v9286_v44  ;;  %762 = vmatprep.subr.bf16.mxu0 %v9322_v45 }
 0x158   :  { %1420 = vmatpush1.bf16.msra.mxu1 %v10772_v6  ;;  %1107 = vmatprep.mubr.bf16.mxu1 %v10419_v0  ;;  %v9329_v6 = vld [vmem:[%s13318_s8] ss:$8 sps:$4 sm:$0xff]  }
 0x159   :  { %1421 = vmatprep.subr.bf16.mxu1 %v10779_v7  ;;  %v9334_v7 = vld [vmem:[%s13318_s8 + $0x14] ss:$8 sps:$4 sm:$0xff]  }
 0x15a   :  { %763 = vmatpush1.bf16.msra.mxu0 %v9320_v46 }
 0x15b   :  { %764 = vmatprep.subr.bf16.mxu0 %v9325_v47  ;;  %v9347_v47 = vld [vmem:[%s13318_s8 + $0x60] ss:$8 sps:$4 sm:$0xff]  }
 0x15c   :  { %1422 = vmatpush1.bf16.msra.mxu1 %v10786_v8 }
 0x15d   :  { %1423 = vmatprep.subr.bf16.mxu1 %v10793_v9  ;;  %v9332_v9 = vld [vmem:[%s13318_s8 + $0x10] ss:$8 sps:$4 sm:$0xff]  }
 0x15e   :  { %765 = vmatpush1.bf16.msra.mxu0 %v9323_v48 }
 0x15f   :  { %1108 = vmatmul.mubr.bf16.gmra.mrb[24].mxu1 %v9287_v49  ;;  %766 = vmatprep.subr.bf16.mxu0 %v9328_v55 }
 0x160   :  { %1424 = vmatpush1.bf16.msra.mxu1 %v10800_v10  ;;  %1117 = vmatprep.mubr.bf16.mxu1 %v10419_v0  ;;  %v9337_v10 = vld [vmem:[%s13318_s8 + $0x24] ss:$8 sps:$4 sm:$0xff]  }
 0x161   :  { %1425 = vmatprep.subr.bf16.mxu1 %v10807_v11 }
 0x162   :  { %767 = vmatpush1.bf16.msra.mxu0 %v9326_v56  ;;  %v9352_v56 = vld [vmem:[%s13318_s8 + $0x74] ss:$8 sps:$4 sm:$0xff]  }
 0x163   :  { %949 = vmatprep.subr.bf16.mxu0 %v9331_v57  ;;  %v9350_v57 = vld [vmem:[%s13318_s8 + $0x70] ss:$8 sps:$4 sm:$0xff]  }
 0x164   :  { %1426 = vmatpush1.bf16.msra.mxu1 %v10814_v12 }
 0x165   :  { %1427 = vmatprep.subr.bf16.mxu1 %v10821_v13 }
 0x167   :  { %1118 = vmatmul.mubr.bf16.gmra.mrb[28].mxu1 %v9288_v50 }
 0x168   :  { %1428 = vmatpush1.bf16.msra.mxu1 %v10828_v14  ;;  %1447 = vmatprep.mubr.bf16.mxu1 %v10419_v0 }
 0x169   :  { %1429 = vmatprep.subr.bf16.mxu1 %v10835_v15 }
 0x16c   :  { %1430 = vmatpush1.bf16.msra.mxu1 %v10842_v16 }
 0x16f   :  { %1448 = vmatmul.mubr.bf16.vlgmr.msra.gmra.mrb[32].mxu1 %v9289_v51 }
 0x170   :  { %1457 = vmatprep.mubr.bf16.mxu1 %v10419_v0 }
 0x177   :  { %1458 = vmatmul.mubr.bf16.gmra.mrb[36].mxu1 %v9290_v52 }
 0x178   :  { %1467 = vmatprep.mubr.bf16.mxu1 %v10419_v0 }
 0x17f   :  { %1468 = vmatmul.mubr.bf16.gmra.mrb[40].mxu1 %v9291_v53 }
 0x180   :  { %1477 = vmatprep.mubr.bf16.mxu1 %v10419_v0 }
 0x187   :  { %1478 = vmatmul.mubr.bf16.gmra.mrb[44].mxu1 %v9292_v54 }
 0x188   :  { %1834 = vmatprep.mubr.bf16.mxu1 %v10419_v0 }
 0x202   :  { %v539_v58 = vpop.f32.mrb[0].mxu1  ;;  %v11019_v59 = vpop.f32.mrb[0].mxu0 }
 0x203   :  { %v541_v60 = vpop.f32.mrb[1].mxu1  ;;  %v11021_v61 = vpop.f32.mrb[1].mxu0 }
 0x204   :  { %v543_v62 = vpop.f32.mrb[2].mxu1  ;;  %v11023_v63 = vpop.f32.mrb[2].mxu0 }
 0x205   :  { %v578_v1 = vpack.c.bf16 %v543_v62, %v539_v58  ;;  %v545_v2 = vpop.f32.mrb[3].mxu1  ;;  %v440_v3 = vpack.c.bf16 %v11023_v63, %v11019_v59  ;;  %v11027_v4 = vpop.f32.mrb[3].mxu0 }
 0x206   :  { %v579_v5 = vpack.c.bf16 %v545_v2, %v541_v60  ;;  %v441_v8 = vpack.c.bf16 %v11027_v4, %v11021_v61  ;;  %v9355_v60 = vld [vmem:[%s13318_s8 + $0x84] ss:$8 sps:$4 sm:$0xff]   ;;  %v9353_v61 = vld [vmem:[%s13318_s8 + $0x80] ss:$8 sps:$4 sm:$0xff]  }
 0x208   :  { %7621 = vmatprep.mubr.msk.bf16.mxu0 %vm731_vm0, %v579_v5 }
 0x209   :  { %777 = vmatmul.mubr.bf16.vlgmr.msra.gmra.mrb[16].mxu0 %v578_v1 }
 0x20a   :  { %950 = vmatpush1.bf16.msra.mxu0 %v9329_v6  ;;  %v549_v11 = vpop.f32.mrb[4].mxu1  ;;  %v11044_v12 = vpop.f32.mrb[4].mxu0  ;;  %v9358_v6 = vld [vmem:[%s13318_s8 + $0x94] ss:$8 sps:$4 sm:$0xff]  }
 0x20b   :  { %951 = vmatprep.subr.bf16.mxu0 %v9334_v7  ;;  %v551_v13 = vpop.f32.mrb[5].mxu1  ;;  %v11046_v14 = vpop.f32.mrb[5].mxu0  ;;  %v9356_v7 = vld [vmem:[%s13318_s8 + $0x90] ss:$8 sps:$4 sm:$0xff]  }
 0x20c   :  { %v553_v15 = vpop.f32.mrb[6].mxu1  ;;  %v11048_v16 = vpop.f32.mrb[6].mxu0 }
 0x20d   :  { %v580_v17 = vpack.c.bf16 %v553_v15, %v549_v11  ;;  %v555_v18 = vpop.f32.mrb[7].mxu1  ;;  %v442_v19 = vpack.c.bf16 %v11048_v16, %v11044_v12  ;;  %v11052_v20 = vpop.f32.mrb[7].mxu0 }
 0x20e   :  { %952 = vmatpush1.bf16.msra.mxu0 %v9332_v9  ;;  %v581_v23 = vpack.c.bf16 %v555_v18, %v551_v13  ;;  %v443_v24 = vpack.c.bf16 %v11052_v20, %v11046_v14  ;;  %v9361_v9 = vld [vmem:[%s13318_s8 + $0xa4] ss:$8 sps:$4 sm:$0xff]   ;;  %v9371_v14 = vld [vmem:[%s13318_s8 + $0x1a0] ss:$8 sps:$4 sm:$0xff]  }
 0x20f   :  { %953 = vmatprep.subr.bf16.mxu0 %v9337_v10 }
 0x210   :  { %7622 = vmatprep.mubr.msk.bf16.mxu0 %vm731_vm0, %v581_v23 }
 0x211   :  { %787 = vmatmul.mubr.bf16.gmra.mrb[20].mxu0 %v580_v17  ;;  %v9359_v17 = vld [vmem:[%s13318_s8 + $0xa0] ss:$8 sps:$4 sm:$0xff]  }
 0x212   :  { %954 = vmatpush1.bf16.msra.mxu0 %v9335_v21  ;;  %v559_v27 = vpop.f32.mrb[8].mxu1  ;;  %v11069_v28 = vpop.f32.mrb[8].mxu0  ;;  %v9364_v21 = vld [vmem:[%s13318_s8 + $0xb4] ss:$8 sps:$4 sm:$0xff]  }
 0x213   :  { %955 = vmatprep.subr.bf16.mxu0 %v9340_v22  ;;  %v561_v29 = vpop.f32.mrb[9].mxu1  ;;  %v11071_v30 = vpop.f32.mrb[9].mxu0  ;;  %v9362_v22 = vld [vmem:[%s13318_s8 + $0xb0] ss:$8 sps:$4 sm:$0xff]  }
 0x214   :  { %v563_v32 = vpop.f32.mrb[10].mxu1  ;;  %v11076_v33 = vpop.f32.mrb[10].mxu0 }
 0x215   :  { %v582_v35 = vpack.c.bf16 %v563_v32, %v559_v27  ;;  %v565_v36 = vpop.f32.mrb[11].mxu1  ;;  %v444_v37 = vpack.c.bf16 %v11076_v33, %v11069_v28  ;;  %v11083_v38 = vpop.f32.mrb[11].mxu0  ;;  %v9365_v32 = vld [vmem:[%s13318_s8 + $0x180] ss:$8 sps:$4 sm:$0xff]  }
 0x216   :  { %956 = vmatpush1.bf16.msra.mxu0 %v9338_v25  ;;  %v583_v39 = vpack.c.bf16 %v565_v36, %v561_v29  ;;  %v445_v40 = vpack.c.bf16 %v11083_v38, %v11071_v30  ;;  %v9367_v25 = vld [vmem:[%s13318_s8 + $0x184] ss:$8 sps:$4 sm:$0xff]   ;;  %v9368_v36 = vld [vmem:[%s13318_s8 + $0x190] ss:$8 sps:$4 sm:$0xff]   ;;  %v9377_v30 = vld [vmem:[%s13318_s8 + $0x1c0] ss:$8 sps:$4 sm:$0xff]  }
 0x217   :  { %957 = vmatprep.subr.bf16.mxu0 %v9343_v26 }
 0x218   :  { %7623 = vmatprep.mubr.msk.bf16.mxu0 %vm731_vm0, %v583_v39 }
 0x219   :  { %797 = vmatmul.mubr.bf16.gmra.mrb[24].mxu0 %v582_v35  ;;  %v9370_v35 = vld [vmem:[%s13318_s8 + $0x194] ss:$8 sps:$4 sm:$0xff]  }
 0x21a   :  { %958 = vmatpush1.bf16.msra.mxu0 %v9341_v31  ;;  %v569_v43 = vpop.f32.mrb[12].mxu1  ;;  %v11094_v44 = vpop.f32.mrb[12].mxu0 }
 0x21b   :  { %959 = vmatprep.subr.bf16.mxu0 %v9346_v34  ;;  %v571_v45 = vpop.f32.mrb[13].mxu1  ;;  %v11096_v46 = vpop.f32.mrb[13].mxu0 }
 0x21c   :  { %v573_v48 = vpop.f32.mrb[14].mxu1  ;;  %v11101_v49 = vpop.f32.mrb[14].mxu0 }
 0x21d   :  { %v584_v50 = vpack.c.bf16 %v573_v48, %v569_v43  ;;  %v575_v51 = vpop.f32.mrb[15].mxu1  ;;  %v446_v52 = vpack.c.bf16 %v11101_v49, %v11094_v44  ;;  %v11105_v53 = vpop.f32.mrb[15].mxu0  ;;  %v9374_v43 = vld [vmem:[%s13318_s8 + $0x1b0] ss:$8 sps:$4 sm:$0xff]  }
 0x21e   :  { %960 = vmatpush1.bf16.msra.mxu0 %v9344_v41  ;;  %v585_v54 = vpack.c.bf16 %v575_v51, %v571_v45  ;;  %v447_v55 = vpack.c.bf16 %v11105_v53, %v11096_v46  ;;  %v9373_v41 = vld [vmem:[%s13318_s8 + $0x1a4] ss:$8 sps:$4 sm:$0xff]   ;;  %v9383_v46 = vld [vmem:[%s13318_s8 + $0x1e0] ss:$8 sps:$4 sm:$0xff]  }
 0x21f   :  { %961 = vmatprep.subr.bf16.mxu0 %v9349_v42 }
 0x220   :  { %7624 = vmatprep.mubr.msk.bf16.mxu0 %vm731_vm0, %v585_v54  ;;  %v9385_v54 = vld [vmem:[%s13318_s8 + $0x1e4] ss:$8 sps:$4 sm:$0xff]  }
 0x221   :  { %807 = vmatmul.mubr.bf16.gmra.mrb[28].mxu0 %v584_v50  ;;  %v9380_v50 = vld [vmem:[%s13318_s8 + $0x1d0] ss:$8 sps:$4 sm:$0xff]  }
 0x222   :  { %962 = vmatpush1.bf16.msra.mxu0 %v9347_v47  ;;  %7649 = vmatprep.mubr.msk.bf16.mxu0 %vm731_vm0, %v441_v8  ;;  %v11120_v58 = vpop.f32.mrb[16].mxu1  ;;  %v9379_v47 = vld [vmem:[%s13318_s8 + $0x1c4] ss:$8 sps:$4 sm:$0xff]  }
 0x223   :  { %963 = vmatprep.subr.bf16.mxu0 %v9352_v56  ;;  %v11125_v62 = vpop.f32.mrb[17].mxu1 }
 0x224   :  { %v11127_v1 = vpop.f32.mrb[18].mxu1 }
 0x225   :  { %v1128_v2 = vpack.c.bf16 %v11127_v1, %v11120_v58  ;;  %v11131_v5 = vpop.f32.mrb[19].mxu1  ;;  %v9407_v58 = vld [vmem:[%s13318_s8 + $0x260] ss:$8 sps:$4 sm:$0xff]   ;;  %v9412_v1 = vld [vmem:[%s13318_s8 + $0x274] ss:$8 sps:$4 sm:$0xff]  }
 0x226   :  { %964 = vmatpush1.bf16.msra.mxu0 %v9350_v57  ;;  %v1129_v4 = vpack.c.bf16 %v11131_v5, %v11125_v62  ;;  %v9386_v57 = vld [vmem:[%s13318_s8 + $0x1f0] ss:$8 sps:$4 sm:$0xff]   ;;  %v9389_v62 = vld [vmem:[%s13318_s8 + $0x200] ss:$8 sps:$4 sm:$0xff]  }
 0x227   :  { %965 = vmatprep.subr.bf16.mxu0 %v9355_v60 }
 0x22a   :  { %966 = vmatpush1.bf16.msra.mxu0 %v9353_v61  ;;  %v11144_v8 = vpop.f32.mrb[20].mxu1  ;;  %v9391_v61 = vld [vmem:[%s13318_s8 + $0x204] ss:$8 sps:$4 sm:$0xff]  }
 0x22b   :  { %967 = vmatprep.subr.bf16.mxu0 %v9358_v6  ;;  %v11149_v10 = vpop.f32.mrb[21].mxu1 }
 0x22c   :  { %v11151_v11 = vpop.f32.mrb[22].mxu1 }
 0x22d   :  { %v1130_v13 = vpack.c.bf16 %v11151_v11, %v11144_v8  ;;  %v11155_v15 = vpop.f32.mrb[23].mxu1  ;;  %v9413_v8 = vld [vmem:[%s13318_s8 + $0x280] ss:$8 sps:$4 sm:$0xff]   ;;  %v9418_v11 = vld [vmem:[%s13318_s8 + $0x294] ss:$8 sps:$4 sm:$0xff]  }
 0x22e   :  { %968 = vmatpush1.bf16.msra.mxu0 %v9356_v7  ;;  %v1131_v18 = vpack.c.bf16 %v11155_v15, %v11149_v10  ;;  %v9392_v7 = vld [vmem:[%s13318_s8 + $0x210] ss:$8 sps:$4 sm:$0xff]   ;;  %v9415_v10 = vld [vmem:[%s13318_s8 + $0x284] ss:$8 sps:$4 sm:$0xff]  }
 0x22f   :  { %969 = vmatprep.subr.bf16.mxu0 %v9361_v9  ;;  %v9421_v15 = vld [vmem:[%s13318_s8 + $0x2a4] ss:$8 sps:$4 sm:$0xff]  }
 0x232   :  { %970 = vmatpush1.bf16.msra.mxu0 %v9359_v17  ;;  %v11168_v23 = vpop.f32.mrb[24].mxu1  ;;  %v9397_v17 = vld [vmem:[%s13318_s8 + $0x224] ss:$8 sps:$4 sm:$0xff]  }
 0x233   :  { %971 = vmatprep.subr.bf16.mxu0 %v9364_v21  ;;  %v11173_v26 = vpop.f32.mrb[25].mxu1 }
 0x234   :  { %v11175_v27 = vpop.f32.mrb[26].mxu1 }
 0x235   :  { %v1132_v29 = vpack.c.bf16 %v11175_v27, %v11168_v23  ;;  %v11179_v31 = vpop.f32.mrb[27].mxu1  ;;  %v9424_v23 = vld [vmem:[%s13318_s8 + $0x2b4] ss:$8 sps:$4 sm:$0xff]   ;;  %v9427_v27 = vld [vmem:[%s13318_s8 + $0x2c4] ss:$8 sps:$4 sm:$0xff]  }
 0x236   :  { %972 = vmatpush1.bf16.msra.mxu0 %v9362_v22  ;;  %v1133_v34 = vpack.c.bf16 %v11179_v31, %v11173_v26  ;;  %v9422_v26 = vld [vmem:[%s13318_s8 + $0x2b0] ss:$8 sps:$4 sm:$0xff]   ;;  %v9430_v31 = vld [vmem:[%s13318_s8 + $0x2d4] ss:$8 sps:$4 sm:$0xff]  }
 0x237   :  { %1293 = vmatprep.subr.bf16.mxu0 %v9367_v25 }
 0x239   :  { %982 = vmatmul.mubr.bf16.vlgmr.msra.gmra.mrb[16].mxu0 %v440_v3 }
 0x23a   :  { %1294 = vmatpush1.bf16.msra.mxu0 %v9365_v32  ;;  %7650 = vmatprep.mubr.msk.bf16.mxu0 %vm731_vm0, %v443_v24  ;;  %v11199_v39 = vpop.f32.mrb[28].mxu1  ;;  %v9376_v24 = vld [vmem:[%s13318_s8 + $0x1b4] ss:$8 sps:$4 sm:$0xff]  }
 0x23b   :  { %1295 = vmatprep.subr.bf16.mxu0 %v9370_v35  ;;  %v11204_v42 = vpop.f32.mrb[29].mxu1  ;;  %v9395_v35 = vld [vmem:[%s13318_s8 + $0x220] ss:$8 sps:$4 sm:$0xff]  }
 0x23c   :  { %v11206_v59 = vpop.f32.mrb[30].mxu1 }
 0x23d   :  { %v1134_v63 = vpack.c.bf16 %v11206_v59, %v11199_v39  ;;  %v11210_v3 = vpop.f32.mrb[31].mxu1  ;;  %v9433_v39 = vld [vmem:[%s13318_s8 + $0x2e4] ss:$8 sps:$4 sm:$0xff]   ;;  %v9436_v59 = vld [vmem:[%s13318_s8 + $0x2f4] ss:$8 sps:$4 sm:$0xff]  }
 0x23e   :  { %1296 = vmatpush1.bf16.msra.mxu0 %v9368_v36  ;;  %v1135_v20 = vpack.c.bf16 %v11210_v3, %v11204_v42  ;;  %v9431_v42 = vld [vmem:[%s13318_s8 + $0x2e0] ss:$8 sps:$4 sm:$0xff]  }
 0x23f   :  { %1297 = vmatprep.subr.bf16.mxu0 %v9373_v41  ;;  %v9400_v41 = vld [vmem:[%s13318_s8 + $0x234] ss:$8 sps:$4 sm:$0xff]  }
 0x241   :  { %992 = vmatmul.mubr.bf16.gmra.mrb[20].mxu0 %v442_v19 }
 0x242   :  { %1298 = vmatpush1.bf16.msra.mxu0 %v9371_v14  ;;  %7651 = vmatprep.mubr.msk.bf16.mxu0 %vm731_vm0, %v445_v40  ;;  %v11230_v45 = vpop.f32.mrb[32].mxu1  ;;  %v9382_v40 = vld [vmem:[%s13318_s8 + $0x1d4] ss:$8 sps:$4 sm:$0xff]   ;;  %v9398_v14 = vld [vmem:[%s13318_s8 + $0x230] ss:$8 sps:$4 sm:$0xff]  }
 0x243   :  { %1299 = vmatprep.subr.bf16.mxu0 %v9376_v24  ;;  %v11235_v48 = vpop.f32.mrb[33].mxu1  ;;  %v9403_v24 = vld [vmem:[%s13318_s8 + $0x244] ss:$8 sps:$4 sm:$0xff]  }
 0x244   :  { %v11237_v12 = vpop.f32.mrb[34].mxu1 }
 0x245   :  { %v1488_v16 = vpack.c.bf16 %v11237_v12, %v11230_v45  ;;  %v11241_v19 = vpop.f32.mrb[35].mxu1 }
 0x246   :  { %1300 = vmatpush1.bf16.msra.mxu0 %v9374_v43  ;;  %v1489_v38 = vpack.c.bf16 %v11241_v19, %v11235_v48  ;;  %v9401_v43 = vld [vmem:[%s13318_s8 + $0x240] ss:$8 sps:$4 sm:$0xff]  }
 0x247   :  { %1301 = vmatprep.subr.bf16.mxu0 %v9379_v47  ;;  %v9406_v47 = vld [vmem:[%s13318_s8 + $0x254] ss:$8 sps:$4 sm:$0xff]  }
 0x249   :  { %1002 = vmatmul.mubr.bf16.gmra.mrb[24].mxu0 %v444_v37 }
 0x24a   :  { %1302 = vmatpush1.bf16.msra.mxu0 %v9377_v30  ;;  %7652 = vmatprep.mubr.msk.bf16.mxu0 %vm731_vm0, %v447_v55  ;;  %v11261_v51 = vpop.f32.mrb[36].mxu1  ;;  %v9388_v55 = vld [vmem:[%s13318_s8 + $0x1f4] ss:$8 sps:$4 sm:$0xff]   ;;  %v9404_v30 = vld [vmem:[%s13318_s8 + $0x250] ss:$8 sps:$4 sm:$0xff]  }
 0x24b   :  { %1303 = vmatprep.subr.bf16.mxu0 %v9382_v40  ;;  %v11266_v56 = vpop.f32.mrb[37].mxu1  ;;  %v9409_v40 = vld [vmem:[%s13318_s8 + $0x264] ss:$8 sps:$4 sm:$0xff]  }
 0x24c   :  { %v11268_v28 = vpop.f32.mrb[38].mxu1 }
 0x24d   :  { %v1490_v33 = vpack.c.bf16 %v11268_v28, %v11261_v51  ;;  %v11272_v37 = vpop.f32.mrb[39].mxu1 }
 0x24e   :  { %1304 = vmatpush1.bf16.msra.mxu0 %v9380_v50  ;;  %v1491_v53 = vpack.c.bf16 %v11272_v37, %v11266_v56 }
 0x24f   :  { %1305 = vmatprep.subr.bf16.mxu0 %v9385_v54 }
 0x251   :  { %1012 = vmatmul.mubr.bf16.gmra.mrb[28].mxu0 %v446_v52 }
 0x252   :  { %1306 = vmatpush1.bf16.msra.mxu0 %v9383_v46  ;;  %7713 = vmatprep.mubr.msk.bf16.mxu0 %vm731_vm0, %v1129_v4  ;;  %v11292_v60 = vpop.f32.mrb[40].mxu1  ;;  %v9394_v4 = vld [vmem:[%s13318_s8 + $0x214] ss:$8 sps:$4 sm:$0xff]  }
 0x253   :  { %1307 = vmatprep.subr.bf16.mxu0 %v9388_v55  ;;  %v11297_v6 = vpop.f32.mrb[41].mxu1 }
 0x254   :  { %v11299_v44 = vpop.f32.mrb[42].mxu1 }
 0x255   :  { %v1492_v49 = vpack.c.bf16 %v11299_v44, %v11292_v60  ;;  %v11303_v52 = vpop.f32.mrb[43].mxu1 }
 0x256   :  { %1308 = vmatpush1.bf16.msra.mxu0 %v9386_v57  ;;  %v1493_v5 = vpack.c.bf16 %v11303_v52, %v11297_v6 }
 0x257   :  { %1309 = vmatprep.subr.bf16.mxu0 %v9391_v61 }
 0x25a   :  { %1310 = vmatpush1.bf16.msra.mxu0 %v9389_v62  ;;  %v11316_v9 = vpop.f32.mrb[44].mxu1 }
 0x25b   :  { %1311 = vmatprep.subr.bf16.mxu0 %v9394_v4  ;;  %v11321_v21 = vpop.f32.mrb[45].mxu1 }
 0x25c   :  { %v11323_v22 = vpop.f32.mrb[46].mxu1 }
 0x25d   :  { %v1494_v25 = vpack.c.bf16 %v11323_v22, %v11316_v9  ;;  %v11327_v32 = vpop.f32.mrb[47].mxu1 }
 0x25e   :  { %1312 = vmatpush1.bf16.msra.mxu0 %v9392_v7  ;;  %v1495_v36 = vpack.c.bf16 %v11327_v32, %v11321_v21 }
 0x25f   :  { %1313 = vmatprep.subr.bf16.mxu0 %v9397_v17 }
 0x262   :  { %1314 = vmatpush1.bf16.msra.mxu0 %v9395_v35 }
 0x263   :  { %1315 = vmatprep.subr.bf16.mxu0 %v9400_v41 }
 0x266   :  { %1316 = vmatpush1.bf16.msra.mxu0 %v9398_v14 }
 0x267   :  { %1653 = vmatprep.subr.bf16.mxu0 %v9403_v24 }
 0x269   :  { %1326 = vmatmul.mubr.bf16.vlgmr.msra.gmra.mrb[16].mxu0 %v1128_v2  ;;  %v9410_v2 = vld [vmem:[%s13318_s8 + $0x270] ss:$8 sps:$4 sm:$0xff]  }
 0x26a   :  { %1654 = vmatpush1.bf16.msra.mxu0 %v9401_v43  ;;  %7714 = vmatprep.mubr.msk.bf16.mxu0 %vm731_vm0, %v1131_v18  ;;  %v9419_v18 = vld [vmem:[%s13318_s8 + $0x2a0] ss:$8 sps:$4 sm:$0xff]  }
 0x26b   :  { %1655 = vmatprep.subr.bf16.mxu0 %v9406_v47 }
 0x26e   :  { %1656 = vmatpush1.bf16.msra.mxu0 %v9404_v30 }
 0x26f   :  { %1657 = vmatprep.subr.bf16.mxu0 %v9409_v40 }
 0x271   :  { %1336 = vmatmul.mubr.bf16.gmra.mrb[20].mxu0 %v1130_v13  ;;  %v9416_v13 = vld [vmem:[%s13318_s8 + $0x290] ss:$8 sps:$4 sm:$0xff]  }
 0x272   :  { %1658 = vmatpush1.bf16.msra.mxu0 %v9407_v58  ;;  %7715 = vmatprep.mubr.msk.bf16.mxu0 %vm731_vm0, %v1133_v34  ;;  %v9428_v34 = vld [vmem:[%s13318_s8 + $0x2d0] ss:$8 sps:$4 sm:$0xff]  }
 0x273   :  { %1659 = vmatprep.subr.bf16.mxu0 %v9412_v1 }
 0x276   :  { %1660 = vmatpush1.bf16.msra.mxu0 %v9410_v2 }
 0x277   :  { %1661 = vmatprep.subr.bf16.mxu0 %v9415_v10 }
 0x279   :  { %1346 = vmatmul.mubr.bf16.gmra.mrb[24].mxu0 %v1132_v29  ;;  %v9425_v29 = vld [vmem:[%s13318_s8 + $0x2c0] ss:$8 sps:$4 sm:$0xff]  }
 0x27a   :  { %1662 = vmatpush1.bf16.msra.mxu0 %v9413_v8  ;;  %7716 = vmatprep.mubr.msk.bf16.mxu0 %vm731_vm0, %v1135_v20 }
 0x27b   :  { %1663 = vmatprep.subr.bf16.mxu0 %v9418_v11 }
 0x27e   :  { %1664 = vmatpush1.bf16.msra.mxu0 %v9416_v13 }
 0x27f   :  { %1665 = vmatprep.subr.bf16.mxu0 %v9421_v15 }
 0x281   :  { %1356 = vmatmul.mubr.bf16.gmra.mrb[28].mxu0 %v1134_v63  ;;  %v9434_v63 = vld [vmem:[%s13318_s8 + $0x2f0] ss:$8 sps:$4 sm:$0xff]  }
 0x282   :  { %1666 = vmatpush1.bf16.msra.mxu0 %v9419_v18  ;;  %7777 = vmatprep.mubr.msk.bf16.mxu0 %vm731_vm0, %v1489_v38 }
 0x283   :  { %1667 = vmatprep.subr.bf16.mxu0 %v9424_v23 }
 0x286   :  { %1668 = vmatpush1.bf16.msra.mxu0 %v9422_v26 }
 0x287   :  { %1669 = vmatprep.subr.bf16.mxu0 %v9427_v27 }
 0x28a   :  { %1670 = vmatpush1.bf16.msra.mxu0 %v9425_v29  ;;  %v9437_v29 = vld [vmem:[#allocation2] sm:$0xff]  }
 0x28b   :  { %1671 = vmatprep.subr.bf16.mxu0 %v9430_v31  ;;  %v9438_v31 = vld [vmem:[#allocation2 + $0x20] sm:$0xff]  }
 0x28e   :  { %1672 = vmatpush1.bf16.msra.mxu0 %v9428_v34  ;;  %v9439_v34 = vld [vmem:[#allocation2 + $0x8] sm:$0xff]  }
 0x28f   :  { %1673 = vmatprep.subr.bf16.mxu0 %v9433_v39  ;;  %v9466_v39 = vld [vmem:[#allocation2 + $0x28] sm:$0xff]  }
 0x292   :  { %1674 = vmatpush1.bf16.msra.mxu0 %v9431_v42  ;;  %v9444_v42 = vld [vmem:[%s13320_s20 + $0x104] ss:$8 sps:$4 sm:$0xff]  }
 0x293   :  { %1675 = vmatprep.subr.bf16.mxu0 %v9436_v59  ;;  %v9440_v59 = vld [vmem:[#allocation2 + $0x10] sm:$0xff]  }
 0x296   :  { %1676 = vmatpush1.bf16.msra.mxu0 %v9434_v63  ;;  %v9473_v63 = vld [vmem:[#allocation2 + $0x30] sm:$0xff]  }
 0x299   :  { %1686 = vmatmul.mubr.bf16.vlgmr.msra.gmra.mrb[16].mxu0 %v1488_v16 }
 0x29a   :  { %7778 = vmatprep.mubr.msk.bf16.mxu0 %vm731_vm0, %v1491_v53 }
 0x2a1   :  { %1696 = vmatmul.mubr.bf16.gmra.mrb[20].mxu0 %v1490_v33 }
 0x2a2   :  { %7779 = vmatprep.mubr.msk.bf16.mxu0 %vm731_vm0, %v1493_v5 }
 0x2a9   :  { %1706 = vmatmul.mubr.bf16.gmra.mrb[24].mxu0 %v1492_v49 }
 0x2aa   :  { %7780 = vmatprep.mubr.msk.bf16.mxu0 %vm731_vm0, %v1495_v36 }
 0x2b1   :  { %1716 = vmatmul.mubr.bf16.gmra.mrb[28].mxu0 %v1494_v25 }
 0x2b2   :  { %2481 = vmatprep.mubr.bf16.mxu0 %v10419_v0 }
 0x36c   :  { %v1687_v3 = vpop.f32.mrb[16].mxu0 }
 0x36d   :  { %v1742_v20 = vmul.f32 0.2, %v1687_v3  ;;  %v1689_v45 = vpop.f32.mrb[17].mxu0 }
 0x36e   :  { %v1743_v48 = vmul.f32 0.2, %v1689_v45  ;;  %v1691_v12 = vpop.f32.mrb[18].mxu0 }
 0x36f   :  { %v1744_v16 = vmul.f32 0.2, %v1691_v12  ;;  %v1693_v19 = vpop.f32.mrb[19].mxu0  ;;  %v1758_v50 = vmax.f32 %v1687_v3, %v1742_v20  ;;  %v9442_v3 = vld [vmem:[%s13320_s20 + $0x100] ss:$8 sps:$4 sm:$0xff]  }
 0x370   :  { %v1745_v38 = vmul.f32 0.2, %v1693_v19  ;;  %v1759_v54 = vmax.f32 %v1689_v45, %v1743_v48  ;;  %v9447_v20 = vld [vmem:[%s13320_s20 + $0x114] ss:$8 sps:$4 sm:$0xff]   ;;  %v9445_v45 = vld [vmem:[%s13320_s20 + $0x110] ss:$8 sps:$4 sm:$0xff]  }
 0x371   :  { %v1760_v51 = vmax.f32 %v1691_v12, %v1744_v16  ;;  %v9450_v48 = vld [vmem:[%s13320_s20 + $0x124] ss:$8 sps:$4 sm:$0xff]   ;;  %v9441_v12 = vld [vmem:[#allocation2 + $0x18] sm:$0xff]   ;;  %v9448_v16 = vld [vmem:[%s13320_s20 + $0x120] ss:$8 sps:$4 sm:$0xff]  }
 0x372   :  { %v1761_v56 = vmax.f32 %v1693_v19, %v1745_v38  ;;  %v9453_v19 = vld [vmem:[%s13320_s20 + $0x134] ss:$8 sps:$4 sm:$0xff]   ;;  %v9451_v38 = vld [vmem:[%s13320_s20 + $0x130] ss:$8 sps:$4 sm:$0xff]  }
 0x373   :  { %v11465_v28 = vpack.c.bf16 %v1760_v51, %v1758_v50  ;;  %v9456_v50 = vld [vmem:[%s13320_s20 + $0x144] ss:$8 sps:$4 sm:$0xff]   ;;  %v9454_v51 = vld [vmem:[%s13320_s20 + $0x140] ss:$8 sps:$4 sm:$0xff]  }
 0x374   :  { %v1775_v33 = vpack.c.bf16 %v1761_v56, %v1759_v54  ;;  %v1697_v37 = vpop.f32.mrb[20].mxu0  ;;  %v9459_v54 = vld [vmem:[%s13320_s20 + $0x154] ss:$8 sps:$4 sm:$0xff]   ;;  %v9457_v56 = vld [vmem:[%s13320_s20 + $0x150] ss:$8 sps:$4 sm:$0xff]  }
 0x375   :  { %v1746_v46 = vmul.f32 0.2, %v1697_v37  ;;  %v1699_v53 = vpop.f32.mrb[21].mxu0 }
 0x376   :  { %v1747_v55 = vmul.f32 0.2, %v1699_v53  ;;  %v1701_v57 = vpop.f32.mrb[22].mxu0  ;;  %1802 = vmatprep.subr.bf16.mxu1 %v1775_v33  ;;  %2449 = vmatprep.subr.bf16.mxu0 %v1775_v33 }
 0x377   :  { %v1748_v60 = vmul.f32 0.2, %v1701_v57  ;;  %v1703_v61 = vpop.f32.mrb[23].mxu0  ;;  %1803 = vmatpush1.bf16.msra.mxu1 %v11465_v28  ;;  %2450 = vmatpush1.bf16.msra.mxu0 %v11465_v28  ;;  %v1762_v44 = vmax.f32 %v1697_v37, %v1746_v46  ;;  %v9465_v37 = vld [vmem:[%s13320_s20 + $0x174] ss:$8 sps:$4 sm:$0xff]  }
 0x378   :  { %v1749_v6 = vmul.f32 0.2, %v1703_v61  ;;  %v1763_v52 = vmax.f32 %v1699_v53, %v1747_v55  ;;  %v9463_v46 = vld [vmem:[%s13320_s20 + $0x170] ss:$8 sps:$4 sm:$0xff]   ;;  %v9469_v53 = vld [vmem:[%s13320_s20 + $0x184] ss:$8 sps:$4 sm:$0xff]  }
 0x379   :  { %v1764_v49 = vmax.f32 %v1701_v57, %v1748_v60  ;;  %v9467_v55 = vld [vmem:[%s13320_s20 + $0x180] ss:$8 sps:$4 sm:$0xff]   ;;  %v9472_v57 = vld [vmem:[%s13320_s20 + $0x194] ss:$8 sps:$4 sm:$0xff]   ;;  %v9470_v60 = vld [vmem:[%s13320_s20 + $0x190] ss:$8 sps:$4 sm:$0xff]  }
 0x37a   :  { %v1765_v62 = vmax.f32 %v1703_v61, %v1749_v6  ;;  %v9476_v61 = vld [vmem:[%s13320_s20 + $0x1a4] ss:$8 sps:$4 sm:$0xff]   ;;  %v9474_v6 = vld [vmem:[%s13320_s20 + $0x1a0] ss:$8 sps:$4 sm:$0xff]  }
 0x37b   :  { %v1776_v5 = vpack.c.bf16 %v1764_v49, %v1762_v44  ;;  %v9479_v44 = vld [vmem:[%s13320_s20 + $0x1b4] ss:$8 sps:$4 sm:$0xff]   ;;  %v9477_v49 = vld [vmem:[%s13320_s20 + $0x1b0] ss:$8 sps:$4 sm:$0xff]  }
 0x37c   :  { %v1777_v4 = vpack.c.bf16 %v1765_v62, %v1763_v52  ;;  %v1707_v7 = vpop.f32.mrb[24].mxu0  ;;  %v9480_v52 = vld [vmem:[#allocation2 + $0x38] sm:$0xff]   ;;  %v9481_v62 = vld [vmem:[%s13320_s20 + $0x1c0] ss:$8 sps:$4 sm:$0xff]  }
 0x37d   :  { %v1750_v9 = vmul.f32 0.2, %v1707_v7  ;;  %v1709_v17 = vpop.f32.mrb[25].mxu0 }
 0x37e   :  { %v1751_v21 = vmul.f32 0.2, %v1709_v17  ;;  %v1711_v22 = vpop.f32.mrb[26].mxu0  ;;  %1804 = vmatprep.subr.bf16.mxu1 %v1777_v4  ;;  %2451 = vmatprep.subr.bf16.mxu0 %v1777_v4 }
 0x37f   :  { %v1752_v25 = vmul.f32 0.2, %v1711_v22  ;;  %v1713_v32 = vpop.f32.mrb[27].mxu0  ;;  %1805 = vmatpush1.bf16.msra.mxu1 %v1776_v5  ;;  %2452 = vmatpush1.bf16.msra.mxu0 %v1776_v5  ;;  %v1766_v36 = vmax.f32 %v1707_v7, %v1750_v9  ;;  %v9484_v7 = vld [vmem:[%s13320_s20 + $0x1d0] ss:$8 sps:$4 sm:$0xff]  }
 0x380   :  { %v1753_v35 = vmul.f32 0.2, %v1713_v32  ;;  %v1767_v14 = vmax.f32 %v1709_v17, %v1751_v21  ;;  %v9487_v9 = vld [vmem:[%s13320_s20 + $0x1e0] ss:$8 sps:$4 sm:$0xff]   ;;  %v9489_v17 = vld [vmem:[%s13320_s20 + $0x1e4] ss:$8 sps:$4 sm:$0xff]  }
 0x381   :  { %v1768_v41 = vmax.f32 %v1711_v22, %v1752_v25  ;;  %v9492_v21 = vld [vmem:[%s13320_s20 + $0x1f4] ss:$8 sps:$4 sm:$0xff]   ;;  %v9490_v22 = vld [vmem:[%s13320_s20 + $0x1f0] ss:$8 sps:$4 sm:$0xff]   ;;  %v9495_v25 = vld [vmem:[%s13320_s20 + $0x4] ss:$8 sps:$4 sm:$0xff]  }
 0x382   :  { %v1769_v24 = vmax.f32 %v1713_v32, %v1753_v35 }
 0x383   :  { %v1778_v43 = vpack.c.bf16 %v1768_v41, %v1766_v36 }
 0x384   :  { %v1779_v47 = vpack.c.bf16 %v1769_v24, %v1767_v14  ;;  %v1717_v30 = vpop.f32.mrb[28].mxu0 }
 0x385   :  { %v1754_v40 = vmul.f32 0.2, %v1717_v30  ;;  %v1719_v58 = vpop.f32.mrb[29].mxu0 }
 0x386   :  { %v1755_v1 = vmul.f32 0.2, %v1719_v58  ;;  %v1721_v2 = vpop.f32.mrb[30].mxu0  ;;  %1806 = vmatprep.subr.bf16.mxu1 %v1779_v47  ;;  %2453 = vmatprep.subr.bf16.mxu0 %v1779_v47 }
 0x387   :  { %v1756_v10 = vmul.f32 0.2, %v1721_v2  ;;  %v1723_v8 = vpop.f32.mrb[31].mxu0  ;;  %1807 = vmatpush1.bf16.msra.mxu1 %v1778_v43  ;;  %2454 = vmatpush1.bf16.msra.mxu0 %v1778_v43  ;;  %v1770_v13 = vmax.f32 %v1717_v30, %v1754_v40 }
 0x388   :  { %v1757_v11 = vmul.f32 0.2, %v1723_v8  ;;  %v1771_v18 = vmax.f32 %v1719_v58, %v1755_v1 }
 0x389   :  { %v1772_v15 = vmax.f32 %v1721_v2, %v1756_v10 }
 0x38a   :  { %v1773_v23 = vmax.f32 %v1723_v8, %v1757_v11 }
 0x38b   :  { %v1780_v26 = vpack.c.bf16 %v1772_v15, %v1770_v13 }
 0x38c   :  { %v1781_v27 = vpack.c.bf16 %v1773_v23, %v1771_v18 }
 0x38e   :  { %1808 = vmatprep.subr.bf16.mxu1 %v1781_v27  ;;  %2455 = vmatprep.subr.bf16.mxu0 %v1781_v27 }
 0x38f   :  { %1809 = vmatpush1.bf16.msra.mxu1 %v1780_v26  ;;  %2456 = vmatpush1.bf16.msra.mxu0 %v1780_v26 }
 0x390   :  { %1912 = vmatprep.subr.bf16.mxu1 %v1775_v33  ;;  %2781 = vmatprep.subr.bf16.mxu0 %v1775_v33  ;;  %v9460_v33 = vld [vmem:[%s13320_s20 + $0x160] ss:$8 sps:$4 sm:$0xff]  }
 0x392   :  { %7783 = vmatmul.mubr.msk.bf16.vlgmr.msra.gmra.mrb[48].mxu1 %vm731_vm0, %v9437_v29  ;;  %7887 = vmatmul.mubr.msk.bf16.vlgmr.msra.gmra.mrb[32].mxu0 %vm731_vm0, %v9438_v31 }
 0x393   :  { %1913 = vmatpush1.bf16.msra.mxu1 %v11465_v28  ;;  %2782 = vmatpush1.bf16.msra.mxu0 %v11465_v28  ;;  %v9462_v28 = vld [vmem:[%s13320_s20 + $0x164] ss:$8 sps:$4 sm:$0xff]  }
 0x394   :  { %1914 = vmatprep.subr.bf16.mxu1 %v1777_v4  ;;  %2783 = vmatprep.subr.bf16.mxu0 %v1777_v4  ;;  %v9486_v4 = vld [vmem:[%s13320_s20 + $0x1d4] ss:$8 sps:$4 sm:$0xff]  }
 0x395   :  { %1844 = vmatprep.mubr.bf16.mxu1 %v10419_v0  ;;  %2491 = vmatprep.mubr.bf16.mxu0 %v10419_v0 }
 0x397   :  { %1915 = vmatpush1.bf16.msra.mxu1 %v1776_v5  ;;  %2784 = vmatpush1.bf16.msra.mxu0 %v1776_v5  ;;  %v9483_v5 = vld [vmem:[%s13320_s20 + $0x1c4] ss:$8 sps:$4 sm:$0xff]  }
 0x398   :  { %1916 = vmatprep.subr.bf16.mxu1 %v1779_v47  ;;  %2785 = vmatprep.subr.bf16.mxu0 %v1779_v47 }
 0x39a   :  { %7784 = vmatmul.mubr.msk.bf16.gmra.mrb[52].mxu1 %vm731_vm0, %v9439_v34  ;;  %7888 = vmatmul.mubr.msk.bf16.gmra.mrb[36].mxu0 %vm731_vm0, %v9466_v39  ;;  %v9493_v34 = vld [vmem:[%s13320_s20] ss:$8 sps:$4 sm:$0xff]   ;;  %v9498_v39 = vld [vmem:[%s13320_s20 + $0x14] ss:$8 sps:$4 sm:$0xff]  }
 0x39b   :  { %1917 = vmatpush1.bf16.msra.mxu1 %v1778_v43  ;;  %2786 = vmatpush1.bf16.msra.mxu0 %v1778_v43 }
 0x39c   :  { %1918 = vmatprep.subr.bf16.mxu1 %v1781_v27  ;;  %2787 = vmatprep.subr.bf16.mxu0 %v1781_v27 }
 0x39d   :  { %1944 = vmatprep.mubr.bf16.mxu1 %v10419_v0  ;;  %2813 = vmatprep.mubr.bf16.mxu0 %v10419_v0 }
 0x39f   :  { %1919 = vmatpush1.bf16.msra.mxu1 %v1780_v26  ;;  %2788 = vmatpush1.bf16.msra.mxu0 %v1780_v26 }
 0x3a0   :  { %2162 = vmatprep.subr.bf16.mxu1 %v9444_v42 }
 0x3a2   :  { %7787 = vmatmul.mubr.msk.bf16.vlgmr.msra.gmra.mrb[56].mxu1 %vm731_vm0, %v9440_v59  ;;  %7955 = vmatmul.mubr.msk.bf16.vlgmr.msra.gmra.mrb[40].mxu0 %vm731_vm0, %v9473_v63  ;;  %v9496_v59 = vld [vmem:[%s13320_s20 + $0x10] ss:$8 sps:$4 sm:$0xff]  }
 0x3a3   :  { %1954 = vmatprep.mubr.bf16.mxu1 %v10419_v0  ;;  %2163 = vmatpush1.bf16.msra.mxu1 %v9442_v3  ;;  %v9501_v3 = vld [vmem:[%s13320_s20 + $0x24] ss:$8 sps:$4 sm:$0xff]  }
 0x3a4   :  { %2164 = vmatprep.subr.bf16.mxu1 %v9447_v20  ;;  %2823 = vmatprep.mubr.bf16.mxu0 %v10419_v0 }
 0x3a7   :  { %2165 = vmatpush1.bf16.msra.mxu1 %v9445_v45 }
 0x3a8   :  { %2166 = vmatprep.subr.bf16.mxu1 %v9450_v48 }
 0x3aa   :  { %7788 = vmatmul.mubr.msk.bf16.gmra.mrb[60].mxu1 %vm731_vm0, %v9441_v12  ;;  %7956 = vmatmul.mubr.msk.bf16.gmra.mrb[44].mxu0 %vm731_vm0, %v9480_v52  ;;  %v9531_v52 = vld [vmem:[%s13320_s20 + $0xc4] ss:$8 sps:$4 sm:$0xff]  }
 0x3ab   :  { %2167 = vmatpush1.bf16.msra.mxu1 %v9448_v16  ;;  %v9499_v16 = vld [vmem:[%s13320_s20 + $0x20] ss:$8 sps:$4 sm:$0xff]  }
 0x3ac   :  { %2168 = vmatprep.subr.bf16.mxu1 %v9453_v19  ;;  %v9504_v19 = vld [vmem:[%s13320_s20 + $0x34] ss:$8 sps:$4 sm:$0xff]  }
 0x3af   :  { %2169 = vmatpush1.bf16.msra.mxu1 %v9451_v38  ;;  %v9502_v38 = vld [vmem:[%s13320_s20 + $0x30] ss:$8 sps:$4 sm:$0xff]  }
 0x3b0   :  { %2170 = vmatprep.subr.bf16.mxu1 %v9456_v50  ;;  %v9507_v50 = vld [vmem:[%s13320_s20 + $0x44] ss:$8 sps:$4 sm:$0xff]  }
 0x3b3   :  { %2171 = vmatpush1.bf16.msra.mxu1 %v9454_v51  ;;  %v9505_v51 = vld [vmem:[%s13320_s20 + $0x40] ss:$8 sps:$4 sm:$0xff]  }
 0x3b4   :  { %2172 = vmatprep.subr.bf16.mxu1 %v9459_v54  ;;  %v9510_v54 = vld [vmem:[%s13320_s20 + $0x54] ss:$8 sps:$4 sm:$0xff]  }
 0x3b7   :  { %2173 = vmatpush1.bf16.msra.mxu1 %v9457_v56  ;;  %v9508_v56 = vld [vmem:[%s13320_s20 + $0x50] ss:$8 sps:$4 sm:$0xff]  }
 0x3b8   :  { %2174 = vmatprep.subr.bf16.mxu1 %v9462_v28  ;;  %v9513_v28 = vld [vmem:[%s13320_s20 + $0x64] ss:$8 sps:$4 sm:$0xff]  }
 0x3bb   :  { %2175 = vmatpush1.bf16.msra.mxu1 %v9460_v33  ;;  %v9511_v33 = vld [vmem:[%s13320_s20 + $0x60] ss:$8 sps:$4 sm:$0xff]  }
 0x3bc   :  { %2176 = vmatprep.subr.bf16.mxu1 %v9465_v37  ;;  %v9516_v37 = vld [vmem:[%s13320_s20 + $0x74] ss:$8 sps:$4 sm:$0xff]  }
 0x3bf   :  { %2177 = vmatpush1.bf16.msra.mxu1 %v9463_v46  ;;  %v9514_v46 = vld [vmem:[%s13320_s20 + $0x70] ss:$8 sps:$4 sm:$0xff]  }
 0x3c0   :  { %2178 = vmatprep.subr.bf16.mxu1 %v9469_v53  ;;  %v9519_v53 = vld [vmem:[%s13320_s20 + $0x84] ss:$8 sps:$4 sm:$0xff]  }
 0x3c3   :  { %2179 = vmatpush1.bf16.msra.mxu1 %v9467_v55  ;;  %v9517_v55 = vld [vmem:[%s13320_s20 + $0x80] ss:$8 sps:$4 sm:$0xff]  }
 0x3c4   :  { %2180 = vmatprep.subr.bf16.mxu1 %v9472_v57  ;;  %v9522_v57 = vld [vmem:[%s13320_s20 + $0x94] ss:$8 sps:$4 sm:$0xff]  }
 0x3c7   :  { %2181 = vmatpush1.bf16.msra.mxu1 %v9470_v60  ;;  %v9520_v60 = vld [vmem:[%s13320_s20 + $0x90] ss:$8 sps:$4 sm:$0xff]  }
 0x3c8   :  { %2182 = vmatprep.subr.bf16.mxu1 %v9476_v61  ;;  %v9525_v61 = vld [vmem:[%s13320_s20 + $0xa4] ss:$8 sps:$4 sm:$0xff]  }
 0x3cb   :  { %2183 = vmatpush1.bf16.msra.mxu1 %v9474_v6  ;;  %v9523_v6 = vld [vmem:[%s13320_s20 + $0xa0] ss:$8 sps:$4 sm:$0xff]  }
 0x3cc   :  { %2184 = vmatprep.subr.bf16.mxu1 %v9479_v44  ;;  %v9528_v44 = vld [vmem:[%s13320_s20 + $0xb4] ss:$8 sps:$4 sm:$0xff]  }
 0x3cf   :  { %2185 = vmatpush1.bf16.msra.mxu1 %v9477_v49  ;;  %v9526_v49 = vld [vmem:[%s13320_s20 + $0xb0] ss:$8 sps:$4 sm:$0xff]  }
 0x3d0   :  { %2186 = vmatprep.subr.bf16.mxu1 %v9483_v5 }
 0x3d3   :  { %2187 = vmatpush1.bf16.msra.mxu1 %v9481_v62  ;;  %v9529_v62 = vld [vmem:[%s13320_s20 + $0xc0] ss:$8 sps:$4 sm:$0xff]  }
 0x3d4   :  { %2188 = vmatprep.subr.bf16.mxu1 %v9486_v4  ;;  %v9534_v4 = vld [vmem:[%s13320_s20 + $0xd4] ss:$8 sps:$4 sm:$0xff]  }
 0x3d7   :  { %2189 = vmatpush1.bf16.msra.mxu1 %v9484_v7 }
 0x3d8   :  { %2190 = vmatprep.subr.bf16.mxu1 %v9489_v17 }
 0x3db   :  { %2191 = vmatpush1.bf16.msra.mxu1 %v9487_v9 }
 0x3dc   :  { %2192 = vmatprep.subr.bf16.mxu1 %v9492_v21  ;;  %v9532_v21 = vld [vmem:[%s13320_s20 + $0xd0] ss:$8 sps:$4 sm:$0xff]  }
 0x3df   :  { %2193 = vmatpush1.bf16.msra.mxu1 %v9490_v22 }
 0x3e0   :  { %2375 = vmatprep.subr.bf16.mxu1 %v9495_v25 }
 0x465   :  { %v11584_v32 = vpop.f32.mrb[48].mxu1  ;;  %v11602_v2 = vpop.f32.mrb[32].mxu0 }
 0x466   :  { %v1838_v35 = vpop.f32.mrb[49].mxu1  ;;  %v11604_v10 = vpop.f32.mrb[33].mxu0 }
 0x467   :  { %v11586_v36 = vpop.f32.mrb[50].mxu1  ;;  %v11606_v11 = vpop.f32.mrb[34].mxu0 }
 0x468   :  { %v1855_v41 = vpack.c.bf16 %v11586_v36, %v11584_v32  ;;  %v1842_v14 = vpop.f32.mrb[51].mxu1  ;;  %v2502_v15 = vpack.c.bf16 %v11606_v11, %v11602_v2  ;;  %v11610_v18 = vpop.f32.mrb[35].mxu0  ;;  %v9595_v2 = vld [vmem:[%s13320_s20 + $0x320] ss:$8 sps:$4 sm:$0xff]   ;;  %v9600_v11 = vld [vmem:[%s13320_s20 + $0x334] ss:$8 sps:$4 sm:$0xff]  }
 0x469   :  { %v1856_v24 = vpack.c.bf16 %v1842_v14, %v1838_v35  ;;  %v2503_v26 = vpack.c.bf16 %v11610_v18, %v11604_v10  ;;  %v9537_v35 = vld [vmem:[%s13320_s20 + $0xe4] ss:$8 sps:$4 sm:$0xff]   ;;  %v9535_v14 = vld [vmem:[%s13320_s20 + $0xe0] ss:$8 sps:$4 sm:$0xff]   ;;  %v3094_v10 = vld [vmem:[%s13321_s4 + $0x10] sm:$0xff] }
 0x46a   :  { %v3095_v18 = vld [vmem:[%s13321_s4 + $0x18] sm:$0xff] }
 0x46d   :  { %v11590_v43 = vpop.f32.mrb[52].mxu1  ;;  %v11689_v5 = vpop.f32.mrb[36].mxu0 }
 0x46e   :  { %v11592_v47 = vpop.f32.mrb[53].mxu1  ;;  %v11694_v7 = vpop.f32.mrb[37].mxu0 }
 0x46f   :  { %v11594_v30 = vpop.f32.mrb[54].mxu1  ;;  %v11696_v9 = vpop.f32.mrb[38].mxu0 }
 0x470   :  { %v1857_v40 = vpack.c.bf16 %v11594_v30, %v11590_v43  ;;  %v11598_v58 = vpop.f32.mrb[55].mxu1  ;;  %v11698_v17 = vpop.f32.mrb[39].mxu0  ;;  %v2504_v22 = vpack.c.bf16 %v11696_v9, %v11689_v5  ;;  %v3093_v30 = vld [vmem:[%s13321_s4 + $0x8] sm:$0xff]  ;;  %v9606_v9 = vld [vmem:[%s13320_s20 + $0x354] ss:$8 sps:$4 sm:$0xff]  }
 0x471   :  { %v1858_v1 = vpack.c.bf16 %v11598_v58, %v11592_v47  ;;  %v2505_v25 = vpack.c.bf16 %v11698_v17, %v11694_v7  ;;  %v9547_v58 = vld [vmem:[%s13320_s20 + $0x220] ss:$8 sps:$4 sm:$0xff]   ;;  %v9603_v7 = vld [vmem:[%s13320_s20 + $0x344] ss:$8 sps:$4 sm:$0xff]   ;;  %v9604_v17 = vld [vmem:[%s13320_s20 + $0x350] ss:$8 sps:$4 sm:$0xff]  }
 0x472   :  { %v9601_v5 = vld [vmem:[%s13320_s20 + $0x340] ss:$8 sps:$4 sm:$0xff]  }
 0x475   :  { %v1946_v8 = vpop.f32.mrb[56].mxu1 }
 0x476   :  { %v1948_v13 = vpop.f32.mrb[57].mxu1 }
 0x477   :  { %v1950_v23 = vpop.f32.mrb[58].mxu1 }
 0x478   :  { %v1965_v27 = vpack.c.bf16 %v1950_v23, %v1946_v8  ;;  %v1952_v29 = vpop.f32.mrb[59].mxu1  ;;  %v11716_v8 = vpop.f32.mrb[40].mxu0 }
 0x479   :  { %v1966_v31 = vpack.c.bf16 %v1952_v29, %v1948_v13  ;;  %v11718_v13 = vpop.f32.mrb[41].mxu0 }
 0x47a   :  { %v11720_v23 = vpop.f32.mrb[42].mxu0 }
 0x47b   :  { %2194 = vmatprep.mubr.bf16.mxu1 %v1966_v31  ;;  %v2834_v29 = vpack.c.bf16 %v11720_v23, %v11716_v8  ;;  %v11727_v31 = vpop.f32.mrb[43].mxu0 }
 0x47c   :  { %2195 = vmatmul.mubr.bf16.vlgmr.msra.gmra.mrb[64].mxu1 %v1965_v27  ;;  %v9538_v27 = vld [vmem:[%s13320_s20 + $0xf0] ss:$8 sps:$4 sm:$0xff]  }
 0x47d   :  { %2376 = vmatpush1.bf16.msra.mxu1 %v9493_v34  ;;  %v1956_v42 = vpop.f32.mrb[60].mxu1  ;;  %v9543_v34 = vld [vmem:[%s13320_s20 + $0x204] ss:$8 sps:$4 sm:$0xff]  }
 0x47e   :  { %v1958_v63 = vpop.f32.mrb[61].mxu1  ;;  %2377 = vmatprep.subr.bf16.mxu1 %v9498_v39  ;;  %v2835_v39 = vpack.c.bf16 %v11727_v31, %v11718_v13  ;;  %v9612_v13 = vld [vmem:[%s13320_s20 + $0x374] ss:$8 sps:$4 sm:$0xff]   ;;  %v9610_v31 = vld [vmem:[%s13320_s20 + $0x370] ss:$8 sps:$4 sm:$0xff]  }
 0x47f   :  { %v1960_v20 = vpop.f32.mrb[62].mxu1 }
 0x480   :  { %v1967_v45 = vpack.c.bf16 %v1960_v20, %v1956_v42  ;;  %v1962_v48 = vpop.f32.mrb[63].mxu1  ;;  %v9541_v42 = vld [vmem:[%s13320_s20 + $0x200] ss:$8 sps:$4 sm:$0xff]  }
 0x481   :  { %v1968_v12 = vpack.c.bf16 %v1962_v48, %v1958_v63  ;;  %2378 = vmatpush1.bf16.msra.mxu1 %v9496_v59  ;;  %v9546_v59 = vld [vmem:[%s13320_s20 + $0x214] ss:$8 sps:$4 sm:$0xff]   ;;  %v11743_v63 = vpop.f32.mrb[44].mxu0  ;;  %v9550_v48 = vld [vmem:[%s13320_s20 + $0x230] ss:$8 sps:$4 sm:$0xff]  }
 0x482   :  { %2379 = vmatprep.subr.bf16.mxu1 %v9501_v3  ;;  %v9544_v3 = vld [vmem:[%s13320_s20 + $0x210] ss:$8 sps:$4 sm:$0xff]   ;;  %v11751_v20 = vpop.f32.mrb[45].mxu0 }
 0x483   :  { %2204 = vmatprep.mubr.bf16.mxu1 %v1968_v12  ;;  %v11756_v32 = vpop.f32.mrb[46].mxu0  ;;  %v9555_v12 = vld [vmem:[%s13320_s20 + $0x244] ss:$8 sps:$4 sm:$0xff]  }
 0x484   :  { %2205 = vmatmul.mubr.bf16.gmra.mrb[68].mxu1 %v1967_v45  ;;  %v9549_v45 = vld [vmem:[%s13320_s20 + $0x224] ss:$8 sps:$4 sm:$0xff]   ;;  %v2836_v36 = vpack.c.bf16 %v11756_v32, %v11743_v63 }
 0x485   :  { %2380 = vmatpush1.bf16.msra.mxu1 %v9499_v16  ;;  %2407 = vmatprep.mubr.bf16.mxu1 %v1856_v24  ;;  %v9540_v24 = vld [vmem:[%s13320_s20 + $0xf4] ss:$8 sps:$4 sm:$0xff]   ;;  %v3108_v16 = vld [vmem:[%s13321_s4 + $0x80] sm:$0xff] }
 0x486   :  { %2381 = vmatprep.subr.bf16.mxu1 %v9504_v19  ;;  %v3109_v19 = vld [vmem:[%s13321_s4 + $0x88] sm:$0xff] }
 0x487   :  { %v11791_v43 = vpack.c.bf16 %v3109_v19, %v3108_v16  ;;  %v9567_v16 = vld [vmem:[%s13320_s20 + $0x284] ss:$8 sps:$4 sm:$0xff]  }
 0x488   :  { %v3120_v19 = vld [vmem:[%s13321_s4 + $0xe0] sm:$0xff] }
 0x489   :  { %2382 = vmatpush1.bf16.msra.mxu1 %v9502_v38  ;;  %v3092_v38 = vld [vmem:[%s13321_s4] sm:$0xff]  ;;  %8888 = vmatprep.subr.bf16.mxu0 %v11791_v43 }
 0x48a   :  { %2383 = vmatprep.subr.bf16.mxu1 %v9507_v50  ;;  %v3111_v50 = vld [vmem:[%s13321_s4 + $0x98] sm:$0xff] }
 0x48d   :  { %2384 = vmatpush1.bf16.msra.mxu1 %v9505_v51  ;;  %v11802_v51 = vpack.c.bf16 %v3093_v30, %v3092_v38  ;;  %v3121_v38 = vld [vmem:[%s13321_s4 + $0xe8] sm:$0xff] }
 0x48e   :  { %2385 = vmatprep.subr.bf16.mxu1 %v9510_v54 }
 0x48f   :  { %8890 = vmatpush3.bf16.msra.mxu0 %v11802_v51 }
 0x491   :  { %2386 = vmatpush1.bf16.msra.mxu1 %v9508_v56  ;;  %v3113_v56 = vld [vmem:[%s13321_s4 + $0xa8] sm:$0xff] }
 0x492   :  { %2387 = vmatprep.subr.bf16.mxu1 %v9513_v28  ;;  %v11820_v28 = vpack.c.bf16 %v3095_v18, %v3094_v10  ;;  %v3104_v10 = vld [vmem:[%s13321_s4 + $0x60] sm:$0xff]  ;;  %v3105_v18 = vld [vmem:[%s13321_s4 + $0x68] sm:$0xff] }
 0x495   :  { %2388 = vmatpush1.bf16.msra.mxu1 %v9511_v33  ;;  %v9553_v33 = vld [vmem:[%s13320_s20 + $0x240] ss:$8 sps:$4 sm:$0xff]  }
 0x496   :  { %2389 = vmatprep.subr.bf16.mxu1 %v9516_v37 }
 0x499   :  { %2390 = vmatpush1.bf16.msra.mxu1 %v9514_v46  ;;  %v3096_v46 = vld [vmem:[%s13321_s4 + $0x20] sm:$0xff] }
 0x49a   :  { %2391 = vmatprep.subr.bf16.mxu1 %v9519_v53  ;;  %v3097_v53 = vld [vmem:[%s13321_s4 + $0x28] sm:$0xff] }
 0x49d   :  { %2392 = vmatpush1.bf16.msra.mxu1 %v9517_v55  ;;  %v9558_v55 = vld [vmem:[%s13320_s20 + $0x254] ss:$8 sps:$4 sm:$0xff]  }
 0x49e   :  { %2393 = vmatprep.subr.bf16.mxu1 %v9522_v57  ;;  %v3114_v57 = vld [vmem:[%s13321_s4 + $0xb0] sm:$0xff] }
 0x4a1   :  { %2394 = vmatpush1.bf16.msra.mxu1 %v9520_v60  ;;  %v3115_v60 = vld [vmem:[%s13321_s4 + $0xb8] sm:$0xff] }
 0x4a2   :  { %2395 = vmatprep.subr.bf16.mxu1 %v9525_v61  ;;  %v11844_v61 = vpack.c.bf16 %v3097_v53, %v3096_v46  ;;  %v11940_v46 = vpack.c.bf16 %v3105_v18, %v3104_v10  ;;  %v9568_v53 = vld [vmem:[%s13320_s20 + $0x290] ss:$8 sps:$4 sm:$0xff]   ;;  %v9621_v18 = vld [vmem:[%s13320_s20 + $0x3a4] ss:$8 sps:$4 sm:$0xff]  }
 0x4a3   :  { %v9616_v10 = vld [vmem:[%s13320_s20 + $0x390] ss:$8 sps:$4 sm:$0xff]  }
 0x4a5   :  { %2396 = vmatpush1.bf16.msra.mxu1 %v9523_v6  ;;  %v9556_v6 = vld [vmem:[%s13320_s20 + $0x250] ss:$8 sps:$4 sm:$0xff]  }
 0x4a6   :  { %2397 = vmatprep.subr.bf16.mxu1 %v9528_v44  ;;  %v11850_v44 = vpack.c.bf16 %v3115_v60, %v3114_v57  ;;  %v3106_v57 = vld [vmem:[%s13321_s4 + $0x70] sm:$0xff]  ;;  %v3107_v60 = vld [vmem:[%s13321_s4 + $0x78] sm:$0xff] }
 0x4a9   :  { %2398 = vmatpush1.bf16.msra.mxu1 %v9526_v49  ;;  %v3098_v49 = vld [vmem:[%s13321_s4 + $0x30] sm:$0xff] }
 0x4aa   :  { %2399 = vmatprep.subr.bf16.mxu1 %v9531_v52  ;;  %v3099_v52 = vld [vmem:[%s13321_s4 + $0x38] sm:$0xff] }
 0x4ad   :  { %2400 = vmatpush1.bf16.msra.mxu1 %v9529_v62  ;;  %v9561_v62 = vld [vmem:[%s13320_s20 + $0x264] ss:$8 sps:$4 sm:$0xff]  }
 0x4ae   :  { %2401 = vmatprep.subr.bf16.mxu1 %v9534_v4  ;;  %v3116_v4 = vld [vmem:[%s13321_s4 + $0xc0] sm:$0xff] }
 0x4b1   :  { %2402 = vmatpush1.bf16.msra.mxu1 %v9532_v21  ;;  %v3117_v21 = vld [vmem:[%s13321_s4 + $0xc8] sm:$0xff] }
 0x4b2   :  { %2403 = vmatprep.subr.bf16.mxu1 %v9537_v35  ;;  %v11868_v35 = vpack.c.bf16 %v3099_v52, %v3098_v49  ;;  %v11958_v49 = vpack.c.bf16 %v3107_v60, %v3106_v57  ;;  %v9571_v52 = vld [vmem:[%s13320_s20 + $0x2a0] ss:$8 sps:$4 sm:$0xff]   ;;  %v9630_v60 = vld [vmem:[%s13320_s20 + $0x3d4] ss:$8 sps:$4 sm:$0xff]  }
 0x4b3   :  { %v9625_v57 = vld [vmem:[%s13320_s20 + $0x3c0] ss:$8 sps:$4 sm:$0xff]  }
 0x4b5   :  { %2404 = vmatpush1.bf16.msra.mxu1 %v9535_v14  ;;  %v9559_v14 = vld [vmem:[%s13320_s20 + $0x260] ss:$8 sps:$4 sm:$0xff]  }
 0x4b6   :  { %2405 = vmatprep.subr.bf16.mxu1 %v9540_v24  ;;  %v11874_v24 = vpack.c.bf16 %v3117_v21, %v3116_v4  ;;  %v9574_v4 = vld [vmem:[%s13320_s20 + $0x2b0] ss:$8 sps:$4 sm:$0xff]   ;;  %v9579_v21 = vld [vmem:[%s13320_s20 + $0x2c4] ss:$8 sps:$4 sm:$0xff]  }
 0x4b9   :  { %2406 = vmatpush1.bf16.msra.mxu1 %v9538_v27  ;;  %v3100_v27 = vld [vmem:[%s13321_s4 + $0x40] sm:$0xff] }
 0x4ba   :  { %2699 = vmatprep.subr.bf16.mxu1 %v9543_v34  ;;  %v3101_v34 = vld [vmem:[%s13321_s4 + $0x48] sm:$0xff] }
 0x4bc   :  { %2408 = vmatmul.mubr.bf16.vlgmr.msra.gmra.mrb[64].mxu1 %v1855_v41  ;;  %v11760_v41 = vpop.f32.mrb[47].mxu0 }
 0x4bd   :  { %2417 = vmatprep.mubr.bf16.mxu1 %v1858_v1  ;;  %2700 = vmatpush1.bf16.msra.mxu1 %v9541_v42  ;;  %v2837_v47 = vpack.c.bf16 %v11760_v41, %v11751_v20  ;;  %v9552_v1 = vld [vmem:[%s13320_s20 + $0x234] ss:$8 sps:$4 sm:$0xff]  }
 0x4be   :  { %2701 = vmatprep.subr.bf16.mxu1 %v9546_v59  ;;  %v9564_v42 = vld [vmem:[%s13320_s20 + $0x274] ss:$8 sps:$4 sm:$0xff]  }
 0x4bf   :  { %v3118_v59 = vld [vmem:[%s13321_s4 + $0xd0] sm:$0xff] }
 0x4c1   :  { %2702 = vmatpush1.bf16.msra.mxu1 %v9544_v3  ;;  %v3119_v3 = vld [vmem:[%s13321_s4 + $0xd8] sm:$0xff] }
 0x4c2   :  { %2703 = vmatprep.subr.bf16.mxu1 %v9549_v45  ;;  %v11892_v45 = vpack.c.bf16 %v3101_v34, %v3100_v27  ;;  %v9582_v27 = vld [vmem:[%s13320_s20 + $0x2d4] ss:$8 sps:$4 sm:$0xff]   ;;  %v9585_v34 = vld [vmem:[%s13320_s20 + $0x2e4] ss:$8 sps:$4 sm:$0xff]  }
 0x4c4   :  { %2418 = vmatmul.mubr.bf16.gmra.mrb[68].mxu1 %v1857_v40  ;;  %v3110_v40 = vld [vmem:[%s13321_s4 + $0x90] sm:$0xff] }
 0x4c5   :  { %2704 = vmatpush1.bf16.msra.mxu1 %v9547_v58  ;;  %2731 = vmatprep.mubr.bf16.mxu1 %v2503_v26  ;;  %v11804_v54 = vpack.c.bf16 %v3111_v50, %v3110_v40  ;;  %v3112_v26 = vld [vmem:[%s13321_s4 + $0xa0] sm:$0xff]  ;;  %v9562_v58 = vld [vmem:[%s13320_s20 + $0x270] ss:$8 sps:$4 sm:$0xff]   ;;  %v11922_v50 = vpack.c.bf16 %v3121_v38, %v3120_v19 }
 0x4c6   :  { %2705 = vmatprep.subr.bf16.mxu1 %v9552_v1  ;;  %v11826_v37 = vpack.c.bf16 %v3113_v56, %v3112_v26  ;;  %v11898_v1 = vpack.c.bf16 %v3119_v3, %v3118_v59  ;;  %v9565_v40 = vld [vmem:[%s13320_s20 + $0x280] ss:$8 sps:$4 sm:$0xff]   ;;  %v9570_v26 = vld [vmem:[%s13320_s20 + $0x294] ss:$8 sps:$4 sm:$0xff]   ;;  %v9586_v3 = vld [vmem:[%s13320_s20 + $0x2f0] ss:$8 sps:$4 sm:$0xff]  }
 0x4c7   :  { %8892 = vmatprep.subr.bf16.mxu0 %v11804_v54  ;;  %v3122_v56 = vld [vmem:[%s13321_s4 + $0xf0] sm:$0xff]  ;;  %v9597_v19 = vld [vmem:[%s13320_s20 + $0x324] ss:$8 sps:$4 sm:$0xff]   ;;  %v9613_v38 = vld [vmem:[%s13320_s20 + $0x380] ss:$8 sps:$4 sm:$0xff]  }
 0x4c8   :  { %8894 = vmatpush3.bf16.msra.mxu0 %v11820_v28  ;;  %v9588_v59 = vld [vmem:[%s13320_s20 + $0x2f4] ss:$8 sps:$4 sm:$0xff]  }
 0x4c9   :  { %2706 = vmatpush1.bf16.msra.mxu1 %v9550_v48  ;;  %8896 = vmatprep.subr.bf16.mxu0 %v11826_v37  ;;  %v3102_v48 = vld [vmem:[%s13321_s4 + $0x50] sm:$0xff] }
 0x4ca   :  { %2707 = vmatprep.subr.bf16.mxu1 %v9555_v12  ;;  %v3103_v12 = vld [vmem:[%s13321_s4 + $0x58] sm:$0xff] }
 0x4cb   :  { %v11916_v30 = vpack.c.bf16 %v3103_v12, %v3102_v48  ;;  %v9589_v48 = vld [vmem:[%s13320_s20 + $0x300] ss:$8 sps:$4 sm:$0xff]   ;;  %v9594_v12 = vld [vmem:[%s13320_s20 + $0x314] ss:$8 sps:$4 sm:$0xff]  }
 0x4cc   :  { %8898 = vmatpush3.bf16.msra.mxu0 %v11844_v61 }
 0x4cd   :  { %2708 = vmatpush1.bf16.msra.mxu1 %v9553_v33  ;;  %8900 = vmatprep.subr.bf16.mxu0 %v11850_v44  ;;  %v3123_v33 = vld [vmem:[%s13321_s4 + $0xf8] sm:$0xff] }
 0x4ce   :  { %2709 = vmatprep.subr.bf16.mxu1 %v9558_v55  ;;  %v11946_v55 = vpack.c.bf16 %v3123_v33, %v3122_v56  ;;  %v9624_v56 = vld [vmem:[%s13320_s20 + $0x3b4] ss:$8 sps:$4 sm:$0xff]   ;;  %v9622_v33 = vld [vmem:[%s13320_s20 + $0x3b0] ss:$8 sps:$4 sm:$0xff]  }
 0x4d0   :  { %8902 = vmatpush3.bf16.msra.mxu0 %v11868_v35 }
 0x4d1   :  { %2710 = vmatpush1.bf16.msra.mxu1 %v9556_v6  ;;  %8904 = vmatprep.subr.bf16.mxu0 %v11874_v24  ;;  %v9573_v6 = vld [vmem:[%s13320_s20 + $0x2a4] ss:$8 sps:$4 sm:$0xff]  }
 0x4d2   :  { %2711 = vmatprep.subr.bf16.mxu1 %v9561_v62  ;;  %v9576_v62 = vld [vmem:[%s13320_s20 + $0x2b4] ss:$8 sps:$4 sm:$0xff]  }
 0x4d4   :  { %8906 = vmatpush3.bf16.msra.mxu0 %v11892_v45 }
 0x4d5   :  { %2712 = vmatpush1.bf16.msra.mxu1 %v9559_v14  ;;  %8908 = vmatprep.subr.bf16.mxu0 %v11898_v1  ;;  %v9577_v14 = vld [vmem:[%s13320_s20 + $0x2c0] ss:$8 sps:$4 sm:$0xff]  }
 0x4d6   :  { %2713 = vmatprep.subr.bf16.mxu1 %v9564_v42  ;;  %v9583_v42 = vld [vmem:[%s13320_s20 + $0x2e0] ss:$8 sps:$4 sm:$0xff]  }
 0x4d8   :  { %8910 = vmatpush3.bf16.msra.mxu0 %v11916_v30 }
 0x4d9   :  { %2714 = vmatpush1.bf16.msra.mxu1 %v9562_v58  ;;  %8912 = vmatprep.subr.bf16.mxu0 %v11922_v50  ;;  %v9591_v58 = vld [vmem:[%s13320_s20 + $0x304] ss:$8 sps:$4 sm:$0xff]  }
 0x4da   :  { %2715 = vmatprep.subr.bf16.mxu1 %v9567_v16  ;;  %v9592_v16 = vld [vmem:[%s13320_s20 + $0x310] ss:$8 sps:$4 sm:$0xff]  }
 0x4dc   :  { %8914 = vmatpush3.bf16.msra.mxu0 %v11940_v46 }
 0x4dd   :  { %2716 = vmatpush1.bf16.msra.mxu1 %v9565_v40  ;;  %8916 = vmatprep.subr.bf16.mxu0 %v11946_v55  ;;  %v9618_v40 = vld [vmem:[%s13320_s20 + $0x394] ss:$8 sps:$4 sm:$0xff]  }
 0x4de   :  { %2717 = vmatprep.subr.bf16.mxu1 %v9570_v26  ;;  %v9619_v26 = vld [vmem:[%s13320_s20 + $0x3a0] ss:$8 sps:$4 sm:$0xff]  }
 0x4e0   :  { %8918 = vmatpush3.bf16.msra.mxu0 %v11958_v49 }
 0x4e1   :  { %2718 = vmatpush1.bf16.msra.mxu1 %v9568_v53  ;;  %8920 = vmatprep.subr.bf16.mxu0 %v11791_v43  ;;  %v9580_v43 = vld [vmem:[%s13320_s20 + $0x2d0] ss:$8 sps:$4 sm:$0xff]   ;;  %v9627_v53 = vld [vmem:[%s13320_s20 + $0x3c4] ss:$8 sps:$4 sm:$0xff]  }
 0x4e2   :  { %2719 = vmatprep.subr.bf16.mxu1 %v9573_v6  ;;  %v9628_v6 = vld [vmem:[%s13320_s20 + $0x3d0] ss:$8 sps:$4 sm:$0xff]  }
 0x4e5   :  { %2720 = vmatpush1.bf16.msra.mxu1 %v9571_v52  ;;  %v9633_v52 = vld [vmem:[%s13320_s20 + $0x3e4] ss:$8 sps:$4 sm:$0xff]  }
 0x4e6   :  { %2721 = vmatprep.subr.bf16.mxu1 %v9576_v62  ;;  %v9631_v62 = vld [vmem:[%s13320_s20 + $0x3e0] ss:$8 sps:$4 sm:$0xff]  }
 0x4e9   :  { %2722 = vmatpush1.bf16.msra.mxu1 %v9574_v4  ;;  %v9636_v4 = vld [vmem:[%s13320_s20 + $0x3f4] ss:$8 sps:$4 sm:$0xff]  }
 0x4ea   :  { %2723 = vmatprep.subr.bf16.mxu1 %v9579_v21  ;;  %v9634_v21 = vld [vmem:[%s13320_s20 + $0x3f0] ss:$8 sps:$4 sm:$0xff]  }
 0x4ed   :  { %2724 = vmatpush1.bf16.msra.mxu1 %v9577_v14 }
 0x4ee   :  { %2725 = vmatprep.subr.bf16.mxu1 %v9582_v27 }
 0x4f1   :  { %2726 = vmatpush1.bf16.msra.mxu1 %v9580_v43 }
 0x4f2   :  { %2727 = vmatprep.subr.bf16.mxu1 %v9585_v34 }
 0x4f5   :  { %2728 = vmatpush1.bf16.msra.mxu1 %v9583_v42 }
 0x4f6   :  { %2729 = vmatprep.subr.bf16.mxu1 %v9588_v59 }
 0x4f9   :  { %2730 = vmatpush1.bf16.msra.mxu1 %v9586_v3 }
 0x4fa   :  { %3031 = vmatprep.subr.bf16.mxu1 %v9591_v58 }
 0x4fc   :  { %2732 = vmatmul.mubr.bf16.vlgmr.msra.gmra.mrb[64].mxu1 %v2502_v15  ;;  %v9598_v15 = vld [vmem:[%s13320_s20 + $0x330] ss:$8 sps:$4 sm:$0xff]  }
 0x4fd   :  { %3032 = vmatpush1.bf16.msra.mxu1 %v9589_v48  ;;  %2741 = vmatprep.mubr.bf16.mxu1 %v2505_v25  ;;  %v9607_v25 = vld [vmem:[%s13320_s20 + $0x360] ss:$8 sps:$4 sm:$0xff]  }
 0x4fe   :  { %3033 = vmatprep.subr.bf16.mxu1 %v9594_v12 }
 0x501   :  { %3034 = vmatpush1.bf16.msra.mxu1 %v9592_v16 }
 0x502   :  { %3035 = vmatprep.subr.bf16.mxu1 %v9597_v19 }
 0x504   :  { %2742 = vmatmul.mubr.bf16.gmra.mrb[68].mxu1 %v2504_v22  ;;  %v9609_v22 = vld [vmem:[%s13320_s20 + $0x364] ss:$8 sps:$4 sm:$0xff]  }
 0x505   :  { %3036 = vmatpush1.bf16.msra.mxu1 %v9595_v2  ;;  %3063 = vmatprep.mubr.bf16.mxu1 %v2835_v39  ;;  %v9615_v39 = vld [vmem:[%s13320_s20 + $0x384] ss:$8 sps:$4 sm:$0xff]  }
 0x506   :  { %3037 = vmatprep.subr.bf16.mxu1 %v9600_v11 }
 0x509   :  { %3038 = vmatpush1.bf16.msra.mxu1 %v9598_v15 }
 0x50a   :  { %3039 = vmatprep.subr.bf16.mxu1 %v9603_v7 }
 0x50d   :  { %3040 = vmatpush1.bf16.msra.mxu1 %v9601_v5 }
 0x50e   :  { %3041 = vmatprep.subr.bf16.mxu1 %v9606_v9 }
 0x511   :  { %3042 = vmatpush1.bf16.msra.mxu1 %v9604_v17 }
 0x512   :  { %3043 = vmatprep.subr.bf16.mxu1 %v9609_v22 }
 0x515   :  { %3044 = vmatpush1.bf16.msra.mxu1 %v9607_v25 }
 0x516   :  { %3045 = vmatprep.subr.bf16.mxu1 %v9612_v13 }
 0x519   :  { %3046 = vmatpush1.bf16.msra.mxu1 %v9610_v31 }
 0x51a   :  { %3047 = vmatprep.subr.bf16.mxu1 %v9615_v39 }
 0x51d   :  { %3048 = vmatpush1.bf16.msra.mxu1 %v9613_v38 }
 0x51e   :  { %3049 = vmatprep.subr.bf16.mxu1 %v9618_v40 }
 0x521   :  { %3050 = vmatpush1.bf16.msra.mxu1 %v9616_v10 }
 0x522   :  { %3051 = vmatprep.subr.bf16.mxu1 %v9621_v18 }
 0x525   :  { %3052 = vmatpush1.bf16.msra.mxu1 %v9619_v26 }
 0x526   :  { %3053 = vmatprep.subr.bf16.mxu1 %v9624_v56 }
 0x529   :  { %3054 = vmatpush1.bf16.msra.mxu1 %v9622_v33 }
 0x52a   :  { %3055 = vmatprep.subr.bf16.mxu1 %v9627_v53 }
 0x52d   :  { %3056 = vmatpush1.bf16.msra.mxu1 %v9625_v57 }
 0x52e   :  { %3057 = vmatprep.subr.bf16.mxu1 %v9630_v60 }
 0x531   :  { %3058 = vmatpush1.bf16.msra.mxu1 %v9628_v6 }
 0x532   :  { %3059 = vmatprep.subr.bf16.mxu1 %v9633_v52 }
 0x535   :  { %3060 = vmatpush1.bf16.msra.mxu1 %v9631_v62 }
 0x536   :  { %3061 = vmatprep.subr.bf16.mxu1 %v9636_v4 }
 0x539   :  { %3062 = vmatpush1.bf16.msra.mxu1 %v9634_v21 }
 0x53c   :  { %3064 = vmatmul.mubr.bf16.vlgmr.msra.gmra.mrb[64].mxu1 %v2834_v29 }
 0x53d   :  { %3073 = vmatprep.mubr.bf16.mxu1 %v2837_v47 }
 0x544   :  { %3074 = vmatmul.mubr.bf16.gmra.mrb[68].mxu1 %v2836_v36 }
 0x545   :  { %4467 = vmatprep.mubr.bf16.mxu1 %v10419_v0 }
 0x60f   :  { %v12114_v14 = vpop.f32.mrb[64].mxu1 }
 0x610   :  { %v12116_v27 = vpop.f32.mrb[65].mxu1  ;;  %v3223_v36 = vmul.f32 %v12114_v14, %v12114_v14 }
 0x611   :  { %v12118_v43 = vpop.f32.mrb[66].mxu1  ;;  %3188 = vmatprep.mubr.f32.mxu0 %v12116_v27  ;;  %v3224_v32 = vmul.f32 %v12116_v27, %v12116_v27 }
 0x612   :  { %v12121_v8 = vpop.f32.mrb[67].mxu1  ;;  %3189 = vmatmul.mubr.f32.vlgmr.msra.gmra.mrb[48].mxu0 %v12114_v14  ;;  %v3225_v47 = vmul.f32 %v12118_v43, %v12118_v43 }
 0x613   :  { %8922 = vmatpush3.bf16.msra.mxu0 %v11802_v51  ;;  %3193 = vmatprep.mubr.f32.mxu0 %v12121_v8  ;;  %v3226_v41 = vmul.f32 %v12121_v8, %v12121_v8 }
 0x614   :  { %8924 = vmatprep.subr.bf16.mxu0 %v11804_v54 }
 0x616   :  { %3194 = vmatmul.mubr.f32.gmra.mrb[50].mxu0 %v12118_v43 }
 0x617   :  { %8926 = vmatpush3.bf16.msra.mxu0 %v11820_v28  ;;  %v12129_v23 = vpop.f32.mrb[68].mxu1 }
 0x618   :  { %v12131_v29 = vpop.f32.mrb[69].mxu1  ;;  %8928 = vmatprep.subr.bf16.mxu0 %v11826_v37  ;;  %v3227_v54 = vmul.f32 %v12129_v23, %v12129_v23 }
 0x619   :  { %v12134_v63 = vpop.f32.mrb[70].mxu1  ;;  %3198 = vmatprep.mubr.f32.mxu0 %v12131_v29  ;;  %v3228_v51 = vmul.f32 %v12131_v29, %v12131_v29 }
 0x61a   :  { %v12137_v20 = vpop.f32.mrb[71].mxu1  ;;  %3199 = vmatmul.mubr.f32.gmra.mrb[52].mxu0 %v12129_v23  ;;  %v3229_v37 = vmul.f32 %v12134_v63, %v12134_v63 }
 0x61b   :  { %8930 = vmatpush3.bf16.msra.mxu0 %v11844_v61  ;;  %3203 = vmatprep.mubr.f32.mxu0 %v12137_v20  ;;  %v3230_v28 = vmul.f32 %v12137_v20, %v12137_v20  ;;  %v3342_v61 = vld [vmem:[#allocation7 + $0x8] sm:$0xff] }
 0x61c   :  { %8932 = vmatprep.subr.bf16.mxu0 %v11850_v44  ;;  %v3344_v44 = vld [vmem:[#allocation7 + $0x18] sm:$0xff] }
 0x61e   :  { %3204 = vmatmul.mubr.f32.gmra.mrb[54].mxu0 %v12134_v63 }
 0x61f   :  { %8934 = vmatpush3.bf16.msra.mxu0 %v11868_v35  ;;  %3295 = vmatprep.mubr.f32.mxu0 %v3224_v32  ;;  %v3341_v35 = vld [vmem:[#allocation7] sm:$0xff] }
 0x620   :  { %8936 = vmatprep.subr.bf16.mxu0 %v11874_v24  ;;  %v8951_v24 = vpack.c.bf16 %v3344_v44, %v3342_v61 }
 0x623   :  { %8938 = vmatpush3.bf16.msra.mxu0 %v11892_v45  ;;  %v3343_v45 = vld [vmem:[#allocation7 + $0x10] sm:$0xff] }
 0x624   :  { %8940 = vmatprep.subr.bf16.mxu0 %v11898_v1  ;;  %v10420_v1 = vmov 0.0  }
 0x627   :  { %8942 = vmatpush3.bf16.msra.mxu0 %v11916_v30  ;;  %v12170_v30 = vpack.c.bf16 %v3343_v45, %v3341_v35 }
 0x628   :  { %8944 = vmatprep.subr.bf16.mxu0 %v11922_v50 }
 0x62b   :  { %8946 = vmatpush3.bf16.msra.mxu0 %v11940_v46 }
 0x62c   :  { %8948 = vmatprep.subr.bf16.mxu0 %v11946_v55 }
 0x62f   :  { %8950 = vmatpush3.bf16.msra.mxu0 %v11958_v49 }
 0x630   :  { %8952 = vmatprep.subr.bf16.mxu0 %v8951_v24 }
 0x632   :  { %3296 = vmatmul.mubr.f32.vlgmr.msra.gmra.mrb[56].mxu0 %v3223_v36 }
 0x633   :  { %3300 = vmatprep.mubr.f32.mxu0 %v3226_v41  ;;  %8954 = vmatpush1.bf16.msra.mxu0 %v12170_v30 }
 0x634   :  { %8956 = vmatprep.subr.bf16.mxu0 %v8951_v24 }
 0x636   :  { %3301 = vmatmul.mubr.f32.gmra.mrb[58].mxu0 %v3225_v47 }
 0x637   :  { %3305 = vmatprep.mubr.f32.mxu0 %v3228_v51 }
 0x63a   :  { %3306 = vmatmul.mubr.f32.gmra.mrb[60].mxu0 %v3227_v54 }
 0x63b   :  { %3310 = vmatprep.mubr.f32.mxu0 %v3230_v28 }
 0x63e   :  { %3311 = vmatmul.mubr.f32.gmra.mrb[62].mxu0 %v3229_v37 }
 0x63f   :  { %3412 = vmatprep.mubr.f32.mxu0 %v10420_v1 }
 0x6e5   :  { %v8597_v50 = vpop.f32.mrb[48].mxu0 }
 0x6e6   :  { %v8598_v46 = vpop.f32.mrb[49].mxu0 }
 0x6e7   :  { %v8599_v55 = vadd.f32 %v8598_v46, %v8597_v50 }
 0x6e9   :  { %v8600_v49 = vpop.f32.mrb[50].mxu0  ;;  %v3210_v59 = vsel %vm3209_vm1, %v8599_v55, 0.0 }
 0x6ea   :  { %v8601_v34 = vpop.f32.mrb[51].mxu0 }
 0x6eb   :  { %v8602_v42 = vadd.f32 %v8601_v34, %v8600_v49  ;;  %v3334_v49 = vld [vmem:[#allocation4] sm:$0x1] }
 0x6ed   :  { %v3211_v3 = vsel %vm3209_vm1, %v8602_v42, 0.0  ;;  %v8603_v58 = vpop.f32.mrb[52].mxu0 }
 0x6ee   :  { %v3212_v48 = vadd.f32 %v3211_v3, %v3210_v59  ;;  %v8604_v12 = vpop.f32.mrb[53].mxu0  ;;  %v3338_v59 = vld [vmem:[#allocation6] sm:$0x1] }
 0x6ef   :  { %v8605_v16 = vadd.f32 %v8604_v12, %v8603_v58 }
 0x6f1   :  { %v3213_v19 = vsel %vm3209_vm1, %v8605_v16, 0.0  ;;  %v8606_v2 = vpop.f32.mrb[54].mxu0 }
 0x6f2   :  { %v3214_v11 = vadd.f32 %v3213_v19, %v3212_v48  ;;  %v8607_v15 = vpop.f32.mrb[55].mxu0  ;;  %v3493_v48 = vlaneseq }
 0x6f3   :  { %v8608_v7 = vadd.f32 %v8607_v15, %v8606_v2 }
 0x6f4   :  { %v3494_v12 = vshrl.u32 %v3493_v48, 7  ;;  %v9657_v48 = vld [vmem:[%s13282_s9 + $0x160] ss:$8 sps:$4 sm:$0xff]  }
 0x6f5   :  { %v3215_v5 = vsel %vm3209_vm1, %v8608_v7, 0.0 }
 0x6f6   :  { %v3216_v9 = vadd.f32 %v3215_v5, %v3214_v11  ;;  %v12186_v16 = vsub.s32 0, %v3494_v12  ;;  %v9662_v12 = vld [vmem:[%s13282_s9 + $0x174] ss:$8 sps:$4 sm:$0xff]  }
 0x6f8   :  { %v3217_v13 = vrot.slane %v3216_v9, 4 }
 0x6fa   :  { %v3218_v40 = vadd.f32 %v3217_v13, %v3216_v9 }
 0x6fc   :  { %v3219_v57 = vrot.slane %v3218_v40, 2 }
 0x6fe   :  { %v3220_v21 = vadd.f32 %v3219_v57, %v3218_v40 }
 0x700   :  { %v3221_v41 = vrot.slane %v3220_v21, 1 }
 0x702   :  { %v3222_v54 = vadd.f32 %v3221_v41, %v3220_v21 }
 0x704   :  { %v3329_v61 = vmul.f32 0.001953125, %v3222_v54 }
 0x705   :  { %v8641_v17 = vpop.f32.mrb[56].mxu0 }
 0x706   :  { %v8642_v22 = vpop.f32.mrb[57].mxu0  ;;  %v3331_v24 = vmul.f32 %v3329_v61, %v3329_v61 }
 0x707   :  { %v8643_v25 = vadd.f32 %v8642_v22, %v8641_v17 }
 0x709   :  { %v8644_v31 = vpop.f32.mrb[58].mxu0  ;;  %v3316_v10 = vsel %vm3209_vm1, %v8643_v25, 0.0 }
 0x70a   :  { %v8645_v39 = vpop.f32.mrb[59].mxu0 }
 0x70b   :  { %v8646_v38 = vadd.f32 %v8645_v39, %v8644_v31 }
 0x70d   :  { %v3317_v18 = vsel %vm3209_vm1, %v8646_v38, 0.0  ;;  %v8647_v26 = vpop.f32.mrb[60].mxu0 }
 0x70e   :  { %v3318_v56 = vadd.f32 %v3317_v18, %v3316_v10  ;;  %v8648_v33 = vpop.f32.mrb[61].mxu0 }
 0x70f   :  { %v8649_v53 = vadd.f32 %v8648_v33, %v8647_v26 }
 0x711   :  { %v3319_v60 = vsel %vm3209_vm1, %v8649_v53, 0.0  ;;  %v8650_v6 = vpop.f32.mrb[62].mxu0 }
 0x712   :  { %v3320_v52 = vadd.f32 %v3319_v60, %v3318_v56  ;;  %v8651_v62 = vpop.f32.mrb[63].mxu0 }
 0x713   :  { %v8652_v4 = vadd.f32 %v8651_v62, %v8650_v6 }
 0x715   :  { %v3321_v32 = vsel %vm3209_vm1, %v8652_v4, 0.0 }
 0x716   :  { %v3322_v36 = vadd.f32 %v3321_v32, %v3320_v52 }
 0x718   :  { %v3323_v47 = vrot.slane %v3322_v36, 4 }
 0x71a   :  { %v3324_v51 = vadd.f32 %v3323_v47, %v3322_v36 }
 0x71c   :  { %v3325_v28 = vrot.slane %v3324_v51, 2 }
 0x71e   :  { %v3326_v37 = vadd.f32 %v3325_v28, %v3324_v51 }
 0x720   :  { %v3327_v44 = vrot.slane %v3326_v37, 1 }
 0x722   :  { %v3328_v35 = vadd.f32 %v3327_v44, %v3326_v37  ;;  %v9637_v37 = vld [vmem:[%s13283_s10] sm:$0xff]   ;;  %v9638_v44 = vld [vmem:[%s13283_s10 + $0x8] sm:$0xff]  }
 0x724   :  { %v3330_v45 = vmul.f32 0.001953125, %v3328_v35  ;;  %v9639_v35 = vld [vmem:[%s13282_s9 + $0x100] ss:$8 sps:$4 sm:$0xff]  }
 0x726   :  { %v3332_v50 = vsub.f32 %v3330_v45, %v3331_v24  ;;  %v9644_v24 = vld [vmem:[%s13282_s9 + $0x114] ss:$8 sps:$4 sm:$0xff]   ;;  %v9642_v45 = vld [vmem:[%s13282_s9 + $0x110] ss:$8 sps:$4 sm:$0xff]  }
 0x728   :  { %v3333_v46 = vmax.f32 %v3332_v50, 0.0  ;;  %v9647_v50 = vld [vmem:[%s13282_s9 + $0x124] ss:$8 sps:$4 sm:$0xff]  }
 0x72a   :  { %v3335_v55 = vadd.f32 1e-05, %v3333_v46  ;;  %v9645_v46 = vld [vmem:[%s13282_s9 + $0x120] ss:$8 sps:$4 sm:$0xff]  }
 0x72c   :  { %10089 = vrsqrt.f32 %v3335_v55  ;;  %v9650_v55 = vld [vmem:[%s13282_s9 + $0x134] ss:$8 sps:$4 sm:$0xff]  }
 0x736   :  { %v10090_v34 = vpop.eup %10089 }
 0x737   :  { %v3337_v42 = vmul.f32 %v10090_v34, %v3334_v49  ;;  %v9648_v49 = vld [vmem:[%s13282_s9 + $0x130] ss:$8 sps:$4 sm:$0xff]   ;;  %v9653_v34 = vld [vmem:[%s13282_s9 + $0x144] ss:$8 sps:$4 sm:$0xff]  }
 0x739   :  { %8021 = vmatmul.mubr.msk.f32.vlgmr.msra.gmra.mrb[64].mxu0 %vm3209_vm1, %v3337_v42  ;;  %v3339_v3 = vmul.f32 %v3337_v42, %v3329_v61  ;;  %v9641_v61 = vld [vmem:[%s13282_s9 + $0x104] ss:$8 sps:$4 sm:$0xff]   ;;  %v9651_v42 = vld [vmem:[%s13282_s9 + $0x140] ss:$8 sps:$4 sm:$0xff]  }
 0x73a   :  { %8958 = vmatpush1.bf16.msra.mxu0 %v12170_v30  ;;  %3486 = vmatprep.mubr.f32.mxu0 %v10420_v1 }
 0x73b   :  { %v3340_v58 = vsub.f32 %v3338_v59, %v3339_v3  ;;  %v9656_v59 = vld [vmem:[%s13282_s9 + $0x154] ss:$8 sps:$4 sm:$0xff]   ;;  %v9654_v3 = vld [vmem:[%s13282_s9 + $0x150] ss:$8 sps:$4 sm:$0xff]  }
 0x73d   :  { %8022 = vmatmul.mubr.msk.f32.vlgmr.msra.gmra.mrb[66].mxu0 %vm3209_vm1, %v3340_v58  ;;  %v9659_v58 = vld [vmem:[%s13282_s9 + $0x164] ss:$8 sps:$4 sm:$0xff]  }
 0x73e   :  { %3588 = vmatprep.mubr.bf16.mxu0 %v10419_v0 }
 0x80c   :  { %v3414_v19 = vpop.f32.mrb[64].mxu0 }
 0x80d   :  { %v3496_v2 = vrot.slane %v3414_v19, %v12186_v16  ;;  %v3416_v11 = vpop.f32.mrb[65].mxu0  ;;  %v9660_v19 = vld [vmem:[%s13282_s9 + $0x170] ss:$8 sps:$4 sm:$0xff]  }
 0x80e   :  { %v3500_v15 = vrot.slane %v3416_v11, %v12186_v16  ;;  %v9663_v11 = vld [vmem:[%s13282_s9 + $0x180] ss:$8 sps:$4 sm:$0xff]  }
 0x80f   :  { %v3501_v7 = vmul.f32 %v3496_v2, %v12114_v14  ;;  %v3503_v30 = vmul.f32 %v3496_v2, %v12118_v43  ;;  %v3505_v5 = vmul.f32 %v3496_v2, %v12129_v23  ;;  %v3507_v9 = vmul.f32 %v3496_v2, %v12134_v63  ;;  %v9665_v2 = vld [vmem:[%s13282_s9 + $0x184] ss:$8 sps:$4 sm:$0xff]  }
 0x810   :  { %v3502_v17 = vmul.f32 %v3500_v15, %v12116_v27  ;;  %v3504_v22 = vmul.f32 %v3500_v15, %v12121_v8  ;;  %v3506_v25 = vmul.f32 %v3500_v15, %v12131_v29  ;;  %v3508_v13 = vmul.f32 %v3500_v15, %v12137_v20  ;;  %v3488_v31 = vpop.f32.mrb[66].mxu0  ;;  %v9668_v15 = vld [vmem:[%s13282_s9 + $0x194] ss:$8 sps:$4 sm:$0xff]  }
 0x811   :  { %v3512_v39 = vrot.slane %v3488_v31, %v12186_v16  ;;  %v3490_v38 = vpop.f32.mrb[67].mxu0  ;;  %v9680_v31 = vld [vmem:[%s13282_s9 + $0x1d4] ss:$8 sps:$4 sm:$0xff]  }
 0x812   :  { %v3516_v14 = vrot.slane %v3490_v38, %v12186_v16  ;;  %v9683_v38 = vld [vmem:[%s13282_s9 + $0x1e4] ss:$8 sps:$4 sm:$0xff]  }
 0x813   :  { %v3517_v40 = vadd.f32 %v3512_v39, %v3501_v7  ;;  %v3519_v43 = vadd.f32 %v3512_v39, %v3503_v30  ;;  %v3521_v10 = vadd.f32 %v3512_v39, %v3505_v5  ;;  %v3523_v23 = vadd.f32 %v3512_v39, %v3507_v9  ;;  %v9666_v7 = vld [vmem:[%s13282_s9 + $0x190] ss:$8 sps:$4 sm:$0xff]   ;;  %v9671_v30 = vld [vmem:[%s13282_s9 + $0x1a4] ss:$8 sps:$4 sm:$0xff]   ;;  %v9669_v5 = vld [vmem:[%s13282_s9 + $0x1a0] ss:$8 sps:$4 sm:$0xff]  }
 0x814   :  { %v3518_v18 = vadd.f32 %v3516_v14, %v3502_v17  ;;  %v3520_v63 = vadd.f32 %v3516_v14, %v3504_v22  ;;  %v3522_v26 = vadd.f32 %v3516_v14, %v3506_v25  ;;  %v3524_v27 = vadd.f32 %v3516_v14, %v3508_v13  ;;  %v9674_v9 = vld [vmem:[%s13282_s9 + $0x1b4] ss:$8 sps:$4 sm:$0xff]   ;;  %v9672_v17 = vld [vmem:[%s13282_s9 + $0x1b0] ss:$8 sps:$4 sm:$0xff]   ;;  %v9677_v22 = vld [vmem:[%s13282_s9 + $0x1c4] ss:$8 sps:$4 sm:$0xff]  }
 0x815   :  { %v3525_v56 = vmul.f32 0.2, %v3517_v40  ;;  %v3527_v8 = vmul.f32 0.2, %v3519_v43  ;;  %v3529_v33 = vmul.f32 0.2, %v3521_v10 }
 0x816   :  { %v3531_v29 = vmul.f32 0.2, %v3523_v23  ;;  %v3526_v53 = vmul.f32 0.2, %v3518_v18  ;;  %v3528_v20 = vmul.f32 0.2, %v3520_v63 }
 0x817   :  { %v3530_v57 = vmul.f32 0.2, %v3522_v26  ;;  %v3532_v60 = vmul.f32 0.2, %v3524_v27  ;;  %v3533_v6 = vmax.f32 %v3517_v40, %v3525_v56  ;;  %v3535_v52 = vmax.f32 %v3519_v43, %v3527_v8  ;;  %v9675_v25 = vld [vmem:[%s13282_s9 + $0x1c0] ss:$8 sps:$4 sm:$0xff]  }
 0x818   :  { %v3534_v62 = vmax.f32 %v3518_v18, %v3526_v53  ;;  %v3536_v4 = vmax.f32 %v3520_v63, %v3528_v20  ;;  %v3537_v21 = vmax.f32 %v3521_v10, %v3529_v33  ;;  %v3539_v32 = vmax.f32 %v3523_v23, %v3531_v29  ;;  %v9678_v13 = vld [vmem:[%s13282_s9 + $0x1d0] ss:$8 sps:$4 sm:$0xff]   ;;  %v9681_v39 = vld [vmem:[%s13282_s9 + $0x1e0] ss:$8 sps:$4 sm:$0xff]   ;;  %v9686_v14 = vld [vmem:[%s13282_s9 + $0x1f4] ss:$8 sps:$4 sm:$0xff]  }
 0x819   :  { %v12200_v36 = vpack.c.bf16 %v3535_v52, %v3533_v6  ;;  %v3538_v41 = vmax.f32 %v3522_v26, %v3530_v57  ;;  %v3540_v47 = vmax.f32 %v3524_v27, %v3532_v60  ;;  %v9684_v40 = vld [vmem:[%s13282_s9 + $0x1f0] ss:$8 sps:$4 sm:$0xff]   ;;  %v9689_v43 = vld [vmem:[%s13282_s9 + $0x4] ss:$8 sps:$4 sm:$0xff]   ;;  %v9687_v60 = vld [vmem:[%s13282_s9] ss:$8 sps:$4 sm:$0xff]  }
 0x81a   :  { %v12202_v51 = vpack.c.bf16 %v3536_v4, %v3534_v62  ;;  %v12204_v54 = vpack.c.bf16 %v3539_v32, %v3537_v21  ;;  %v9736_v10 = vld [vmem:[%s13283_s10 + $0x18] sm:$0xff]   ;;  %v9695_v62 = vld [vmem:[%s13282_s9 + $0x24] ss:$8 sps:$4 sm:$0xff]   ;;  %v9693_v4 = vld [vmem:[%s13282_s9 + $0x20] ss:$8 sps:$4 sm:$0xff]  }
 0x81b   :  { %v12206_v28 = vpack.c.bf16 %v3540_v47, %v3538_v41  ;;  %v9692_v6 = vld [vmem:[%s13282_s9 + $0x14] ss:$8 sps:$4 sm:$0xff]   ;;  %v9690_v52 = vld [vmem:[%s13282_s9 + $0x10] ss:$8 sps:$4 sm:$0xff]   ;;  %v9701_v41 = vld [vmem:[%s13282_s9 + $0x44] ss:$8 sps:$4 sm:$0xff]  }
 0x81c   :  { %3556 = vmatprep.subr.bf16.mxu0 %v12202_v51  ;;  %4435 = vmatprep.subr.bf16.mxu1 %v12202_v51  ;;  %v9698_v21 = vld [vmem:[%s13282_s9 + $0x34] ss:$8 sps:$4 sm:$0xff]   ;;  %v9696_v32 = vld [vmem:[%s13282_s9 + $0x30] ss:$8 sps:$4 sm:$0xff]   ;;  %v9699_v47 = vld [vmem:[%s13282_s9 + $0x40] ss:$8 sps:$4 sm:$0xff]  }
 0x81d   :  { %3557 = vmatpush1.bf16.msra.mxu0 %v12200_v36  ;;  %4436 = vmatpush1.bf16.msra.mxu1 %v12200_v36 }
 0x81e   :  { %3558 = vmatprep.subr.bf16.mxu0 %v12206_v28  ;;  %4437 = vmatprep.subr.bf16.mxu1 %v12206_v28 }
 0x821   :  { %3559 = vmatpush1.bf16.msra.mxu0 %v12204_v54  ;;  %4438 = vmatpush1.bf16.msra.mxu1 %v12204_v54 }
 0x822   :  { %3644 = vmatprep.subr.bf16.mxu0 %v12202_v51 }
 0x824   :  { %8024 = vmatmul.mubr.msk.bf16.vlgmr.msra.gmra.mrb[68].mxu0 %vm3552_vm2, %v9637_v37  ;;  %8196 = vmatmul.mubr.msk.bf16.vlgmr.msra.gmra.mrb[72].mxu1 %vm3552_vm2, %v9736_v10  ;;  %v9704_v37 = vld [vmem:[%s13282_s9 + $0x54] ss:$8 sps:$4 sm:$0xff]   ;;  %v9763_v10 = vld [vmem:[%s13282_s9 + $0x284] ss:$8 sps:$4 sm:$0xff]  }
 0x825   :  { %3645 = vmatpush1.bf16.msra.mxu0 %v12200_v36  ;;  %3676 = vmatprep.mubr.bf16.mxu0 %v10419_v0 }
 0x826   :  { %3646 = vmatprep.subr.bf16.mxu0 %v12206_v28 }
 0x829   :  { %3647 = vmatpush1.bf16.msra.mxu0 %v12204_v54 }
 0x82a   :  { %3882 = vmatprep.subr.bf16.mxu0 %v9641_v61  ;;  %v9702_v61 = vld [vmem:[%s13282_s9 + $0x50] ss:$8 sps:$4 sm:$0xff]  }
 0x82c   :  { %8028 = vmatmul.mubr.msk.bf16.vlgmr.msra.gmra.mrb[72].mxu0 %vm3552_vm2, %v9638_v44  ;;  %v9707_v44 = vld [vmem:[%s13282_s9 + $0x64] ss:$8 sps:$4 sm:$0xff]  }
 0x82d   :  { %3883 = vmatpush1.bf16.msra.mxu0 %v9639_v35  ;;  %v9705_v35 = vld [vmem:[%s13282_s9 + $0x60] ss:$8 sps:$4 sm:$0xff]  }
 0x82e   :  { %3884 = vmatprep.subr.bf16.mxu0 %v9644_v24  ;;  %v9710_v24 = vld [vmem:[%s13282_s9 + $0x74] ss:$8 sps:$4 sm:$0xff]  }
 0x831   :  { %3885 = vmatpush1.bf16.msra.mxu0 %v9642_v45  ;;  %v9708_v45 = vld [vmem:[%s13282_s9 + $0x70] ss:$8 sps:$4 sm:$0xff]  }
 0x832   :  { %3886 = vmatprep.subr.bf16.mxu0 %v9647_v50  ;;  %v9713_v50 = vld [vmem:[%s13282_s9 + $0x84] ss:$8 sps:$4 sm:$0xff]  }
 0x835   :  { %3887 = vmatpush1.bf16.msra.mxu0 %v9645_v46  ;;  %v9711_v46 = vld [vmem:[%s13282_s9 + $0x80] ss:$8 sps:$4 sm:$0xff]  }
 0x836   :  { %3888 = vmatprep.subr.bf16.mxu0 %v9650_v55  ;;  %v9716_v55 = vld [vmem:[%s13282_s9 + $0x94] ss:$8 sps:$4 sm:$0xff]  }
 0x839   :  { %3889 = vmatpush1.bf16.msra.mxu0 %v9648_v49  ;;  %v9714_v49 = vld [vmem:[%s13282_s9 + $0x90] ss:$8 sps:$4 sm:$0xff]  }
 0x83a   :  { %3890 = vmatprep.subr.bf16.mxu0 %v9653_v34  ;;  %v9719_v34 = vld [vmem:[%s13282_s9 + $0xa4] ss:$8 sps:$4 sm:$0xff]  }
 0x83d   :  { %3891 = vmatpush1.bf16.msra.mxu0 %v9651_v42  ;;  %v9717_v42 = vld [vmem:[%s13282_s9 + $0xa0] ss:$8 sps:$4 sm:$0xff]  }
 0x83e   :  { %3892 = vmatprep.subr.bf16.mxu0 %v9656_v59  ;;  %v9722_v59 = vld [vmem:[%s13282_s9 + $0xb4] ss:$8 sps:$4 sm:$0xff]  }
 0x841   :  { %3893 = vmatpush1.bf16.msra.mxu0 %v9654_v3  ;;  %v9720_v3 = vld [vmem:[%s13282_s9 + $0xb0] ss:$8 sps:$4 sm:$0xff]  }
 0x842   :  { %3894 = vmatprep.subr.bf16.mxu0 %v9659_v58  ;;  %v9725_v58 = vld [vmem:[%s13282_s9 + $0xc4] ss:$8 sps:$4 sm:$0xff]  }
 0x845   :  { %3895 = vmatpush1.bf16.msra.mxu0 %v9657_v48  ;;  %v9723_v48 = vld [vmem:[%s13282_s9 + $0xc0] ss:$8 sps:$4 sm:$0xff]  }
 0x846   :  { %3896 = vmatprep.subr.bf16.mxu0 %v9662_v12  ;;  %v9728_v12 = vld [vmem:[%s13282_s9 + $0xd4] ss:$8 sps:$4 sm:$0xff]  }
 0x849   :  { %3897 = vmatpush1.bf16.msra.mxu0 %v9660_v19  ;;  %v9726_v19 = vld [vmem:[%s13282_s9 + $0xd0] ss:$8 sps:$4 sm:$0xff]  }
 0x84a   :  { %3898 = vmatprep.subr.bf16.mxu0 %v9665_v2  ;;  %v9731_v2 = vld [vmem:[%s13282_s9 + $0xe4] ss:$8 sps:$4 sm:$0xff]  }
 0x84d   :  { %3899 = vmatpush1.bf16.msra.mxu0 %v9663_v11  ;;  %v9729_v11 = vld [vmem:[%s13282_s9 + $0xe0] ss:$8 sps:$4 sm:$0xff]  }
 0x84e   :  { %3900 = vmatprep.subr.bf16.mxu0 %v9668_v15  ;;  %v9734_v15 = vld [vmem:[%s13282_s9 + $0xf4] ss:$8 sps:$4 sm:$0xff]  }
 0x851   :  { %3901 = vmatpush1.bf16.msra.mxu0 %v9666_v7  ;;  %v9732_v7 = vld [vmem:[%s13282_s9 + $0xf0] ss:$8 sps:$4 sm:$0xff]  }
 0x852   :  { %3902 = vmatprep.subr.bf16.mxu0 %v9671_v30  ;;  %v9739_v30 = vld [vmem:[%s13282_s9 + $0x204] ss:$8 sps:$4 sm:$0xff]  }
 0x855   :  { %3903 = vmatpush1.bf16.msra.mxu0 %v9669_v5  ;;  %v9735_v5 = vld [vmem:[%s13283_s10 + $0x10] sm:$0xff]  }
 0x856   :  { %3904 = vmatprep.subr.bf16.mxu0 %v9674_v9  ;;  %v9743_v9 = vld [vmem:[%s13282_s9 + $0x220] ss:$8 sps:$4 sm:$0xff]  }
 0x859   :  { %3905 = vmatpush1.bf16.msra.mxu0 %v9672_v17  ;;  %v9748_v17 = vld [vmem:[%s13282_s9 + $0x234] ss:$8 sps:$4 sm:$0xff]  }
 0x85a   :  { %3906 = vmatprep.subr.bf16.mxu0 %v9677_v22  ;;  %v9746_v22 = vld [vmem:[%s13282_s9 + $0x230] ss:$8 sps:$4 sm:$0xff]  }
 0x85d   :  { %3907 = vmatpush1.bf16.msra.mxu0 %v9675_v25  ;;  %v9751_v25 = vld [vmem:[%s13282_s9 + $0x244] ss:$8 sps:$4 sm:$0xff]  }
 0x85e   :  { %3908 = vmatprep.subr.bf16.mxu0 %v9680_v31  ;;  %v9754_v31 = vld [vmem:[%s13282_s9 + $0x254] ss:$8 sps:$4 sm:$0xff]  }
 0x861   :  { %3909 = vmatpush1.bf16.msra.mxu0 %v9678_v13  ;;  %v9749_v13 = vld [vmem:[%s13282_s9 + $0x240] ss:$8 sps:$4 sm:$0xff]  }
 0x862   :  { %3910 = vmatprep.subr.bf16.mxu0 %v9683_v38  ;;  %v9757_v38 = vld [vmem:[%s13282_s9 + $0x264] ss:$8 sps:$4 sm:$0xff]  }
 0x865   :  { %3911 = vmatpush1.bf16.msra.mxu0 %v9681_v39  ;;  %v9752_v39 = vld [vmem:[%s13282_s9 + $0x250] ss:$8 sps:$4 sm:$0xff]  }
 0x866   :  { %3912 = vmatprep.subr.bf16.mxu0 %v9686_v14  ;;  %v9755_v14 = vld [vmem:[%s13282_s9 + $0x260] ss:$8 sps:$4 sm:$0xff]  }
 0x869   :  { %3913 = vmatpush1.bf16.msra.mxu0 %v9684_v40  ;;  %v9760_v40 = vld [vmem:[%s13282_s9 + $0x274] ss:$8 sps:$4 sm:$0xff]  }
 0x86a   :  { %4085 = vmatprep.subr.bf16.mxu0 %v9689_v43  ;;  %v9758_v43 = vld [vmem:[%s13282_s9 + $0x270] ss:$8 sps:$4 sm:$0xff]  }
 0x8f7   :  { %v12332_v23 = vpop.f32.mrb[68].mxu0 }
 0x8f8   :  { %v3592_v18 = vpop.f32.mrb[69].mxu0 }
 0x8f9   :  { %v12334_v63 = vpop.f32.mrb[70].mxu0 }
 0x8fa   :  { %v3599_v26 = vpack.c.bf16 %v12334_v63, %v12332_v23  ;;  %v3596_v27 = vpop.f32.mrb[71].mxu0  ;;  %v9761_v23 = vld [vmem:[%s13282_s9 + $0x280] ss:$8 sps:$4 sm:$0xff]   ;;  %v9764_v63 = vld [vmem:[%s13282_s9 + $0x290] ss:$8 sps:$4 sm:$0xff]  }
 0x8fb   :  { %v3600_v56 = vpack.c.bf16 %v3596_v27, %v3592_v18  ;;  %v9766_v18 = vld [vmem:[%s13282_s9 + $0x294] ss:$8 sps:$4 sm:$0xff]   ;;  %v9767_v27 = vld [vmem:[%s13282_s9 + $0x2a0] ss:$8 sps:$4 sm:$0xff]  }
 0x8ff   :  { %v3678_v8 = vpop.f32.mrb[72].mxu0 }
 0x900   :  { %v3680_v33 = vpop.f32.mrb[73].mxu0 }
 0x901   :  { %v3682_v29 = vpop.f32.mrb[74].mxu0 }
 0x902   :  { %v3687_v53 = vpack.c.bf16 %v3682_v29, %v3678_v8  ;;  %v3684_v20 = vpop.f32.mrb[75].mxu0  ;;  %v9770_v8 = vld [vmem:[%s13282_s9 + $0x2b0] ss:$8 sps:$4 sm:$0xff]   ;;  %v9773_v29 = vld [vmem:[%s13282_s9 + $0x2c0] ss:$8 sps:$4 sm:$0xff]  }
 0x903   :  { %v3688_v57 = vpack.c.bf16 %v3684_v20, %v3680_v33  ;;  %v9775_v33 = vld [vmem:[%s13282_s9 + $0x2c4] ss:$8 sps:$4 sm:$0xff]   ;;  %v9776_v20 = vld [vmem:[%s13282_s9 + $0x2d0] ss:$8 sps:$4 sm:$0xff]  }
 0x905   :  { %3914 = vmatprep.mubr.bf16.mxu0 %v3688_v57  ;;  %v9781_v57 = vld [vmem:[%s13282_s9 + $0x2e4] ss:$8 sps:$4 sm:$0xff]  }
 0x906   :  { %3915 = vmatmul.mubr.bf16.vlgmr.msra.gmra.mrb[76].mxu0 %v3687_v53  ;;  %v9778_v53 = vld [vmem:[%s13282_s9 + $0x2d4] ss:$8 sps:$4 sm:$0xff]  }
 0x907   :  { %4086 = vmatpush1.bf16.msra.mxu0 %v9687_v60  ;;  %4117 = vmatprep.mubr.bf16.mxu0 %v3600_v56  ;;  %v9772_v56 = vld [vmem:[%s13282_s9 + $0x2b4] ss:$8 sps:$4 sm:$0xff]   ;;  %v9779_v60 = vld [vmem:[%s13282_s9 + $0x2e0] ss:$8 sps:$4 sm:$0xff]  }
 0x908   :  { %4087 = vmatprep.subr.bf16.mxu0 %v9692_v6  ;;  %v9784_v6 = vld [vmem:[%s13282_s9 + $0x2f4] ss:$8 sps:$4 sm:$0xff]  }
 0x90b   :  { %4088 = vmatpush1.bf16.msra.mxu0 %v9690_v52  ;;  %v9782_v52 = vld [vmem:[%s13282_s9 + $0x2f0] ss:$8 sps:$4 sm:$0xff]  }
 0x90c   :  { %4089 = vmatprep.subr.bf16.mxu0 %v9695_v62  ;;  %v9787_v62 = vld [vmem:[%s13282_s9 + $0x304] ss:$8 sps:$4 sm:$0xff]  }
 0x90f   :  { %4090 = vmatpush1.bf16.msra.mxu0 %v9693_v4  ;;  %v12542_v4 = vpop.f32.mrb[72].mxu1 }
 0x910   :  { %4091 = vmatprep.subr.bf16.mxu0 %v9698_v21  ;;  %v12544_v21 = vpop.f32.mrb[73].mxu1 }
 0x913   :  { %4092 = vmatpush1.bf16.msra.mxu0 %v9696_v32  ;;  %v12546_v32 = vpop.f32.mrb[74].mxu1 }
 0x914   :  { %4093 = vmatprep.subr.bf16.mxu0 %v9701_v41  ;;  %v4478_v41 = vpack.c.bf16 %v12546_v32, %v12542_v4 }
 0x917   :  { %4094 = vmatpush1.bf16.msra.mxu0 %v9699_v47  ;;  %v12550_v47 = vpop.f32.mrb[75].mxu1 }
 0x918   :  { %4095 = vmatprep.subr.bf16.mxu0 %v9704_v37  ;;  %v4479_v37 = vpack.c.bf16 %v12550_v47, %v12544_v21  ;;  %v9794_v21 = vld [vmem:[%s13282_s9 + $0x330] ss:$8 sps:$4 sm:$0xff]   ;;  %v9799_v47 = vld [vmem:[%s13282_s9 + $0x344] ss:$8 sps:$4 sm:$0xff]  }
 0x91b   :  { %4096 = vmatpush1.bf16.msra.mxu0 %v9702_v61  ;;  %v4736_v61 = vld [vmem:[%s13286_s13 + $0x80] sm:$0xff] }
 0x91c   :  { %4097 = vmatprep.subr.bf16.mxu0 %v9707_v44  ;;  %v4737_v44 = vld [vmem:[%s13286_s13 + $0x88] sm:$0xff] }
 0x91f   :  { %4098 = vmatpush1.bf16.msra.mxu0 %v9705_v35  ;;  %v4720_v35 = vld [vmem:[%s13286_s13] sm:$0xff] }
 0x920   :  { %4099 = vmatprep.subr.bf16.mxu0 %v9710_v24  ;;  %v8959_v24 = vpack.c.bf16 %v4737_v44, %v4736_v61  ;;  %v9790_v61 = vld [vmem:[%s13282_s9 + $0x314] ss:$8 sps:$4 sm:$0xff]   ;;  %v9788_v44 = vld [vmem:[%s13282_s9 + $0x310] ss:$8 sps:$4 sm:$0xff]  }
 0x922   :  { %8960 = vmatprep.subr.bf16.mxu1 %v8959_v24 }
 0x923   :  { %4100 = vmatpush1.bf16.msra.mxu0 %v9708_v45  ;;  %v4721_v45 = vld [vmem:[%s13286_s13 + $0x8] sm:$0xff] }
 0x924   :  { %4101 = vmatprep.subr.bf16.mxu0 %v9713_v50  ;;  %v4738_v50 = vld [vmem:[%s13286_s13 + $0x90] sm:$0xff] }
 0x927   :  { %4102 = vmatpush1.bf16.msra.mxu0 %v9711_v46  ;;  %v4739_v46 = vld [vmem:[%s13286_s13 + $0x98] sm:$0xff] }
 0x928   :  { %4103 = vmatprep.subr.bf16.mxu0 %v9716_v55  ;;  %v12572_v55 = vpack.c.bf16 %v4721_v45, %v4720_v35  ;;  %v9793_v35 = vld [vmem:[%s13282_s9 + $0x324] ss:$8 sps:$4 sm:$0xff]   ;;  %v9796_v45 = vld [vmem:[%s13282_s9 + $0x334] ss:$8 sps:$4 sm:$0xff]  }
 0x92a   :  { %8962 = vmatpush3.bf16.msra.mxu1 %v12572_v55 }
 0x92b   :  { %4104 = vmatpush1.bf16.msra.mxu0 %v9714_v49  ;;  %v12574_v49 = vpack.c.bf16 %v4739_v46, %v4738_v50  ;;  %v9802_v50 = vld [vmem:[%s13282_s9 + $0x354] ss:$8 sps:$4 sm:$0xff]   ;;  %v9800_v46 = vld [vmem:[%s13282_s9 + $0x350] ss:$8 sps:$4 sm:$0xff]  }
 0x92c   :  { %4105 = vmatprep.subr.bf16.mxu0 %v9719_v34  ;;  %v4722_v34 = vld [vmem:[%s13286_s13 + $0x10] sm:$0xff] }
 0x92d   :  { %8964 = vmatprep.subr.bf16.mxu1 %v12574_v49 }
 0x92f   :  { %4106 = vmatpush1.bf16.msra.mxu0 %v9717_v42  ;;  %v4723_v42 = vld [vmem:[%s13286_s13 + $0x18] sm:$0xff] }
 0x930   :  { %4107 = vmatprep.subr.bf16.mxu0 %v9722_v59  ;;  %v4740_v59 = vld [vmem:[%s13286_s13 + $0xa0] sm:$0xff] }
 0x933   :  { %4108 = vmatpush1.bf16.msra.mxu0 %v9720_v3  ;;  %v4741_v3 = vld [vmem:[%s13286_s13 + $0xa8] sm:$0xff] }
 0x934   :  { %4109 = vmatprep.subr.bf16.mxu0 %v9725_v58  ;;  %v12589_v58 = vpack.c.bf16 %v4723_v42, %v4722_v34  ;;  %v9805_v34 = vld [vmem:[%s13282_s9 + $0x364] ss:$8 sps:$4 sm:$0xff]   ;;  %v9803_v42 = vld [vmem:[%s13282_s9 + $0x360] ss:$8 sps:$4 sm:$0xff]  }
 0x936   :  { %8966 = vmatpush3.bf16.msra.mxu1 %v12589_v58 }
 0x937   :  { %4110 = vmatpush1.bf16.msra.mxu0 %v9723_v48  ;;  %v12592_v48 = vpack.c.bf16 %v4741_v3, %v4740_v59  ;;  %v9808_v59 = vld [vmem:[%s13282_s9 + $0x374] ss:$8 sps:$4 sm:$0xff]   ;;  %v9806_v3 = vld [vmem:[%s13282_s9 + $0x370] ss:$8 sps:$4 sm:$0xff]  }
 0x938   :  { %4111 = vmatprep.subr.bf16.mxu0 %v9728_v12  ;;  %v4724_v12 = vld [vmem:[%s13286_s13 + $0x20] sm:$0xff] }
 0x939   :  { %8968 = vmatprep.subr.bf16.mxu1 %v12592_v48 }
 0x93b   :  { %4112 = vmatpush1.bf16.msra.mxu0 %v9726_v19  ;;  %v4725_v19 = vld [vmem:[%s13286_s13 + $0x28] sm:$0xff] }
 0x93c   :  { %4113 = vmatprep.subr.bf16.mxu0 %v9731_v2  ;;  %v4742_v2 = vld [vmem:[%s13286_s13 + $0xb0] sm:$0xff] }
 0x93f   :  { %4114 = vmatpush1.bf16.msra.mxu0 %v9729_v11  ;;  %v4743_v11 = vld [vmem:[%s13286_s13 + $0xb8] sm:$0xff] }
 0x940   :  { %4115 = vmatprep.subr.bf16.mxu0 %v9734_v15  ;;  %v12607_v15 = vpack.c.bf16 %v4725_v19, %v4724_v12  ;;  %v9811_v12 = vld [vmem:[%s13282_s9 + $0x384] ss:$8 sps:$4 sm:$0xff]   ;;  %v9809_v19 = vld [vmem:[%s13282_s9 + $0x380] ss:$8 sps:$4 sm:$0xff]  }
 0x942   :  { %8970 = vmatpush3.bf16.msra.mxu1 %v12607_v15 }
 0x943   :  { %4116 = vmatpush1.bf16.msra.mxu0 %v9732_v7  ;;  %v12610_v7 = vpack.c.bf16 %v4743_v11, %v4742_v2  ;;  %v9814_v2 = vld [vmem:[%s13282_s9 + $0x394] ss:$8 sps:$4 sm:$0xff]   ;;  %v9812_v11 = vld [vmem:[%s13282_s9 + $0x390] ss:$8 sps:$4 sm:$0xff]  }
 0x944   :  { %4139 = vmatprep.subr.bf16.mxu0 %v12202_v51  ;;  %v9737_v51 = vld [vmem:[%s13282_s9 + $0x200] ss:$8 sps:$4 sm:$0xff]  }
 0x945   :  { %8972 = vmatprep.subr.bf16.mxu1 %v12610_v7 }
 0x946   :  { %4118 = vmatmul.mubr.bf16.vlgmr.msra.gmra.mrb[76].mxu0 %v3599_v26  ;;  %v9769_v26 = vld [vmem:[%s13282_s9 + $0x2a4] ss:$8 sps:$4 sm:$0xff]  }
 0x947   :  { %4140 = vmatpush1.bf16.msra.mxu0 %v12200_v36  ;;  %4171 = vmatprep.mubr.bf16.mxu0 %v10419_v0  ;;  %v9742_v36 = vld [vmem:[%s13282_s9 + $0x214] ss:$8 sps:$4 sm:$0xff]  }
 0x948   :  { %4141 = vmatprep.subr.bf16.mxu0 %v12206_v28  ;;  %v9740_v28 = vld [vmem:[%s13282_s9 + $0x210] ss:$8 sps:$4 sm:$0xff]  }
 0x94b   :  { %4142 = vmatpush1.bf16.msra.mxu0 %v12204_v54  ;;  %v9745_v54 = vld [vmem:[%s13282_s9 + $0x224] ss:$8 sps:$4 sm:$0xff]  }
 0x94c   :  { %4377 = vmatprep.subr.bf16.mxu0 %v9739_v30  ;;  %v4726_v30 = vld [vmem:[%s13286_s13 + $0x30] sm:$0xff] }
 0x94e   :  { %8128 = vmatmul.mubr.msk.bf16.vlgmr.msra.gmra.mrb[80].mxu0 %vm3552_vm2, %v9735_v5  ;;  %v4727_v5 = vld [vmem:[%s13286_s13 + $0x38] sm:$0xff] }
 0x94f   :  { %4378 = vmatpush1.bf16.msra.mxu0 %v9737_v51  ;;  %v4744_v51 = vld [vmem:[%s13286_s13 + $0xc0] sm:$0xff] }
 0x950   :  { %4379 = vmatprep.subr.bf16.mxu0 %v9742_v36  ;;  %v4745_v36 = vld [vmem:[%s13286_s13 + $0xc8] sm:$0xff] }
 0x953   :  { %4380 = vmatpush1.bf16.msra.mxu0 %v9740_v28  ;;  %v12625_v28 = vpack.c.bf16 %v4727_v5, %v4726_v30  ;;  %v9817_v30 = vld [vmem:[%s13282_s9 + $0x3a4] ss:$8 sps:$4 sm:$0xff]   ;;  %v9815_v5 = vld [vmem:[%s13282_s9 + $0x3a0] ss:$8 sps:$4 sm:$0xff]  }
 0x954   :  { %4381 = vmatprep.subr.bf16.mxu0 %v9745_v54  ;;  %v12628_v54 = vpack.c.bf16 %v4745_v36, %v4744_v51  ;;  %v9820_v51 = vld [vmem:[%s13282_s9 + $0x3b4] ss:$8 sps:$4 sm:$0xff]   ;;  %v9818_v36 = vld [vmem:[%s13282_s9 + $0x3b0] ss:$8 sps:$4 sm:$0xff]  }
 0x955   :  { %8974 = vmatpush3.bf16.msra.mxu1 %v12625_v28 }
 0x956   :  { %8976 = vmatprep.subr.bf16.mxu1 %v12628_v54 }
 0x957   :  { %4382 = vmatpush1.bf16.msra.mxu0 %v9743_v9  ;;  %v4728_v9 = vld [vmem:[%s13286_s13 + $0x40] sm:$0xff] }
 0x958   :  { %4383 = vmatprep.subr.bf16.mxu0 %v9748_v17  ;;  %v4729_v17 = vld [vmem:[%s13286_s13 + $0x48] sm:$0xff] }
 0x95b   :  { %4384 = vmatpush1.bf16.msra.mxu0 %v9746_v22  ;;  %v4746_v22 = vld [vmem:[%s13286_s13 + $0xd0] sm:$0xff] }
 0x95c   :  { %4385 = vmatprep.subr.bf16.mxu0 %v9751_v25  ;;  %v4747_v25 = vld [vmem:[%s13286_s13 + $0xd8] sm:$0xff] }
 0x95f   :  { %4386 = vmatpush1.bf16.msra.mxu0 %v9749_v13  ;;  %v12643_v13 = vpack.c.bf16 %v4729_v17, %v4728_v9  ;;  %v9823_v9 = vld [vmem:[%s13282_s9 + $0x3c4] ss:$8 sps:$4 sm:$0xff]   ;;  %v9821_v17 = vld [vmem:[%s13282_s9 + $0x3c0] ss:$8 sps:$4 sm:$0xff]  }
 0x960   :  { %4387 = vmatprep.subr.bf16.mxu0 %v9754_v31  ;;  %v12646_v31 = vpack.c.bf16 %v4747_v25, %v4746_v22  ;;  %v9826_v22 = vld [vmem:[%s13282_s9 + $0x3d4] ss:$8 sps:$4 sm:$0xff]   ;;  %v9824_v25 = vld [vmem:[%s13282_s9 + $0x3d0] ss:$8 sps:$4 sm:$0xff]  }
 0x961   :  { %8978 = vmatpush3.bf16.msra.mxu1 %v12643_v13 }
 0x962   :  { %8980 = vmatprep.subr.bf16.mxu1 %v12646_v31 }
 0x963   :  { %4388 = vmatpush1.bf16.msra.mxu0 %v9752_v39  ;;  %v4730_v39 = vld [vmem:[%s13286_s13 + $0x50] sm:$0xff] }
 0x964   :  { %4389 = vmatprep.subr.bf16.mxu0 %v9757_v38  ;;  %v4731_v38 = vld [vmem:[%s13286_s13 + $0x58] sm:$0xff] }
 0x967   :  { %4390 = vmatpush1.bf16.msra.mxu0 %v9755_v14  ;;  %v4748_v14 = vld [vmem:[%s13286_s13 + $0xe0] sm:$0xff] }
 0x968   :  { %4391 = vmatprep.subr.bf16.mxu0 %v9760_v40  ;;  %v4749_v40 = vld [vmem:[%s13286_s13 + $0xe8] sm:$0xff] }
 0x96b   :  { %4392 = vmatpush1.bf16.msra.mxu0 %v9758_v43  ;;  %v12661_v43 = vpack.c.bf16 %v4731_v38, %v4730_v39  ;;  %v9829_v39 = vld [vmem:[%s13282_s9 + $0x3e4] ss:$8 sps:$4 sm:$0xff]   ;;  %v9827_v38 = vld [vmem:[%s13282_s9 + $0x3e0] ss:$8 sps:$4 sm:$0xff]  }
 0x96c   :  { %4393 = vmatprep.subr.bf16.mxu0 %v9763_v10  ;;  %v12664_v10 = vpack.c.bf16 %v4749_v40, %v4748_v14  ;;  %v9832_v14 = vld [vmem:[%s13282_s9 + $0x3f4] ss:$8 sps:$4 sm:$0xff]   ;;  %v9830_v40 = vld [vmem:[%s13282_s9 + $0x3f0] ss:$8 sps:$4 sm:$0xff]  }
 0x96d   :  { %8982 = vmatpush3.bf16.msra.mxu1 %v12661_v43 }
 0x96e   :  { %8984 = vmatprep.subr.bf16.mxu1 %v12664_v10 }
 0x96f   :  { %4394 = vmatpush1.bf16.msra.mxu0 %v9761_v23  ;;  %v4732_v23 = vld [vmem:[%s13286_s13 + $0x60] sm:$0xff] }
 0x970   :  { %4395 = vmatprep.subr.bf16.mxu0 %v9766_v18  ;;  %v4733_v18 = vld [vmem:[%s13286_s13 + $0x68] sm:$0xff] }
 0x973   :  { %4396 = vmatpush1.bf16.msra.mxu0 %v9764_v63  ;;  %v4750_v63 = vld [vmem:[%s13286_s13 + $0xf0] sm:$0xff] }
 0x974   :  { %4397 = vmatprep.subr.bf16.mxu0 %v9769_v26  ;;  %v4751_v26 = vld [vmem:[%s13286_s13 + $0xf8] sm:$0xff] }
 0x977   :  { %4398 = vmatpush1.bf16.msra.mxu0 %v9767_v27  ;;  %v12679_v27 = vpack.c.bf16 %v4733_v18, %v4732_v23 }
 0x978   :  { %4399 = vmatprep.subr.bf16.mxu0 %v9772_v56  ;;  %v12682_v56 = vpack.c.bf16 %v4751_v26, %v4750_v63 }
 0x979   :  { %8986 = vmatpush3.bf16.msra.mxu1 %v12679_v27 }
 0x97a   :  { %8988 = vmatprep.subr.bf16.mxu1 %v12682_v56 }
 0x97b   :  { %4400 = vmatpush1.bf16.msra.mxu0 %v9770_v8  ;;  %v4734_v8 = vld [vmem:[%s13286_s13 + $0x70] sm:$0xff] }
 0x97c   :  { %4401 = vmatprep.subr.bf16.mxu0 %v9775_v33  ;;  %v4735_v33 = vld [vmem:[%s13286_s13 + $0x78] sm:$0xff] }
 0x97f   :  { %4402 = vmatpush1.bf16.msra.mxu0 %v9773_v29  ;;  %v12691_v29 = vpack.c.bf16 %v4735_v33, %v4734_v8 }
 0x980   :  { %4403 = vmatprep.subr.bf16.mxu0 %v9778_v53 }
 0x981   :  { %8990 = vmatpush3.bf16.msra.mxu1 %v12691_v29 }
 0x982   :  { %8992 = vmatprep.subr.bf16.mxu1 %v8959_v24  ;;  %v9791_v24 = vld [vmem:[%s13282_s9 + $0x320] ss:$8 sps:$4 sm:$0xff]  }
 0x983   :  { %4404 = vmatpush1.bf16.msra.mxu0 %v9776_v20 }
 0x984   :  { %4405 = vmatprep.subr.bf16.mxu0 %v9781_v57 }
 0x987   :  { %4406 = vmatpush1.bf16.msra.mxu0 %v9779_v60 }
 0x988   :  { %4407 = vmatprep.subr.bf16.mxu0 %v9784_v6 }
 0x98b   :  { %4408 = vmatpush1.bf16.msra.mxu0 %v9782_v52 }
 0x98c   :  { %4673 = vmatprep.subr.bf16.mxu0 %v9787_v62  ;;  %v9785_v62 = vld [vmem:[%s13282_s9 + $0x300] ss:$8 sps:$4 sm:$0xff]  }
 0xa21   :  { %v4173_v53 = vpop.f32.mrb[80].mxu0 }
 0xa22   :  { %v4175_v20 = vpop.f32.mrb[81].mxu0 }
 0xa23   :  { %v4177_v57 = vpop.f32.mrb[82].mxu0 }
 0xa24   :  { %v4182_v60 = vpack.c.bf16 %v4177_v57, %v4173_v53  ;;  %v4179_v6 = vpop.f32.mrb[83].mxu0 }
 0xa25   :  { %v4183_v52 = vpack.c.bf16 %v4179_v6, %v4175_v20 }
 0xa27   :  { %4409 = vmatprep.mubr.bf16.mxu0 %v4183_v52 }
 0xa28   :  { %4410 = vmatmul.mubr.bf16.vlgmr.msra.gmra.mrb[76].mxu0 %v4182_v60 }
 0xa29   :  { %4674 = vmatpush1.bf16.msra.mxu0 %v9785_v62  ;;  %4705 = vmatprep.mubr.bf16.mxu0 %v4479_v37  ;;  %v9797_v37 = vld [vmem:[%s13282_s9 + $0x340] ss:$8 sps:$4 sm:$0xff]  }
 0xa2a   :  { %4675 = vmatprep.subr.bf16.mxu0 %v9790_v61 }
 0xa2d   :  { %4676 = vmatpush1.bf16.msra.mxu0 %v9788_v44 }
 0xa2e   :  { %4677 = vmatprep.subr.bf16.mxu0 %v9793_v35 }
 0xa31   :  { %4678 = vmatpush1.bf16.msra.mxu0 %v9791_v24 }
 0xa32   :  { %4679 = vmatprep.subr.bf16.mxu0 %v9796_v45 }
 0xa35   :  { %4680 = vmatpush1.bf16.msra.mxu0 %v9794_v21 }
 0xa36   :  { %4681 = vmatprep.subr.bf16.mxu0 %v9799_v47 }
 0xa39   :  { %4682 = vmatpush1.bf16.msra.mxu0 %v9797_v37 }
 0xa3a   :  { %4683 = vmatprep.subr.bf16.mxu0 %v9802_v50 }
 0xa3d   :  { %4684 = vmatpush1.bf16.msra.mxu0 %v9800_v46 }
 0xa3e   :  { %4685 = vmatprep.subr.bf16.mxu0 %v9805_v34 }
 0xa41   :  { %4686 = vmatpush1.bf16.msra.mxu0 %v9803_v42 }
 0xa42   :  { %4687 = vmatprep.subr.bf16.mxu0 %v9808_v59 }
 0xa45   :  { %4688 = vmatpush1.bf16.msra.mxu0 %v9806_v3 }
 0xa46   :  { %4689 = vmatprep.subr.bf16.mxu0 %v9811_v12 }
 0xa49   :  { %4690 = vmatpush1.bf16.msra.mxu0 %v9809_v19 }
 0xa4a   :  { %4691 = vmatprep.subr.bf16.mxu0 %v9814_v2 }
 0xa4d   :  { %4692 = vmatpush1.bf16.msra.mxu0 %v9812_v11 }
 0xa4e   :  { %4693 = vmatprep.subr.bf16.mxu0 %v9817_v30 }
 0xa51   :  { %4694 = vmatpush1.bf16.msra.mxu0 %v9815_v5 }
 0xa52   :  { %4695 = vmatprep.subr.bf16.mxu0 %v9820_v51 }
 0xa55   :  { %4696 = vmatpush1.bf16.msra.mxu0 %v9818_v36 }
 0xa56   :  { %4697 = vmatprep.subr.bf16.mxu0 %v9823_v9 }
 0xa59   :  { %4698 = vmatpush1.bf16.msra.mxu0 %v9821_v17 }
 0xa5a   :  { %4699 = vmatprep.subr.bf16.mxu0 %v9826_v22 }
 0xa5d   :  { %4700 = vmatpush1.bf16.msra.mxu0 %v9824_v25  ;;  %v4929_v25 = vld [vmem:[#allocation9] sm:$0x1] }
 0xa5e   :  { %4701 = vmatprep.subr.bf16.mxu0 %v9829_v39 }
 0xa61   :  { %4702 = vmatpush1.bf16.msra.mxu0 %v9827_v38 }
 0xa62   :  { %4703 = vmatprep.subr.bf16.mxu0 %v9832_v14 }
 0xa65   :  { %4704 = vmatpush1.bf16.msra.mxu0 %v9830_v40  ;;  %v4933_v40 = vld [vmem:[#allocation10] sm:$0x1] }
 0xa68   :  { %4706 = vmatmul.mubr.bf16.vlgmr.msra.gmra.mrb[76].mxu0 %v4478_v41 }
 0xa69   :  { %5725 = vmatprep.mubr.bf16.mxu0 %v10419_v0 }
 0xb3b   :  { %v12795_v23 = vpop.f32.mrb[76].mxu0 }
 0xb3c   :  { %v12797_v18 = vpop.f32.mrb[77].mxu0  ;;  %v4836_v32 = vmul.f32 %v12795_v23, %v12795_v23 }
 0xb3d   :  { %v12799_v63 = vpop.f32.mrb[78].mxu0  ;;  %4816 = vmatprep.mubr.f32.mxu1 %v12797_v18  ;;  %v4837_v4 = vmul.f32 %v12797_v18, %v12797_v18 }
 0xb3e   :  { %v12802_v26 = vpop.f32.mrb[79].mxu0  ;;  %4817 = vmatmul.mubr.f32.vlgmr.msra.gmra.mrb[76].mxu1 %v12795_v23 }
 0xb3f   :  { %8994 = vmatpush3.bf16.msra.mxu1 %v12572_v55  ;;  %4821 = vmatprep.mubr.f32.mxu1 %v12802_v26  ;;  %v4839_v41 = vmul.f32 %v12802_v26, %v12802_v26  ;;  %v4838_v55 = vmul.f32 %v12799_v63, %v12799_v63 }
 0xb40   :  { %8996 = vmatprep.subr.bf16.mxu1 %v12574_v49  ;;  %v4937_v49 = vld [vmem:[#allocation12 + $0x8] sm:$0xff] }
 0xb42   :  { %4822 = vmatmul.mubr.f32.gmra.mrb[78].mxu1 %v12799_v63 }
 0xb43   :  { %8998 = vmatpush3.bf16.msra.mxu1 %v12589_v58  ;;  %4904 = vmatprep.mubr.f32.mxu1 %v4837_v4  ;;  %v4939_v58 = vld [vmem:[#allocation12 + $0x18] sm:$0xff] }
 0xb44   :  { %9000 = vmatprep.subr.bf16.mxu1 %v12592_v48  ;;  %v4936_v48 = vld [vmem:[#allocation12] sm:$0xff] }
 0xb47   :  { %9002 = vmatpush3.bf16.msra.mxu1 %v12607_v15  ;;  %v9023_v15 = vpack.c.bf16 %v4939_v58, %v4937_v49 }
 0xb48   :  { %9004 = vmatprep.subr.bf16.mxu1 %v12610_v7  ;;  %v4938_v7 = vld [vmem:[#allocation12 + $0x10] sm:$0xff] }
 0xb4b   :  { %9006 = vmatpush3.bf16.msra.mxu1 %v12625_v28  ;;  %v4941_v28 = vld [vmem:[#allocation12 + $0x28] sm:$0xff] }
 0xb4c   :  { %9008 = vmatprep.subr.bf16.mxu1 %v12628_v54  ;;  %v4943_v54 = vld [vmem:[#allocation12 + $0x38] sm:$0xff] }
 0xb4f   :  { %9010 = vmatpush3.bf16.msra.mxu1 %v12643_v13  ;;  %v9025_v13 = vpack.c.bf16 %v4938_v7, %v4936_v48 }
 0xb50   :  { %9012 = vmatprep.subr.bf16.mxu1 %v12646_v31  ;;  %v9027_v31 = vpack.c.bf16 %v4943_v54, %v4941_v28 }
 0xb53   :  { %9014 = vmatpush3.bf16.msra.mxu1 %v12661_v43  ;;  %v4940_v43 = vld [vmem:[#allocation12 + $0x20] sm:$0xff] }
 0xb54   :  { %9016 = vmatprep.subr.bf16.mxu1 %v12664_v10  ;;  %v4942_v10 = vld [vmem:[#allocation12 + $0x30] sm:$0xff] }
 0xb57   :  { %9018 = vmatpush3.bf16.msra.mxu1 %v12679_v27  ;;  %v9029_v27 = vpack.c.bf16 %v4942_v10, %v4940_v43 }
 0xb58   :  { %9020 = vmatprep.subr.bf16.mxu1 %v12682_v56 }
 0xb5b   :  { %9022 = vmatpush3.bf16.msra.mxu1 %v12691_v29 }
 0xb5c   :  { %9024 = vmatprep.subr.bf16.mxu1 %v9023_v15 }
 0xb5e   :  { %4905 = vmatmul.mubr.f32.vlgmr.msra.gmra.mrb[80].mxu1 %v4836_v32 }
 0xb5f   :  { %4909 = vmatprep.mubr.f32.mxu1 %v4839_v41  ;;  %9026 = vmatpush1.bf16.msra.mxu1 %v9025_v13 }
 0xb60   :  { %9028 = vmatprep.subr.bf16.mxu1 %v9027_v31 }
 0xb62   :  { %4910 = vmatmul.mubr.f32.gmra.mrb[82].mxu1 %v4838_v55 }
 0xb63   :  { %5011 = vmatprep.mubr.f32.mxu1 %v10420_v1  ;;  %9030 = vmatpush1.bf16.msra.mxu1 %v9029_v27 }
 0xb64   :  { %9032 = vmatprep.subr.bf16.mxu1 %v9023_v15 }
 0xc11   :  { %v8685_v56 = vpop.f32.mrb[76].mxu1 }
 0xc12   :  { %v8686_v8 = vpop.f32.mrb[77].mxu1 }
 0xc13   :  { %v8687_v33 = vadd.f32 %v8686_v8, %v8685_v56 }
 0xc15   :  { %v8688_v29 = vpop.f32.mrb[78].mxu1  ;;  %v4827_v57 = vsel %vm3552_vm2, %v8687_v33, 0.0 }
 0xc16   :  { %v8689_v53 = vpop.f32.mrb[79].mxu1 }
 0xc17   :  { %v8690_v20 = vadd.f32 %v8689_v53, %v8688_v29 }
 0xc19   :  { %v4828_v60 = vsel %vm3552_vm2, %v8690_v20, 0.0 }
 0xc1a   :  { %v4829_v6 = vadd.f32 %v4828_v60, %v4827_v57  ;;  %v5126_v60 = vld [vmem:[#allocation15] sm:$0xf] }
 0xc1c   :  { %v4830_v52 = vrot.slane %v4829_v6, 4 }
 0xc1e   :  { %v4831_v62 = vadd.f32 %v4830_v52, %v4829_v6  ;;  %v5689_v6 = vld [vmem:[#allocation15 + $0x8] sm:$0xf]  ;;  %v9835_v52 = vld [vmem:[#allocation13 + $0x104] ss:$8 sps:$4 sm:$0xff]  }
 0xc20   :  { %v4832_v24 = vrot.slane %v4831_v62, 2 }
 0xc22   :  { %v4833_v37 = vadd.f32 %v4832_v24, %v4831_v62  ;;  %v5206_v62 = vld [vmem:[#allocation15 + $0x4] sm:$0xf]  ;;  %v9836_v24 = vld [vmem:[#allocation13 + $0x110] ss:$8 sps:$4 sm:$0xff]  }
 0xc24   :  { %v4834_v42 = vrot.slane %v4833_v37, 1 }
 0xc26   :  { %v4835_v12 = vadd.f32 %v4834_v42, %v4833_v37  ;;  %v9842_v37 = vld [vmem:[#allocation13 + $0x130] ss:$8 sps:$4 sm:$0xff]  }
 0xc27   :  { %v9848_v42 = vld [vmem:[#allocation13 + $0x150] ss:$8 sps:$4 sm:$0xff]  }
 0xc28   :  { %v4924_v11 = vmul.f32 0.0078125, %v4835_v12  ;;  %v9856_v12 = vld [vmem:[#allocation13 + $0x174] ss:$8 sps:$4 sm:$0xff]  }
 0xc2a   :  { %v4926_v51 = vmul.f32 %v4924_v11, %v4924_v11 }
 0xc31   :  { %v8723_v61 = vpop.f32.mrb[80].mxu1 }
 0xc32   :  { %v8724_v44 = vpop.f32.mrb[81].mxu1 }
 0xc33   :  { %v8725_v35 = vadd.f32 %v8724_v44, %v8723_v61  ;;  %v9833_v61 = vld [vmem:[#allocation13 + $0x100] ss:$8 sps:$4 sm:$0xff]   ;;  %v5973_v44 = vld [vmem:[#allocation15 + $0xc] sm:$0xf] }
 0xc35   :  { %v8726_v45 = vpop.f32.mrb[82].mxu1  ;;  %v4915_v50 = vsel %vm3552_vm2, %v8725_v35, 0.0  ;;  %v9838_v35 = vld [vmem:[#allocation13 + $0x114] ss:$8 sps:$4 sm:$0xff]  }
 0xc36   :  { %v8727_v21 = vpop.f32.mrb[83].mxu1 }
 0xc37   :  { %v8728_v47 = vadd.f32 %v8727_v21, %v8726_v45  ;;  %v9841_v45 = vld [vmem:[#allocation13 + $0x124] ss:$8 sps:$4 sm:$0xff]   ;;  %v9839_v21 = vld [vmem:[#allocation13 + $0x120] ss:$8 sps:$4 sm:$0xff]  }
 0xc39   :  { %v4916_v46 = vsel %vm3552_vm2, %v8728_v47, 0.0  ;;  %v9844_v47 = vld [vmem:[#allocation13 + $0x134] ss:$8 sps:$4 sm:$0xff]  }
 0xc3a   :  { %v4917_v34 = vadd.f32 %v4916_v46, %v4915_v50  ;;  %v9847_v50 = vld [vmem:[#allocation13 + $0x144] ss:$8 sps:$4 sm:$0xff]   ;;  %v9845_v46 = vld [vmem:[#allocation13 + $0x140] ss:$8 sps:$4 sm:$0xff]  }
 0xc3c   :  { %v4918_v59 = vrot.slane %v4917_v34, 4 }
 0xc3e   :  { %v4919_v3 = vadd.f32 %v4918_v59, %v4917_v34  ;;  %v9850_v34 = vld [vmem:[#allocation13 + $0x154] ss:$8 sps:$4 sm:$0xff]   ;;  %v9853_v59 = vld [vmem:[#allocation13 + $0x164] ss:$8 sps:$4 sm:$0xff]  }
 0xc40   :  { %v4920_v19 = vrot.slane %v4919_v3, 2 }
 0xc42   :  { %v4921_v2 = vadd.f32 %v4920_v19, %v4919_v3  ;;  %v9851_v3 = vld [vmem:[#allocation13 + $0x160] ss:$8 sps:$4 sm:$0xff]   ;;  %v9854_v19 = vld [vmem:[#allocation13 + $0x170] ss:$8 sps:$4 sm:$0xff]  }
 0xc44   :  { %v4922_v30 = vrot.slane %v4921_v2, 1 }
 0xc46   :  { %v4923_v5 = vadd.f32 %v4922_v30, %v4921_v2  ;;  %v9859_v2 = vld [vmem:[#allocation13 + $0x184] ss:$8 sps:$4 sm:$0xff]   ;;  %v9862_v30 = vld [vmem:[#allocation13 + $0x194] ss:$8 sps:$4 sm:$0xff]  }
 0xc48   :  { %v4925_v36 = vmul.f32 0.0078125, %v4923_v5  ;;  %v9860_v5 = vld [vmem:[#allocation13 + $0x190] ss:$8 sps:$4 sm:$0xff]  }
 0xc4a   :  { %v4927_v9 = vsub.f32 %v4925_v36, %v4926_v51  ;;  %v9865_v51 = vld [vmem:[#allocation13 + $0x1a4] ss:$8 sps:$4 sm:$0xff]   ;;  %v9863_v36 = vld [vmem:[#allocation13 + $0x1a0] ss:$8 sps:$4 sm:$0xff]  }
 0xc4c   :  { %v4928_v17 = vmax.f32 %v4927_v9, 0.0  ;;  %v9868_v9 = vld [vmem:[#allocation13 + $0x1b4] ss:$8 sps:$4 sm:$0xff]  }
 0xc4e   :  { %v4930_v22 = vadd.f32 1e-05, %v4928_v17  ;;  %v9866_v17 = vld [vmem:[#allocation13 + $0x1b0] ss:$8 sps:$4 sm:$0xff]  }
 0xc50   :  { %10091 = vrsqrt.f32 %v4930_v22  ;;  %v9871_v22 = vld [vmem:[#allocation13 + $0x1c4] ss:$8 sps:$4 sm:$0xff]  }
 0xc5a   :  { %v10092_v39 = vpop.eup %10091 }
 0xc5b   :  { %v4932_v38 = vmul.f32 %v10092_v39, %v4929_v25  ;;  %v9869_v25 = vld [vmem:[#allocation13 + $0x1c0] ss:$8 sps:$4 sm:$0xff]   ;;  %v9874_v39 = vld [vmem:[#allocation13 + $0x1d4] ss:$8 sps:$4 sm:$0xff]  }
 0xc5d   :  { %8261 = vmatmul.mubr.msk.f32.vlgmr.msra.gmra.mrb[84].mxu1 %vm3552_vm2, %v4932_v38  ;;  %v4934_v14 = vmul.f32 %v4932_v38, %v4924_v11  ;;  %v9857_v11 = vld [vmem:[#allocation13 + $0x180] ss:$8 sps:$4 sm:$0xff]   ;;  %v9872_v38 = vld [vmem:[#allocation13 + $0x1d0] ss:$8 sps:$4 sm:$0xff]  }
 0xc5e   :  { %9034 = vmatpush1.bf16.msra.mxu1 %v9025_v13  ;;  %5085 = vmatprep.mubr.f32.mxu1 %v10420_v1 }
 0xc5f   :  { %9036 = vmatprep.subr.bf16.mxu1 %v9027_v31  ;;  %v4935_v4 = vsub.f32 %v4933_v40, %v4934_v14  ;;  %v9877_v14 = vld [vmem:[#allocation13 + $0x1e4] ss:$8 sps:$4 sm:$0xff]   ;;  %v9875_v40 = vld [vmem:[#allocation13 + $0x1e0] ss:$8 sps:$4 sm:$0xff]  }
 0xc62   :  { %9038 = vmatpush1.bf16.msra.mxu1 %v9029_v27 }
 0xc65   :  { %8262 = vmatmul.mubr.msk.f32.vlgmr.msra.gmra.mrb[86].mxu1 %vm3552_vm2, %v4935_v4  ;;  %v9880_v4 = vld [vmem:[#allocation13 + $0x1f4] ss:$8 sps:$4 sm:$0xff]  }
 0xc66   :  { %5162 = vmatprep.mubr.bf16.mxu1 %v10419_v0 }
 0xd30   :  { %v5013_v32 = vpop.f32.mrb[84].mxu1 }
 0xd31   :  { %v5095_v41 = vrot.slane %v5013_v32, %v12186_v16  ;;  %v5015_v55 = vpop.f32.mrb[85].mxu1  ;;  %v9878_v32 = vld [vmem:[#allocation13 + $0x1f0] ss:$8 sps:$4 sm:$0xff]  }
 0xd32   :  { %v5099_v49 = vrot.slane %v5015_v55, %v12186_v16 }
 0xd33   :  { %v5100_v58 = vmul.f32 %v5095_v41, %v12795_v23  ;;  %v5102_v48 = vmul.f32 %v5095_v41, %v12799_v63  ;;  %v9883_v41 = vld [vmem:[#allocation13 + $0x4] ss:$8 sps:$4 sm:$0xff]  }
 0xd34   :  { %v5101_v15 = vmul.f32 %v5099_v49, %v12797_v18  ;;  %v5103_v7 = vmul.f32 %v5099_v49, %v12802_v26 }
 0xd38   :  { %v5087_v28 = vpop.f32.mrb[86].mxu1 }
 0xd39   :  { %v5107_v54 = vrot.slane %v5087_v28, %v12186_v16  ;;  %v5089_v13 = vpop.f32.mrb[87].mxu1 }
 0xd3a   :  { %v5111_v31 = vrot.slane %v5089_v13, %v12186_v16 }
 0xd3b   :  { %v5112_v43 = vadd.f32 %v5107_v54, %v5100_v58  ;;  %v5114_v10 = vadd.f32 %v5107_v54, %v5102_v48 }
 0xd3c   :  { %v5113_v27 = vadd.f32 %v5111_v31, %v5101_v15  ;;  %v5115_v56 = vadd.f32 %v5111_v31, %v5103_v7 }
 0xd3d   :  { %v5116_v8 = vmul.f32 0.2, %v5112_v43  ;;  %v5118_v33 = vmul.f32 0.2, %v5114_v10 }
 0xd3e   :  { %v5117_v29 = vmul.f32 0.2, %v5113_v27  ;;  %v5119_v23 = vmul.f32 0.2, %v5115_v56 }
 0xd3f   :  { %v5120_v53 = vmax.f32 %v5112_v43, %v5116_v8  ;;  %v5122_v63 = vmax.f32 %v5114_v10, %v5118_v33  ;;  %v9886_v33 = vld [vmem:[#allocation13 + $0x14] ss:$8 sps:$4 sm:$0xff]  }
 0xd40   :  { %v5121_v20 = vmax.f32 %v5113_v27, %v5117_v29  ;;  %v5123_v18 = vmax.f32 %v5115_v56, %v5119_v23  ;;  %v9881_v27 = vld [vmem:[#allocation13] ss:$8 sps:$4 sm:$0xff]   ;;  %v9884_v23 = vld [vmem:[#allocation13 + $0x10] ss:$8 sps:$4 sm:$0xff]  }
 0xd41   :  { %v5124_v57 = vpack.c.bf16 %v5122_v63, %v5120_v53  ;;  %v9889_v53 = vld [vmem:[#allocation13 + $0x24] ss:$8 sps:$4 sm:$0xff]   ;;  %v9887_v63 = vld [vmem:[#allocation13 + $0x20] ss:$8 sps:$4 sm:$0xff]  }
 0xd42   :  { %v5125_v26 = vpack.c.bf16 %v5123_v18, %v5121_v20  ;;  %v9892_v20 = vld [vmem:[#allocation13 + $0x34] ss:$8 sps:$4 sm:$0xff]   ;;  %v9890_v18 = vld [vmem:[#allocation13 + $0x30] ss:$8 sps:$4 sm:$0xff]  }
 0xd44   :  { %5130 = vmatprep.subr.bf16.mxu1 %v5125_v26  ;;  %5693 = vmatprep.subr.bf16.mxu0 %v5125_v26 }
 0xd45   :  { %5131 = vmatpush1.bf16.msra.mxu1 %v5124_v57  ;;  %5694 = vmatpush1.bf16.msra.mxu0 %v5124_v57 }
 0xd46   :  { %5210 = vmatprep.subr.bf16.mxu1 %v5125_v26  ;;  %5977 = vmatprep.subr.bf16.mxu0 %v5125_v26  ;;  %v9893_v26 = vld [vmem:[#allocation13 + $0x40] ss:$8 sps:$4 sm:$0xff]  }
 0xd48   :  { %8263 = vmatmul.mubr.msk.bf16.vlgmr.msra.gmra.mrb[88].mxu1 %vm3209_vm1, %v5126_v60  ;;  %8329 = vmatmul.mubr.msk.bf16.vlgmr.msra.gmra.mrb[84].mxu0 %vm3209_vm1, %v5689_v6  ;;  %v9898_v60 = vld [vmem:[#allocation13 + $0x54] ss:$8 sps:$4 sm:$0xff]   ;;  %v9896_v6 = vld [vmem:[#allocation13 + $0x50] ss:$8 sps:$4 sm:$0xff]  }
 0xd49   :  { %5211 = vmatpush1.bf16.msra.mxu1 %v5124_v57  ;;  %5978 = vmatpush1.bf16.msra.mxu0 %v5124_v57  ;;  %v9895_v57 = vld [vmem:[#allocation13 + $0x44] ss:$8 sps:$4 sm:$0xff]  }
 0xd4a   :  { %5242 = vmatprep.mubr.bf16.mxu1 %v10419_v0  ;;  %5446 = vmatprep.subr.bf16.mxu1 %v9835_v52  ;;  %v9901_v52 = vld [vmem:[#allocation13 + $0x64] ss:$8 sps:$4 sm:$0xff]  }
 0xd4b   :  { %6009 = vmatprep.mubr.bf16.mxu0 %v10419_v0 }
 0xd50   :  { %8264 = vmatmul.mubr.msk.bf16.vlgmr.msra.gmra.mrb[92].mxu1 %vm3209_vm1, %v5206_v62  ;;  %8362 = vmatmul.mubr.msk.bf16.vlgmr.msra.gmra.mrb[88].mxu0 %vm3209_vm1, %v5973_v44  ;;  %v9899_v62 = vld [vmem:[#allocation13 + $0x60] ss:$8 sps:$4 sm:$0xff]   ;;  %v9902_v44 = vld [vmem:[#allocation13 + $0x70] ss:$8 sps:$4 sm:$0xff]  }
 0xd51   :  { %5447 = vmatpush1.bf16.msra.mxu1 %v9833_v61  ;;  %v9904_v61 = vld [vmem:[#allocation13 + $0x74] ss:$8 sps:$4 sm:$0xff]  }
 0xd52   :  { %5448 = vmatprep.subr.bf16.mxu1 %v9838_v35  ;;  %v9907_v35 = vld [vmem:[#allocation13 + $0x84] ss:$8 sps:$4 sm:$0xff]  }
 0xd55   :  { %5449 = vmatpush1.bf16.msra.mxu1 %v9836_v24  ;;  %v9905_v24 = vld [vmem:[#allocation13 + $0x80] ss:$8 sps:$4 sm:$0xff]  }
 0xd56   :  { %5450 = vmatprep.subr.bf16.mxu1 %v9841_v45  ;;  %v9910_v45 = vld [vmem:[#allocation13 + $0x94] ss:$8 sps:$4 sm:$0xff]  }
 0xd59   :  { %5451 = vmatpush1.bf16.msra.mxu1 %v9839_v21  ;;  %v9908_v21 = vld [vmem:[#allocation13 + $0x90] ss:$8 sps:$4 sm:$0xff]  }
 0xd5a   :  { %5452 = vmatprep.subr.bf16.mxu1 %v9844_v47  ;;  %v9913_v47 = vld [vmem:[#allocation13 + $0xa4] ss:$8 sps:$4 sm:$0xff]  }
 0xd5d   :  { %5453 = vmatpush1.bf16.msra.mxu1 %v9842_v37  ;;  %v9911_v37 = vld [vmem:[#allocation13 + $0xa0] ss:$8 sps:$4 sm:$0xff]  }
 0xd5e   :  { %5454 = vmatprep.subr.bf16.mxu1 %v9847_v50  ;;  %v9916_v50 = vld [vmem:[#allocation13 + $0xb4] ss:$8 sps:$4 sm:$0xff]  }
 0xd61   :  { %5455 = vmatpush1.bf16.msra.mxu1 %v9845_v46  ;;  %v9914_v46 = vld [vmem:[#allocation13 + $0xb0] ss:$8 sps:$4 sm:$0xff]  }
 0xd62   :  { %5456 = vmatprep.subr.bf16.mxu1 %v9850_v34  ;;  %v9919_v34 = vld [vmem:[#allocation13 + $0xc4] ss:$8 sps:$4 sm:$0xff]  }
 0xd65   :  { %5457 = vmatpush1.bf16.msra.mxu1 %v9848_v42  ;;  %v9917_v42 = vld [vmem:[#allocation13 + $0xc0] ss:$8 sps:$4 sm:$0xff]  }
 0xd66   :  { %5458 = vmatprep.subr.bf16.mxu1 %v9853_v59  ;;  %v9922_v59 = vld [vmem:[#allocation13 + $0xd4] ss:$8 sps:$4 sm:$0xff]  }
 0xd69   :  { %5459 = vmatpush1.bf16.msra.mxu1 %v9851_v3  ;;  %v9920_v3 = vld [vmem:[#allocation13 + $0xd0] ss:$8 sps:$4 sm:$0xff]  }
 0xd6a   :  { %5460 = vmatprep.subr.bf16.mxu1 %v9856_v12  ;;  %v9925_v12 = vld [vmem:[#allocation13 + $0xe4] ss:$8 sps:$4 sm:$0xff]  }
 0xd6d   :  { %5461 = vmatpush1.bf16.msra.mxu1 %v9854_v19  ;;  %v9923_v19 = vld [vmem:[#allocation13 + $0xe0] ss:$8 sps:$4 sm:$0xff]  }
 0xd6e   :  { %5462 = vmatprep.subr.bf16.mxu1 %v9859_v2  ;;  %v9928_v2 = vld [vmem:[#allocation13 + $0xf4] ss:$8 sps:$4 sm:$0xff]  }
 0xd71   :  { %5463 = vmatpush1.bf16.msra.mxu1 %v9857_v11 }
 0xd72   :  { %5464 = vmatprep.subr.bf16.mxu1 %v9862_v30  ;;  %v9926_v30 = vld [vmem:[#allocation13 + $0xf0] ss:$8 sps:$4 sm:$0xff]  }
 0xd75   :  { %5465 = vmatpush1.bf16.msra.mxu1 %v9860_v5 }
 0xd76   :  { %5466 = vmatprep.subr.bf16.mxu1 %v9865_v51  ;;  %v9931_v51 = vld [vmem:[#allocation13 + $0x204] ss:$8 sps:$4 sm:$0xff]  }
 0xd79   :  { %5467 = vmatpush1.bf16.msra.mxu1 %v9863_v36 }
 0xd7a   :  { %5468 = vmatprep.subr.bf16.mxu1 %v9868_v9 }
 0xd7d   :  { %5469 = vmatpush1.bf16.msra.mxu1 %v9866_v17  ;;  %v9929_v17 = vld [vmem:[#allocation13 + $0x200] ss:$8 sps:$4 sm:$0xff]  }
 0xd7e   :  { %5470 = vmatprep.subr.bf16.mxu1 %v9871_v22 }
 0xd81   :  { %5471 = vmatpush1.bf16.msra.mxu1 %v9869_v25 }
 0xd82   :  { %5472 = vmatprep.subr.bf16.mxu1 %v9874_v39  ;;  %v9934_v39 = vld [vmem:[#allocation13 + $0x214] ss:$8 sps:$4 sm:$0xff]  }
 0xd85   :  { %5473 = vmatpush1.bf16.msra.mxu1 %v9872_v38  ;;  %v9932_v38 = vld [vmem:[#allocation13 + $0x210] ss:$8 sps:$4 sm:$0xff]  }
 0xd86   :  { %5474 = vmatprep.subr.bf16.mxu1 %v9877_v14  ;;  %v9937_v14 = vld [vmem:[#allocation13 + $0x224] ss:$8 sps:$4 sm:$0xff]  }
 0xd89   :  { %5475 = vmatpush1.bf16.msra.mxu1 %v9875_v40  ;;  %v6272_v40 = vld [vmem:[%s13292_s19 + $0x80] sm:$0xff] }
 0xd8a   :  { %5476 = vmatprep.subr.bf16.mxu1 %v9880_v4  ;;  %v6273_v4 = vld [vmem:[%s13292_s19 + $0x88] sm:$0xff] }
 0xd8d   :  { %5477 = vmatpush1.bf16.msra.mxu1 %v9878_v32  ;;  %v6256_v32 = vld [vmem:[%s13292_s19] sm:$0xff] }
 0xd8e   :  { %5647 = vmatprep.subr.bf16.mxu1 %v9883_v41  ;;  %v12876_v41 = vpack.c.bf16 %v6273_v4, %v6272_v40  ;;  %v9955_v40 = vld [vmem:[#allocation13 + $0x284] ss:$8 sps:$4 sm:$0xff]  }
 0xd90   :  { %9040 = vmatprep.subr.bf16.mxu0 %v12876_v41 }
 0xe1b   :  { %v12853_v55 = vpop.f32.mrb[88].mxu1  ;;  %v12855_v15 = vpop.f32.mrb[84].mxu0 }
 0xe1c   :  { %v5166_v49 = vpop.f32.mrb[89].mxu1  ;;  %v12857_v7 = vpop.f32.mrb[85].mxu0  ;;  %v5171_v25 = vpack.c.bf16 %v12853_v55, %v12853_v55  ;;  %v6257_v55 = vld [vmem:[%s13292_s19 + $0x8] sm:$0xff] }
 0xe1d   :  { %v5168_v58 = vpop.f32.mrb[90].mxu1  ;;  %v5731_v54 = vpop.f32.mrb[86].mxu0  ;;  %v5172_v29 = vpack.c.bf16 %v5166_v49, %v5166_v49  ;;  %v5735_v22 = vpack.c.bf16 %v12857_v7, %v12857_v7  ;;  %v6274_v49 = vld [vmem:[%s13292_s19 + $0x90] sm:$0xff] }
 0xe1e   :  { %v5169_v48 = vpop.f32.mrb[91].mxu1  ;;  %v5732_v31 = vpop.f32.mrb[87].mxu0  ;;  %v6275_v58 = vld [vmem:[%s13292_s19 + $0x98] sm:$0xff] }
 0xe1f   :  { %v12887_v48 = vpack.c.bf16 %v6257_v55, %v6256_v32  ;;  %v12889_v7 = vpack.c.bf16 %v6275_v58, %v6274_v49  ;;  %v6259_v54 = vld [vmem:[%s13292_s19 + $0x18] sm:$0xff]  ;;  %v6277_v31 = vld [vmem:[%s13292_s19 + $0xa8] sm:$0xff] }
 0xe20   :  { %v9953_v32 = vld [vmem:[#allocation13 + $0x280] ss:$8 sps:$4 sm:$0xff]   ;;  %v9958_v55 = vld [vmem:[#allocation13 + $0x294] ss:$8 sps:$4 sm:$0xff]   ;;  %v9956_v49 = vld [vmem:[#allocation13 + $0x290] ss:$8 sps:$4 sm:$0xff]  }
 0xe21   :  { %9042 = vmatpush3.bf16.msra.mxu0 %v12887_v48  ;;  %v9961_v58 = vld [vmem:[#allocation13 + $0x2a4] ss:$8 sps:$4 sm:$0xff]  }
 0xe22   :  { %9044 = vmatprep.subr.bf16.mxu0 %v12889_v7 }
 0xe23   :  { %v5244_v28 = vpop.f32.mrb[92].mxu1  ;;  %v12859_v11 = vpop.f32.mrb[88].mxu0 }
 0xe24   :  { %v5246_v13 = vpop.f32.mrb[93].mxu1  ;;  %v5251_v56 = vpack.c.bf16 %v5244_v28, %v5244_v28  ;;  %v12861_v5 = vpop.f32.mrb[89].mxu0  ;;  %v6258_v28 = vld [vmem:[%s13292_s19 + $0x10] sm:$0xff] }
 0xe25   :  { %v5252_v43 = vpack.c.bf16 %v5246_v13, %v5246_v13  ;;  %v5248_v10 = vpop.f32.mrb[94].mxu1  ;;  %v6015_v36 = vpop.f32.mrb[90].mxu0  ;;  %v6276_v13 = vld [vmem:[%s13292_s19 + $0xa0] sm:$0xff] }
 0xe26   :  { %v5249_v8 = vpop.f32.mrb[95].mxu1  ;;  %v6016_v9 = vpop.f32.mrb[91].mxu0  ;;  %v9935_v10 = vld [vmem:[#allocation13 + $0x220] ss:$8 sps:$4 sm:$0xff]   ;;  %v9952_v36 = vld [vmem:[#allocation13 + $0x274] ss:$8 sps:$4 sm:$0xff]  }
 0xe27   :  { %5478 = vmatprep.mubr.bf16.mxu1 %v5252_v43  ;;  %v12905_v43 = vpack.c.bf16 %v6259_v54, %v6258_v28  ;;  %v6261_v8 = vld [vmem:[%s13292_s19 + $0x28] sm:$0xff]  ;;  %v6286_v9 = vld [vmem:[%s13292_s19 + $0xf0] sm:$0xff]  ;;  %v9964_v54 = vld [vmem:[#allocation13 + $0x2b4] ss:$8 sps:$4 sm:$0xff]  }
 0xe28   :  { %5479 = vmatmul.mubr.bf16.vlgmr.msra.gmra.mrb[96].mxu1 %v5251_v56  ;;  %v6260_v56 = vld [vmem:[%s13292_s19 + $0x20] sm:$0xff]  ;;  %v9959_v28 = vld [vmem:[#allocation13 + $0x2a0] ss:$8 sps:$4 sm:$0xff]  }
 0xe29   :  { %5648 = vmatpush1.bf16.msra.mxu1 %v9881_v27  ;;  %5679 = vmatprep.mubr.bf16.mxu1 %v5172_v29  ;;  %v12908_v27 = vpack.c.bf16 %v6277_v31, %v6276_v13  ;;  %v6278_v29 = vld [vmem:[%s13292_s19 + $0xb0] sm:$0xff]  ;;  %v9962_v13 = vld [vmem:[#allocation13 + $0x2b0] ss:$8 sps:$4 sm:$0xff]  }
 0xe2a   :  { %5649 = vmatprep.subr.bf16.mxu1 %v9886_v33  ;;  %v9940_v33 = vld [vmem:[#allocation13 + $0x234] ss:$8 sps:$4 sm:$0xff]   ;;  %9046 = vmatpush3.bf16.msra.mxu0 %v12905_v43  ;;  %v9967_v31 = vld [vmem:[#allocation13 + $0x2c4] ss:$8 sps:$4 sm:$0xff]  }
 0xe2b   :  { %9048 = vmatprep.subr.bf16.mxu0 %v12908_v27 }
 0xe2d   :  { %5650 = vmatpush1.bf16.msra.mxu1 %v9884_v23  ;;  %v6279_v23 = vld [vmem:[%s13292_s19 + $0xb8] sm:$0xff] }
 0xe2e   :  { %5651 = vmatprep.subr.bf16.mxu1 %v9889_v53  ;;  %v12923_v53 = vpack.c.bf16 %v6261_v8, %v6260_v56  ;;  %v9970_v56 = vld [vmem:[#allocation13 + $0x2d4] ss:$8 sps:$4 sm:$0xff]   ;;  %v9968_v8 = vld [vmem:[#allocation13 + $0x2d0] ss:$8 sps:$4 sm:$0xff]  }
 0xe30   :  { %9050 = vmatpush3.bf16.msra.mxu0 %v12923_v53 }
 0xe31   :  { %5652 = vmatpush1.bf16.msra.mxu1 %v9887_v63  ;;  %v9938_v63 = vld [vmem:[#allocation13 + $0x230] ss:$8 sps:$4 sm:$0xff]  }
 0xe32   :  { %5653 = vmatprep.subr.bf16.mxu1 %v9892_v20  ;;  %v12926_v20 = vpack.c.bf16 %v6279_v23, %v6278_v29  ;;  %v9976_v29 = vld [vmem:[#allocation13 + $0x2f4] ss:$8 sps:$4 sm:$0xff]   ;;  %v9974_v23 = vld [vmem:[#allocation13 + $0x2f0] ss:$8 sps:$4 sm:$0xff]  }
 0xe34   :  { %9052 = vmatprep.subr.bf16.mxu0 %v12926_v20 }
 0xe35   :  { %5654 = vmatpush1.bf16.msra.mxu1 %v9890_v18  ;;  %v6262_v18 = vld [vmem:[%s13292_s19 + $0x30] sm:$0xff] }
 0xe36   :  { %5655 = vmatprep.subr.bf16.mxu1 %v9895_v57  ;;  %v6263_v57 = vld [vmem:[%s13292_s19 + $0x38] sm:$0xff] }
 0xe39   :  { %5656 = vmatpush1.bf16.msra.mxu1 %v9893_v26  ;;  %v9943_v26 = vld [vmem:[#allocation13 + $0x244] ss:$8 sps:$4 sm:$0xff]  }
 0xe3a   :  { %5657 = vmatprep.subr.bf16.mxu1 %v9898_v60  ;;  %v6280_v60 = vld [vmem:[%s13292_s19 + $0xc0] sm:$0xff] }
 0xe3d   :  { %5658 = vmatpush1.bf16.msra.mxu1 %v9896_v6  ;;  %v6281_v6 = vld [vmem:[%s13292_s19 + $0xc8] sm:$0xff] }
 0xe3e   :  { %5659 = vmatprep.subr.bf16.mxu1 %v9901_v52  ;;  %v12941_v52 = vpack.c.bf16 %v6263_v57, %v6262_v18  ;;  %v5734_v18 = vpack.c.bf16 %v12855_v15, %v12855_v15  ;;  %v9977_v57 = vld [vmem:[#allocation13 + $0x300] ss:$8 sps:$4 sm:$0xff]   ;;  %v9991_v15 = vld [vmem:[#allocation13 + $0x344] ss:$8 sps:$4 sm:$0xff]  }
 0xe40   :  { %9054 = vmatpush3.bf16.msra.mxu0 %v12941_v52 }
 0xe41   :  { %5660 = vmatpush1.bf16.msra.mxu1 %v9899_v62  ;;  %v9941_v62 = vld [vmem:[#allocation13 + $0x240] ss:$8 sps:$4 sm:$0xff]  }
 0xe42   :  { %5661 = vmatprep.subr.bf16.mxu1 %v9904_v61  ;;  %v12944_v61 = vpack.c.bf16 %v6281_v6, %v6280_v60  ;;  %v9982_v60 = vld [vmem:[#allocation13 + $0x314] ss:$8 sps:$4 sm:$0xff]   ;;  %v9980_v6 = vld [vmem:[#allocation13 + $0x310] ss:$8 sps:$4 sm:$0xff]  }
 0xe44   :  { %9056 = vmatprep.subr.bf16.mxu0 %v12944_v61 }
 0xe45   :  { %5662 = vmatpush1.bf16.msra.mxu1 %v9902_v44  ;;  %v6264_v44 = vld [vmem:[%s13292_s19 + $0x40] sm:$0xff] }
 0xe46   :  { %5663 = vmatprep.subr.bf16.mxu1 %v9907_v35  ;;  %v6265_v35 = vld [vmem:[%s13292_s19 + $0x48] sm:$0xff] }
 0xe49   :  { %5664 = vmatpush1.bf16.msra.mxu1 %v9905_v24  ;;  %v9946_v24 = vld [vmem:[#allocation13 + $0x254] ss:$8 sps:$4 sm:$0xff]  }
 0xe4a   :  { %5665 = vmatprep.subr.bf16.mxu1 %v9910_v45  ;;  %v6282_v45 = vld [vmem:[%s13292_s19 + $0xd0] sm:$0xff] }
 0xe4d   :  { %5666 = vmatpush1.bf16.msra.mxu1 %v9908_v21  ;;  %v6283_v21 = vld [vmem:[%s13292_s19 + $0xd8] sm:$0xff] }
 0xe4e   :  { %5667 = vmatprep.subr.bf16.mxu1 %v9913_v47  ;;  %v12959_v47 = vpack.c.bf16 %v6265_v35, %v6264_v44  ;;  %v9983_v44 = vld [vmem:[#allocation13 + $0x320] ss:$8 sps:$4 sm:$0xff]   ;;  %v9988_v35 = vld [vmem:[#allocation13 + $0x334] ss:$8 sps:$4 sm:$0xff]  }
 0xe50   :  { %9058 = vmatpush3.bf16.msra.mxu0 %v12959_v47 }
 0xe51   :  { %5668 = vmatpush1.bf16.msra.mxu1 %v9911_v37  ;;  %v9944_v37 = vld [vmem:[#allocation13 + $0x250] ss:$8 sps:$4 sm:$0xff]  }
 0xe52   :  { %5669 = vmatprep.subr.bf16.mxu1 %v9916_v50  ;;  %v12962_v50 = vpack.c.bf16 %v6283_v21, %v6282_v45  ;;  %v9989_v45 = vld [vmem:[#allocation13 + $0x340] ss:$8 sps:$4 sm:$0xff]   ;;  %v9992_v21 = vld [vmem:[#allocation13 + $0x350] ss:$8 sps:$4 sm:$0xff]  }
 0xe54   :  { %9060 = vmatprep.subr.bf16.mxu0 %v12962_v50 }
 0xe55   :  { %5670 = vmatpush1.bf16.msra.mxu1 %v9914_v46  ;;  %v6266_v46 = vld [vmem:[%s13292_s19 + $0x50] sm:$0xff] }
 0xe56   :  { %5671 = vmatprep.subr.bf16.mxu1 %v9919_v34  ;;  %v6267_v34 = vld [vmem:[%s13292_s19 + $0x58] sm:$0xff] }
 0xe59   :  { %5672 = vmatpush1.bf16.msra.mxu1 %v9917_v42  ;;  %v9949_v42 = vld [vmem:[#allocation13 + $0x264] ss:$8 sps:$4 sm:$0xff]  }
 0xe5a   :  { %5673 = vmatprep.subr.bf16.mxu1 %v9922_v59  ;;  %v6284_v59 = vld [vmem:[%s13292_s19 + $0xe0] sm:$0xff] }
 0xe5d   :  { %5674 = vmatpush1.bf16.msra.mxu1 %v9920_v3  ;;  %v6285_v3 = vld [vmem:[%s13292_s19 + $0xe8] sm:$0xff] }
 0xe5e   :  { %5675 = vmatprep.subr.bf16.mxu1 %v9925_v12  ;;  %v12977_v12 = vpack.c.bf16 %v6267_v34, %v6266_v46  ;;  %v9995_v46 = vld [vmem:[#allocation13 + $0x360] ss:$8 sps:$4 sm:$0xff]   ;;  %v10000_v34 = vld [vmem:[#allocation13 + $0x374] ss:$8 sps:$4 sm:$0xff]  }
 0xe60   :  { %9062 = vmatpush3.bf16.msra.mxu0 %v12977_v12 }
 0xe61   :  { %5676 = vmatpush1.bf16.msra.mxu1 %v9923_v19  ;;  %v9947_v19 = vld [vmem:[#allocation13 + $0x260] ss:$8 sps:$4 sm:$0xff]  }
 0xe62   :  { %5677 = vmatprep.subr.bf16.mxu1 %v9928_v2  ;;  %v12980_v2 = vpack.c.bf16 %v6285_v3, %v6284_v59  ;;  %v10003_v59 = vld [vmem:[#allocation13 + $0x384] ss:$8 sps:$4 sm:$0xff]   ;;  %v10001_v3 = vld [vmem:[#allocation13 + $0x380] ss:$8 sps:$4 sm:$0xff]  }
 0xe64   :  { %9064 = vmatprep.subr.bf16.mxu0 %v12980_v2 }
 0xe65   :  { %5678 = vmatpush1.bf16.msra.mxu1 %v9926_v30  ;;  %v6268_v30 = vld [vmem:[%s13292_s19 + $0x60] sm:$0xff] }
 0xe66   :  { %5929 = vmatprep.subr.bf16.mxu1 %v9931_v51  ;;  %v6269_v51 = vld [vmem:[%s13292_s19 + $0x68] sm:$0xff] }
 0xe68   :  { %5680 = vmatmul.mubr.bf16.vlgmr.msra.gmra.mrb[96].mxu1 %v5171_v25  ;;  %v9950_v25 = vld [vmem:[#allocation13 + $0x270] ss:$8 sps:$4 sm:$0xff]  }
 0xe69   :  { %5930 = vmatpush1.bf16.msra.mxu1 %v9929_v17  ;;  %5961 = vmatprep.mubr.bf16.mxu1 %v5735_v22  ;;  %v6287_v17 = vld [vmem:[%s13292_s19 + $0xf8] sm:$0xff]  ;;  %v12995_v22 = vpack.c.bf16 %v6269_v51, %v6268_v30  ;;  %v10009_v51 = vld [vmem:[#allocation13 + $0x3a4] ss:$8 sps:$4 sm:$0xff]  }
 0xe6a   :  { %5931 = vmatprep.subr.bf16.mxu1 %v9934_v39  ;;  %v12998_v39 = vpack.c.bf16 %v6287_v17, %v6286_v9  ;;  %v10004_v30 = vld [vmem:[#allocation13 + $0x390] ss:$8 sps:$4 sm:$0xff]   ;;  %v10012_v9 = vld [vmem:[#allocation13 + $0x3b4] ss:$8 sps:$4 sm:$0xff]  }
 0xe6b   :  { %9066 = vmatpush3.bf16.msra.mxu0 %v12995_v22  ;;  %v10010_v17 = vld [vmem:[#allocation13 + $0x3b0] ss:$8 sps:$4 sm:$0xff]  }
 0xe6c   :  { %9068 = vmatprep.subr.bf16.mxu0 %v12998_v39 }
 0xe6d   :  { %5932 = vmatpush1.bf16.msra.mxu1 %v9932_v38  ;;  %v6270_v38 = vld [vmem:[%s13292_s19 + $0x70] sm:$0xff] }
 0xe6e   :  { %5933 = vmatprep.subr.bf16.mxu1 %v9937_v14  ;;  %v6271_v14 = vld [vmem:[%s13292_s19 + $0x78] sm:$0xff] }
 0xe6f   :  { %v13007_v4 = vpack.c.bf16 %v6271_v14, %v6270_v38  ;;  %v10013_v38 = vld [vmem:[#allocation13 + $0x3c0] ss:$8 sps:$4 sm:$0xff]   ;;  %v10018_v14 = vld [vmem:[#allocation13 + $0x3d4] ss:$8 sps:$4 sm:$0xff]  }
 0xe71   :  { %5934 = vmatpush1.bf16.msra.mxu1 %v9935_v10  ;;  %9070 = vmatpush3.bf16.msra.mxu0 %v13007_v4  ;;  %v9965_v10 = vld [vmem:[#allocation13 + $0x2c0] ss:$8 sps:$4 sm:$0xff]  }
 0xe72   :  { %5935 = vmatprep.subr.bf16.mxu1 %v9940_v33  ;;  %9072 = vmatprep.subr.bf16.mxu0 %v12876_v41  ;;  %v9973_v33 = vld [vmem:[#allocation13 + $0x2e4] ss:$8 sps:$4 sm:$0xff]   ;;  %v9971_v41 = vld [vmem:[#allocation13 + $0x2e0] ss:$8 sps:$4 sm:$0xff]  }
 0xe75   :  { %5936 = vmatpush1.bf16.msra.mxu1 %v9938_v63  ;;  %v9979_v63 = vld [vmem:[#allocation13 + $0x304] ss:$8 sps:$4 sm:$0xff]  }
 0xe76   :  { %5937 = vmatprep.subr.bf16.mxu1 %v9943_v26  ;;  %v6019_v26 = vpack.c.bf16 %v12861_v5, %v12861_v5  ;;  %v9994_v5 = vld [vmem:[#allocation13 + $0x354] ss:$8 sps:$4 sm:$0xff]  }
 0xe79   :  { %5938 = vmatpush1.bf16.msra.mxu1 %v9941_v62  ;;  %v9985_v62 = vld [vmem:[#allocation13 + $0x324] ss:$8 sps:$4 sm:$0xff]  }
 0xe7a   :  { %5939 = vmatprep.subr.bf16.mxu1 %v9946_v24  ;;  %v9986_v24 = vld [vmem:[#allocation13 + $0x330] ss:$8 sps:$4 sm:$0xff]  }
 0xe7d   :  { %5940 = vmatpush1.bf16.msra.mxu1 %v9944_v37  ;;  %v9997_v37 = vld [vmem:[#allocation13 + $0x364] ss:$8 sps:$4 sm:$0xff]  }
 0xe7e   :  { %5941 = vmatprep.subr.bf16.mxu1 %v9949_v42  ;;  %v9998_v42 = vld [vmem:[#allocation13 + $0x370] ss:$8 sps:$4 sm:$0xff]  }
 0xe81   :  { %5942 = vmatpush1.bf16.msra.mxu1 %v9947_v19  ;;  %v10006_v19 = vld [vmem:[#allocation13 + $0x394] ss:$8 sps:$4 sm:$0xff]  }
 0xe82   :  { %5943 = vmatprep.subr.bf16.mxu1 %v9952_v36  ;;  %v10007_v36 = vld [vmem:[#allocation13 + $0x3a0] ss:$8 sps:$4 sm:$0xff]  }
 0xe85   :  { %5944 = vmatpush1.bf16.msra.mxu1 %v9950_v25  ;;  %v10015_v25 = vld [vmem:[#allocation13 + $0x3c4] ss:$8 sps:$4 sm:$0xff]  }
 0xe86   :  { %5945 = vmatprep.subr.bf16.mxu1 %v9955_v40  ;;  %v10016_v40 = vld [vmem:[#allocation13 + $0x3d0] ss:$8 sps:$4 sm:$0xff]  }
 0xe89   :  { %5946 = vmatpush1.bf16.msra.mxu1 %v9953_v32  ;;  %v10021_v32 = vld [vmem:[#allocation13 + $0x3e4] ss:$8 sps:$4 sm:$0xff]  }
 0xe8a   :  { %5947 = vmatprep.subr.bf16.mxu1 %v9958_v55  ;;  %v10019_v55 = vld [vmem:[#allocation13 + $0x3e0] ss:$8 sps:$4 sm:$0xff]  }
 0xe8d   :  { %5948 = vmatpush1.bf16.msra.mxu1 %v9956_v49  ;;  %v10024_v49 = vld [vmem:[#allocation13 + $0x3f4] ss:$8 sps:$4 sm:$0xff]  }
 0xe8e   :  { %5949 = vmatprep.subr.bf16.mxu1 %v9961_v58  ;;  %v10022_v58 = vld [vmem:[#allocation13 + $0x3f0] ss:$8 sps:$4 sm:$0xff]  }
 0xe91   :  { %5950 = vmatpush1.bf16.msra.mxu1 %v9959_v28  ;;  %v6018_v28 = vpack.c.bf16 %v12859_v11, %v12859_v11 }
 0xe92   :  { %5951 = vmatprep.subr.bf16.mxu1 %v9964_v54 }
 0xe95   :  { %5952 = vmatpush1.bf16.msra.mxu1 %v9962_v13 }
 0xe96   :  { %5953 = vmatprep.subr.bf16.mxu1 %v9967_v31 }
 0xe99   :  { %5954 = vmatpush1.bf16.msra.mxu1 %v9965_v10 }
 0xe9a   :  { %5955 = vmatprep.subr.bf16.mxu1 %v9970_v56 }
 0xe9d   :  { %5956 = vmatpush1.bf16.msra.mxu1 %v9968_v8 }
 0xe9e   :  { %5957 = vmatprep.subr.bf16.mxu1 %v9973_v33  ;;  %v6466_v33 = vld [vmem:[#allocation19 + $0x50] sm:$0xff] }
 0xea1   :  { %5958 = vmatpush1.bf16.msra.mxu1 %v9971_v41  ;;  %v6469_v41 = vld [vmem:[#allocation19 + $0x68] sm:$0xff] }
 0xea2   :  { %5959 = vmatprep.subr.bf16.mxu1 %v9976_v29  ;;  %v6471_v29 = vld [vmem:[#allocation19 + $0x78] sm:$0xff] }
 0xea5   :  { %5960 = vmatpush1.bf16.msra.mxu1 %v9974_v23 }
 0xea6   :  { %6213 = vmatprep.subr.bf16.mxu1 %v9979_v63  ;;  %v9115_v63 = vpack.c.bf16 %v6471_v29, %v6469_v41 }
 0xea8   :  { %5962 = vmatmul.mubr.bf16.vlgmr.msra.gmra.mrb[96].mxu1 %v5734_v18  ;;  %v6468_v18 = vld [vmem:[#allocation19 + $0x60] sm:$0xff] }
 0xea9   :  { %6214 = vmatpush1.bf16.msra.mxu1 %v9977_v57  ;;  %6245 = vmatprep.mubr.bf16.mxu1 %v6019_v26  ;;  %v6470_v57 = vld [vmem:[#allocation19 + $0x70] sm:$0xff] }
 0xeaa   :  { %6215 = vmatprep.subr.bf16.mxu1 %v9982_v60  ;;  %v9117_v26 = vpack.c.bf16 %v6470_v57, %v6468_v18  ;;  %v10025_v60 = vld [vmem:[%s13294_s21 + $0x40] sm:$0xff]  }
 0xead   :  { %6216 = vmatpush1.bf16.msra.mxu1 %v9980_v6  ;;  %v10026_v6 = vld [vmem:[%s13294_s21] sm:$0xff]  }
 0xeae   :  { %6217 = vmatprep.subr.bf16.mxu1 %v9985_v62 }
 0xeb1   :  { %6218 = vmatpush1.bf16.msra.mxu1 %v9983_v44 }
 0xeb2   :  { %6219 = vmatprep.subr.bf16.mxu1 %v9988_v35 }
 0xeb5   :  { %6220 = vmatpush1.bf16.msra.mxu1 %v9986_v24 }
 0xeb6   :  { %6221 = vmatprep.subr.bf16.mxu1 %v9991_v15 }
 0xeb9   :  { %6222 = vmatpush1.bf16.msra.mxu1 %v9989_v45 }
 0xeba   :  { %6223 = vmatprep.subr.bf16.mxu1 %v9994_v5 }
 0xebd   :  { %6224 = vmatpush1.bf16.msra.mxu1 %v9992_v21 }
 0xebe   :  { %6225 = vmatprep.subr.bf16.mxu1 %v9997_v37 }
 0xec1   :  { %6226 = vmatpush1.bf16.msra.mxu1 %v9995_v46 }
 0xec2   :  { %6227 = vmatprep.subr.bf16.mxu1 %v10000_v34 }
 0xec5   :  { %6228 = vmatpush1.bf16.msra.mxu1 %v9998_v42 }
 0xec6   :  { %6229 = vmatprep.subr.bf16.mxu1 %v10003_v59 }
 0xec9   :  { %6230 = vmatpush1.bf16.msra.mxu1 %v10001_v3 }
 0xeca   :  { %6231 = vmatprep.subr.bf16.mxu1 %v10006_v19 }
 0xecd   :  { %6232 = vmatpush1.bf16.msra.mxu1 %v10004_v30 }
 0xece   :  { %6233 = vmatprep.subr.bf16.mxu1 %v10009_v51 }
 0xed1   :  { %6234 = vmatpush1.bf16.msra.mxu1 %v10007_v36 }
 0xed2   :  { %6235 = vmatprep.subr.bf16.mxu1 %v10012_v9 }
 0xed5   :  { %6236 = vmatpush1.bf16.msra.mxu1 %v10010_v17 }
 0xed6   :  { %6237 = vmatprep.subr.bf16.mxu1 %v10015_v25 }
 0xed9   :  { %6238 = vmatpush1.bf16.msra.mxu1 %v10013_v38 }
 0xeda   :  { %6239 = vmatprep.subr.bf16.mxu1 %v10018_v14 }
 0xedd   :  { %6240 = vmatpush1.bf16.msra.mxu1 %v10016_v40 }
 0xede   :  { %6241 = vmatprep.subr.bf16.mxu1 %v10021_v32 }
 0xee1   :  { %6242 = vmatpush1.bf16.msra.mxu1 %v10019_v55 }
 0xee2   :  { %6243 = vmatprep.subr.bf16.mxu1 %v10024_v49  ;;  %v6449_v49 = vld [vmem:[#allocation16] sm:$0x1] }
 0xee5   :  { %6244 = vmatpush1.bf16.msra.mxu1 %v10022_v58 }
 0xee6   :  { %8821 = vmatprep.subr.bf16.mxu1 %v10025_v60 }
 0xee8   :  { %6246 = vmatmul.mubr.bf16.vlgmr.msra.gmra.mrb[96].mxu1 %v6018_v28 }
 0xee9   :  { %8822 = vmatpush3.bf16.msra.mxu1 %v10026_v6 }
 0xfbb   :  { %v13018_v54 = vpop.f32.mrb[96].mxu1 }
 0xfbc   :  { %v13020_v13 = vpop.f32.mrb[97].mxu1  ;;  %v6365_v11 = vmul.f32 %v13018_v54, %v13018_v54 }
 0xfbd   :  { %v6366_v31 = vmul.f32 %v13020_v13, %v13020_v13  ;;  %v6251_v10 = vpop.f32.mrb[98].mxu1  ;;  %6352 = vmatprep.mubr.f32.mxu0 %v13020_v13 }
 0xfbe   :  { %v6252_v56 = vpop.f32.mrb[99].mxu1  ;;  %6353 = vmatmul.mubr.f32.vlgmr.msra.gmra.mrb[92].mxu0 %v13018_v54  ;;  %v6453_v10 = vld [vmem:[#allocation18] sm:$0x1] }
 0xfbf   :  { %9074 = vmatpush3.bf16.msra.mxu0 %v12887_v48  ;;  %6431 = vmatprep.mubr.f32.mxu0 %v6366_v31  ;;  %v6457_v48 = vld [vmem:[#allocation19 + $0x8] sm:$0xff] }
 0xfc0   :  { %9076 = vmatprep.subr.bf16.mxu0 %v12889_v7  ;;  %v6459_v7 = vld [vmem:[#allocation19 + $0x18] sm:$0xff] }
 0xfc3   :  { %9078 = vmatpush3.bf16.msra.mxu0 %v12905_v43  ;;  %v9103_v43 = vpack.c.bf16 %v6459_v7, %v6457_v48  ;;  %v10029_v48 = vld [vmem:[%s13294_s21 + $0x50] sm:$0xff]  }
 0xfc4   :  { %9080 = vmatprep.subr.bf16.mxu0 %v12908_v27  ;;  %v6456_v27 = vld [vmem:[#allocation19] sm:$0xff]  ;;  %v10030_v7 = vld [vmem:[%s13294_s21 + $0x10] sm:$0xff]  }
 0xfc7   :  { %9082 = vmatpush3.bf16.msra.mxu0 %v12923_v53  ;;  %v6458_v53 = vld [vmem:[#allocation19 + $0x10] sm:$0xff] }
 0xfc8   :  { %9084 = vmatprep.subr.bf16.mxu0 %v12926_v20  ;;  %v13044_v20 = vpack.c.bf16 %v6458_v53, %v6456_v27  ;;  %v10032_v27 = vld [vmem:[%s13294_s21 + $0x18] sm:$0xff]   ;;  %v10033_v53 = vld [vmem:[%s13294_s21 + $0x60] sm:$0xff]  }
 0xfcb   :  { %9086 = vmatpush3.bf16.msra.mxu0 %v12941_v52  ;;  %v6461_v52 = vld [vmem:[#allocation19 + $0x28] sm:$0xff] }
 0xfcc   :  { %9088 = vmatprep.subr.bf16.mxu0 %v12944_v61  ;;  %v6463_v61 = vld [vmem:[#allocation19 + $0x38] sm:$0xff] }
 0xfcf   :  { %9090 = vmatpush3.bf16.msra.mxu0 %v12959_v47  ;;  %v9107_v47 = vpack.c.bf16 %v6463_v61, %v6461_v52  ;;  %v10035_v52 = vld [vmem:[%s13294_s21 + $0x68] sm:$0xff]  }
 0xfd0   :  { %9092 = vmatprep.subr.bf16.mxu0 %v12962_v50  ;;  %v6460_v50 = vld [vmem:[#allocation19 + $0x20] sm:$0xff]  ;;  %v10036_v61 = vld [vmem:[%s13294_s21 + $0x28] sm:$0xff]  }
 0xfd3   :  { %9094 = vmatpush3.bf16.msra.mxu0 %v12977_v12  ;;  %v6462_v12 = vld [vmem:[#allocation19 + $0x30] sm:$0xff] }
 0xfd4   :  { %9096 = vmatprep.subr.bf16.mxu0 %v12980_v2  ;;  %v9109_v2 = vpack.c.bf16 %v6462_v12, %v6460_v50  ;;  %v10038_v50 = vld [vmem:[%s13294_s21 + $0x30] sm:$0xff]   ;;  %v10039_v12 = vld [vmem:[%s13294_s21 + $0x78] sm:$0xff]  }
 0xfd7   :  { %9098 = vmatpush3.bf16.msra.mxu0 %v12995_v22  ;;  %v6465_v22 = vld [vmem:[#allocation19 + $0x48] sm:$0xff] }
 0xfd8   :  { %9100 = vmatprep.subr.bf16.mxu0 %v12998_v39  ;;  %v6467_v39 = vld [vmem:[#allocation19 + $0x58] sm:$0xff] }
 0xfd9   :  { %v9111_v8 = vpack.c.bf16 %v6467_v39, %v6465_v22 }
 0xfdb   :  { %9102 = vmatpush3.bf16.msra.mxu0 %v13007_v4  ;;  %v6464_v4 = vld [vmem:[#allocation19 + $0x40] sm:$0xff] }
 0xfdc   :  { %9104 = vmatprep.subr.bf16.mxu0 %v9103_v43  ;;  %v9113_v23 = vpack.c.bf16 %v6466_v33, %v6464_v4 }
 0xfde   :  { %6432 = vmatmul.mubr.f32.vlgmr.msra.gmra.mrb[94].mxu0 %v6365_v11  ;;  %v10027_v11 = vld [vmem:[%s13294_s21 + $0x48] sm:$0xff]  }
 0xfdf   :  { %6539 = vmatprep.mubr.f32.mxu0 %v10420_v1  ;;  %9106 = vmatpush1.bf16.msra.mxu0 %v13044_v20 }
 0xfe0   :  { %9108 = vmatprep.subr.bf16.mxu0 %v9107_v47  ;;  %8823 = vmatprep.subr.bf16.mxu1 %v10027_v11 }
 0xfe3   :  { %9110 = vmatpush1.bf16.msra.mxu0 %v9109_v2 }
 0xfe4   :  { %9112 = vmatprep.subr.bf16.mxu0 %v9111_v8 }
 0xfe7   :  { %9114 = vmatpush1.bf16.msra.mxu0 %v9113_v23 }
 0xfe8   :  { %9116 = vmatprep.subr.bf16.mxu0 %v9115_v63 }
 0xfeb   :  { %9118 = vmatpush1.bf16.msra.mxu0 %v9117_v26 }
 0xfec   :  { %9120 = vmatprep.subr.bf16.mxu0 %v9103_v43  ;;  %v10031_v43 = vld [vmem:[%s13294_s21 + $0x58] sm:$0xff]  }
0x1091   :  { %v8761_v62 = vpop.f32.mrb[92].mxu0 }
0x1092   :  { %v8762_v44 = vpop.f32.mrb[93].mxu0 }
0x1093   :  { %v8763_v35 = vadd.f32 %v8762_v44, %v8761_v62 }
0x1095   :  { %v6358_v24 = vsel %vm731_vm0, %v8763_v35, 0.0 }
0x1096   :  { %v6359_v15 = vrot.slane %v6358_v24, 4 }
0x1098   :  { %v6360_v45 = vadd.f32 %v6359_v15, %v6358_v24 }
0x109a   :  { %v6361_v5 = vrot.slane %v6360_v45, 2 }
0x109c   :  { %v6362_v37 = vadd.f32 %v6361_v5, %v6360_v45  ;;  %v10042_v45 = vld [vmem:[%s13294_s21 + $0x80] sm:$0xff]   ;;  %v10043_v5 = vld [vmem:[%s13294_s21 + $0xc8] sm:$0xff]  }
0x109e   :  { %v6363_v59 = vrot.slane %v6362_v37, 1 }
0x10a0   :  { %v6364_v30 = vadd.f32 %v6363_v59, %v6362_v37  ;;  %v10045_v37 = vld [vmem:[%s13294_s21 + $0xd0] sm:$0xff]   ;;  %v10049_v59 = vld [vmem:[%s13294_s21 + $0xe0] sm:$0xff]  }
0x10a2   :  { %v6444_v9 = vmul.f32 0.03125, %v6364_v30  ;;  %v10052_v30 = vld [vmem:[%s13294_s21 + $0xa8] sm:$0xff]  }
0x10a4   :  { %v6446_v38 = vmul.f32 %v6444_v9, %v6444_v9 }
0x10b1   :  { %v8796_v21 = vpop.f32.mrb[94].mxu0 }
0x10b2   :  { %v8797_v46 = vpop.f32.mrb[95].mxu0 }
0x10b3   :  { %v8798_v34 = vadd.f32 %v8797_v46, %v8796_v21  ;;  %v10044_v21 = vld [vmem:[%s13294_s21 + $0x88] sm:$0xff]   ;;  %v10046_v46 = vld [vmem:[%s13294_s21 + $0x90] sm:$0xff]  }
0x10b5   :  { %v6437_v42 = vsel %vm731_vm0, %v8798_v34, 0.0  ;;  %v10047_v34 = vld [vmem:[%s13294_s21 + $0xd8] sm:$0xff]  }
0x10b6   :  { %v6438_v3 = vrot.slane %v6437_v42, 4 }
0x10b8   :  { %v6439_v19 = vadd.f32 %v6438_v3, %v6437_v42  ;;  %v10048_v42 = vld [vmem:[%s13294_s21 + $0x98] sm:$0xff]   ;;  %v10050_v3 = vld [vmem:[%s13294_s21 + $0xa0] sm:$0xff]  }
0x10ba   :  { %v6440_v51 = vrot.slane %v6439_v19, 2 }
0x10bc   :  { %v6441_v36 = vadd.f32 %v6440_v51, %v6439_v19  ;;  %v10051_v19 = vld [vmem:[%s13294_s21 + $0xe8] sm:$0xff]   ;;  %v10053_v51 = vld [vmem:[%s13294_s21 + $0xf0] sm:$0xff]  }
0x10be   :  { %v6442_v17 = vrot.slane %v6441_v36, 1 }
0x10c0   :  { %v6443_v25 = vadd.f32 %v6442_v17, %v6441_v36  ;;  %v10054_v36 = vld [vmem:[%s13294_s21 + $0xb0] sm:$0xff]   ;;  %v10056_v17 = vld [vmem:[%s13294_s21 + $0xb8] sm:$0xff]  }
0x10c2   :  { %v6445_v14 = vmul.f32 0.03125, %v6443_v25 }
0x10c4   :  { %v6447_v40 = vsub.f32 %v6445_v14, %v6446_v38 }
0x10c6   :  { %v6448_v32 = vmax.f32 %v6447_v40, 0.0 }
0x10c8   :  { %v6450_v55 = vadd.f32 1e-05, %v6448_v32 }
0x10ca   :  { %10093 = vrsqrt.f32 %v6450_v55 }
0x10d4   :  { %v10094_v58 = vpop.eup %10093 }
0x10d5   :  { %v6452_v28 = vmul.f32 %v10094_v58, %v6449_v49  ;;  %v10059_v49 = vld [vmem:[%s13294_s21 + $0x1c0] sm:$0xff]  }
0x10d7   :  { %8395 = vmatmul.mubr.msk.f32.vlgmr.msra.gmra.mrb[96].mxu0 %vm731_vm0, %v6452_v28  ;;  %v6454_v31 = vmul.f32 %v6452_v28, %v6444_v9  ;;  %v10055_v9 = vld [vmem:[%s13294_s21 + $0xf8] sm:$0xff]  }
0x10d8   :  { %9122 = vmatpush1.bf16.msra.mxu0 %v13044_v20  ;;  %6613 = vmatprep.mubr.f32.mxu0 %v10420_v1  ;;  %v10028_v1 = vld [vmem:[%s13294_s21 + $0x8] sm:$0xff]   ;;  %v10034_v20 = vld [vmem:[%s13294_s21 + $0x20] sm:$0xff]  }
0x10d9   :  { %9124 = vmatprep.subr.bf16.mxu0 %v9107_v47  ;;  %v6455_v56 = vsub.f32 %v6453_v10, %v6454_v31  ;;  %8824 = vmatpush3.bf16.msra.mxu1 %v10028_v1  ;;  %v10037_v47 = vld [vmem:[%s13294_s21 + $0x70] sm:$0xff]  }
0x10da   :  { %8825 = vmatprep.subr.bf16.mxu1 %v10029_v48  ;;  %v10057_v48 = vld [vmem:[%s13294_s21 + $0x140] sm:$0xff]  }
0x10dc   :  { %9126 = vmatpush1.bf16.msra.mxu0 %v9109_v2  ;;  %v10040_v2 = vld [vmem:[%s13294_s21 + $0x38] sm:$0xff]  }
0x10dd   :  { %9128 = vmatprep.subr.bf16.mxu0 %v9111_v8  ;;  %8826 = vmatpush3.bf16.msra.mxu1 %v10030_v7  ;;  %v10060_v7 = vld [vmem:[%s13294_s21 + $0x180] sm:$0xff]  }
0x10de   :  { %8827 = vmatprep.subr.bf16.mxu1 %v10031_v43  ;;  %v10063_v43 = vld [vmem:[%s13294_s21 + $0x1c8] sm:$0xff]  }
0x10e0   :  { %9130 = vmatpush1.bf16.msra.mxu0 %v9113_v23 }
0x10e1   :  { %9132 = vmatprep.subr.bf16.mxu0 %v9115_v63  ;;  %8828 = vmatpush3.bf16.msra.mxu1 %v10032_v27  ;;  %v10064_v27 = vld [vmem:[%s13294_s21 + $0x188] sm:$0xff]  }
0x10e2   :  { %8829 = vmatprep.subr.bf16.mxu1 %v10033_v53  ;;  %v10067_v53 = vld [vmem:[%s13294_s21 + $0x1d0] sm:$0xff]  }
0x10e4   :  { %9134 = vmatpush1.bf16.msra.mxu0 %v9117_v26 }
0x10e5   :  { %8830 = vmatpush3.bf16.msra.mxu1 %v10034_v20  ;;  %v7087_v20 = vld [vmem:[#allocation21 + $0x2] sm:$0x1] }
0x10e6   :  { %8831 = vmatprep.subr.bf16.mxu1 %v10035_v52  ;;  %v10058_v52 = vld [vmem:[%s13294_s21 + $0x100] sm:$0xff]  }
0x10e7   :  { %8396 = vmatmul.mubr.msk.f32.vlgmr.msra.gmra.mrb[98].mxu0 %vm731_vm0, %v6455_v56  ;;  %v7305_v56 = vld [vmem:[#allocation21 + $0x3] sm:$0x1] }
0x10e8   :  { %6690 = vmatprep.mubr.bf16.mxu0 %v10419_v0 }
0x10e9   :  { %8832 = vmatpush3.bf16.msra.mxu1 %v10036_v61  ;;  %v10062_v61 = vld [vmem:[%s13294_s21 + $0x108] sm:$0xff]  }
0x10ea   :  { %8833 = vmatprep.subr.bf16.mxu1 %v10037_v47  ;;  %v10065_v47 = vld [vmem:[%s13294_s21 + $0x150] sm:$0xff]  }
0x10ed   :  { %8834 = vmatpush3.bf16.msra.mxu1 %v10038_v50  ;;  %v10066_v50 = vld [vmem:[%s13294_s21 + $0x110] sm:$0xff]  }
0x10ee   :  { %8835 = vmatprep.subr.bf16.mxu1 %v10039_v12  ;;  %v10068_v12 = vld [vmem:[%s13294_s21 + $0x190] sm:$0xff]  }
0x10f1   :  { %8836 = vmatpush3.bf16.msra.mxu1 %v10040_v2  ;;  %v10071_v2 = vld [vmem:[%s13294_s21 + $0x1d8] sm:$0xff]  }
0x11aa   :  { %v6541_v22 = vpop.f32.mrb[96].mxu0 }
0x11ab   :  { %v6623_v39 = vrot.slane %v6541_v22, %v12186_v16  ;;  %v6543_v4 = vpop.f32.mrb[97].mxu0  ;;  %v10072_v22 = vld [vmem:[%s13294_s21 + $0x198] sm:$0xff]  }
0x11ac   :  { %v6627_v8 = vrot.slane %v6543_v4, %v12186_v16  ;;  %v10070_v4 = vld [vmem:[%s13294_s21 + $0x118] sm:$0xff]  }
0x11ad   :  { %v6628_v33 = vmul.f32 %v6623_v39, %v13018_v54  ;;  %v6646_v54 = vld [vmem:[#allocation21] sm:$0x1] }
0x11ae   :  { %v6629_v41 = vmul.f32 %v6627_v8, %v13020_v13  ;;  %v6734_v13 = vld [vmem:[#allocation21 + $0x1] sm:$0x1]  ;;  %v10075_v8 = vld [vmem:[%s13294_s21 + $0x1e0] sm:$0xff]  }
0x11af   :  { %v10069_v39 = vld [vmem:[%s13294_s21 + $0x158] sm:$0xff]  }
0x11ba   :  { %v6615_v29 = vpop.f32.mrb[98].mxu0 }
0x11bb   :  { %v6633_v23 = vrot.slane %v6615_v29, %v12186_v16  ;;  %v6617_v63 = vpop.f32.mrb[99].mxu0  ;;  %v10074_v29 = vld [vmem:[%s13294_s21 + $0x120] sm:$0xff]  }
0x11bc   :  { %v6637_v18 = vrot.slane %v6617_v63, %v12186_v16  ;;  %v10041_v16 = vld [vmem:[%s13294_s21 + $0xc0] sm:$0xff]   ;;  %v10080_v63 = vld [vmem:[%s13294_s21 + $0x1a8] sm:$0xff]  }
0x11bd   :  { %v6638_v57 = vadd.f32 %v6633_v23, %v6628_v33  ;;  %v10076_v33 = vld [vmem:[%s13294_s21 + $0x1a0] sm:$0xff]   ;;  %v10079_v23 = vld [vmem:[%s13294_s21 + $0x1e8] sm:$0xff]  }
0x11be   :  { %v6639_v26 = vadd.f32 %v6637_v18, %v6629_v41  ;;  %v10073_v41 = vld [vmem:[%s13294_s21 + $0x160] sm:$0xff]   ;;  %v10077_v18 = vld [vmem:[%s13294_s21 + $0x168] sm:$0xff]  }
0x11bf   :  { %v6640_v60 = vmul.f32 0.2, %v6638_v57 }
0x11c0   :  { %v6641_v6 = vmul.f32 0.2, %v6639_v26 }
0x11c1   :  { %v6642_v62 = vmax.f32 %v6638_v57, %v6640_v60  ;;  %v10078_v57 = vld [vmem:[%s13294_s21 + $0x128] sm:$0xff]   ;;  %v10084_v60 = vld [vmem:[%s13294_s21 + $0x1b0] sm:$0xff]  }
0x11c2   :  { %v6643_v44 = vmax.f32 %v6639_v26, %v6641_v6  ;;  %v10083_v26 = vld [vmem:[%s13294_s21 + $0x1f0] sm:$0xff]  }
0x11c3   :  { %v6644_v35 = vpack.c.bf16 %v6642_v62, %v6642_v62  ;;  %v10081_v6 = vld [vmem:[%s13294_s21 + $0x170] sm:$0xff]  }
0x11c4   :  { %v6645_v24 = vpack.c.bf16 %v6643_v44, %v6643_v44  ;;  %v10082_v62 = vld [vmem:[%s13294_s21 + $0x130] sm:$0xff]   ;;  %v10087_v44 = vld [vmem:[%s13294_s21 + $0x1f8] sm:$0xff]  }
0x11c5   :  { %v13109_v15 = vsel %vm6651_vm3, %v6644_v35, 0  ;;  %v10088_v35 = vld [vmem:[%s13294_s21 + $0x1b8] sm:$0xff]  }
0x11c6   :  { %8397 = vmatprep.subr.msk.bf16.mxu0 %vm6651_vm3, %v6645_v24  ;;  %8515 = vmatprep.subr.msk.bf16.mxu1 %vm6651_vm3, %v6645_v24 }
0x11c7   :  { %6659 = vmatpush1.bf16.msra.mxu0 %v13109_v15 }
0x11c8   :  { %8399 = vmatprep.subr.msk.bf16.mxu0 %vm6651_vm3, %v6645_v24 }
0x11ca   :  { %8398 = vmatmul.mubr.msk.bf16.vlgmr.msra.gmra.mrb[100].mxu0 %vm6647_vm4, %v6646_v54 }
0x11cb   :  { %6739 = vmatpush1.bf16.msra.mxu0 %v13109_v15  ;;  %6770 = vmatprep.mubr.bf16.mxu0 %v10419_v0 }
0x11cc   :  { %8799 = vmatprep.subr.bf16.mxu0 %v10041_v16 }
0x11d2   :  { %8400 = vmatmul.mubr.msk.bf16.vlgmr.msra.gmra.mrb[104].mxu0 %vm6647_vm4, %v6734_v13 }
0x11d3   :  { %8800 = vmatpush3.bf16.msra.mxu0 %v10042_v45 }
0x11d4   :  { %8801 = vmatprep.subr.bf16.mxu0 %v10043_v5 }
0x11d7   :  { %8802 = vmatpush3.bf16.msra.mxu0 %v10044_v21 }
0x11d8   :  { %8803 = vmatprep.subr.bf16.mxu0 %v10045_v37 }
0x11db   :  { %8804 = vmatpush3.bf16.msra.mxu0 %v10046_v46 }
0x11dc   :  { %8805 = vmatprep.subr.bf16.mxu0 %v10047_v34 }
0x11df   :  { %8806 = vmatpush3.bf16.msra.mxu0 %v10048_v42 }
0x11e0   :  { %8807 = vmatprep.subr.bf16.mxu0 %v10049_v59 }
0x11e3   :  { %8808 = vmatpush3.bf16.msra.mxu0 %v10050_v3 }
0x11e4   :  { %8809 = vmatprep.subr.bf16.mxu0 %v10051_v19 }
0x11e7   :  { %8810 = vmatpush3.bf16.msra.mxu0 %v10052_v30 }
0x11e8   :  { %8811 = vmatprep.subr.bf16.mxu0 %v10053_v51 }
0x11eb   :  { %8812 = vmatpush3.bf16.msra.mxu0 %v10054_v36 }
0x11ec   :  { %8813 = vmatprep.subr.bf16.mxu0 %v10055_v9 }
0x11ef   :  { %8814 = vmatpush3.bf16.msra.mxu0 %v10056_v17 }
0x11f0   :  { %8465 = vmatprep.subr.msk.bf16.mxu0 %vm6651_vm3, %v6645_v24  ;;  %v10085_v24 = vld [vmem:[%s13294_s21 + $0x178] sm:$0xff]  }
0x129d   :  { %v6692_v25 = vpop.f32.mrb[100].mxu0 }
0x129e   :  { %v6694_v38 = vpop.f32.mrb[101].mxu0  ;;  %v6699_v32 = vpack.c.bf16 %v6692_v25, %v6692_v25 }
0x129f   :  { %v6700_v14 = vpack.c.bf16 %v6694_v38, %v6694_v38  ;;  %v6696_v40 = vpop.f32.mrb[102].mxu0 }
0x12a0   :  { %v6697_v55 = vpop.f32.mrb[103].mxu0 }
0x12a1   :  { %7078 = vmatprep.mubr.bf16.mxu1 %v6700_v14 }
0x12a2   :  { %7079 = vmatmul.mubr.bf16.vlgmr.msra.gmra.mrb[100].mxu1 %v6699_v32 }
0x12a3   :  { %7310 = vmatpush1.bf16.msra.mxu1 %v13109_v15  ;;  %7341 = vmatprep.mubr.bf16.mxu1 %v10419_v0 }
0x12a4   :  { %8865 = vmatprep.subr.bf16.mxu1 %v10059_v49 }
0x12a5   :  { %v6772_v58 = vpop.f32.mrb[104].mxu0 }
0x12a6   :  { %v6774_v28 = vpop.f32.mrb[105].mxu0  ;;  %v6779_v11 = vpack.c.bf16 %v6772_v58, %v6772_v58 }
0x12a7   :  { %v6780_v31 = vpack.c.bf16 %v6774_v28, %v6774_v28  ;;  %v6776_v10 = vpop.f32.mrb[106].mxu0 }
0x12a8   :  { %v6777_v1 = vpop.f32.mrb[107].mxu0 }
0x12a9   :  { %6942 = vmatprep.mubr.bf16.mxu0 %v6780_v31 }
0x12aa   :  { %6943 = vmatmul.mubr.bf16.vlgmr.msra.gmra.mrb[108].mxu0 %v6779_v11  ;;  %8516 = vmatmul.mubr.msk.bf16.vlgmr.msra.gmra.mrb[104].mxu1 %vm6647_vm4, %v7305_v56 }
0x12ab   :  { %7092 = vmatpush1.bf16.msra.mxu0 %v13109_v15  ;;  %7123 = vmatprep.mubr.bf16.mxu0 %v10419_v0  ;;  %v10061_v0 = vld [vmem:[%s13294_s21 + $0x148] sm:$0xff]   ;;  %v10086_v15 = vld [vmem:[%s13294_s21 + $0x138] sm:$0xff]  }
0x12ac   :  { %8843 = vmatprep.subr.bf16.mxu0 %v10057_v48  ;;  %8866 = vmatpush3.bf16.msra.mxu1 %v10060_v7 }
0x12ad   :  { %8867 = vmatprep.subr.bf16.mxu1 %v10063_v43 }
0x12b0   :  { %8868 = vmatpush3.bf16.msra.mxu1 %v10064_v27 }
0x12b1   :  { %8869 = vmatprep.subr.bf16.mxu1 %v10067_v53 }
0x12b2   :  { %8466 = vmatmul.mubr.msk.bf16.vlgmr.msra.gmra.mrb[112].mxu0 %vm6647_vm4, %v7087_v20 }
0x12b3   :  { %8844 = vmatpush3.bf16.msra.mxu0 %v10058_v52 }
0x12b4   :  { %8845 = vmatprep.subr.bf16.mxu0 %v10061_v0  ;;  %8870 = vmatpush3.bf16.msra.mxu1 %v10068_v12 }
0x12b5   :  { %8871 = vmatprep.subr.bf16.mxu1 %v10071_v2 }
0x12b7   :  { %8846 = vmatpush3.bf16.msra.mxu0 %v10062_v61 }
0x12b8   :  { %8847 = vmatprep.subr.bf16.mxu0 %v10065_v47  ;;  %8872 = vmatpush3.bf16.msra.mxu1 %v10072_v22 }
0x12b9   :  { %8873 = vmatprep.subr.bf16.mxu1 %v10075_v8 }
0x12bb   :  { %8848 = vmatpush3.bf16.msra.mxu0 %v10066_v50 }
0x12bc   :  { %8849 = vmatprep.subr.bf16.mxu0 %v10069_v39  ;;  %8874 = vmatpush3.bf16.msra.mxu1 %v10076_v33 }
0x12bd   :  { %8875 = vmatprep.subr.bf16.mxu1 %v10079_v23 }
0x12bf   :  { %8850 = vmatpush3.bf16.msra.mxu0 %v10070_v4 }
0x12c0   :  { %8851 = vmatprep.subr.bf16.mxu0 %v10073_v41  ;;  %8876 = vmatpush3.bf16.msra.mxu1 %v10080_v63 }
0x12c1   :  { %8877 = vmatprep.subr.bf16.mxu1 %v10083_v26 }
0x12c3   :  { %8852 = vmatpush3.bf16.msra.mxu0 %v10074_v29 }
0x12c4   :  { %8853 = vmatprep.subr.bf16.mxu0 %v10077_v18  ;;  %8878 = vmatpush3.bf16.msra.mxu1 %v10084_v60 }
0x12c5   :  { %8879 = vmatprep.subr.bf16.mxu1 %v10087_v44 }
0x12c7   :  { %8854 = vmatpush3.bf16.msra.mxu0 %v10078_v57 }
0x12c8   :  { %8855 = vmatprep.subr.bf16.mxu0 %v10081_v6  ;;  %8880 = vmatpush3.bf16.msra.mxu1 %v10088_v35 }
0x12cb   :  { %8856 = vmatpush3.bf16.msra.mxu0 %v10082_v62 }
0x12cc   :  { %8857 = vmatprep.subr.bf16.mxu0 %v10085_v24 }
0x12cf   :  { %8858 = vmatpush3.bf16.msra.mxu0 %v10086_v15 }
0x1375   :  { %v8837_v54 = vpop.f32.mrb[100].mxu1 }
0x1376   :  { %v8838_v16 = vpop.f32.mrb[101].mxu1 }
0x1377   :  { %v8839_v13 = vadd.f32 %v8838_v16, %v8837_v54  ;;  %v8840_v45 = vpop.f32.mrb[102].mxu1 }
0x1378   :  { %v8841_v5 = vpop.f32.mrb[103].mxu1 }
0x137d   :  { %v8815_v21 = vpop.f32.mrb[108].mxu0  ;;  %v7343_v37 = vpop.f32.mrb[104].mxu1 }
0x137e   :  { %v8816_v46 = vpop.f32.mrb[109].mxu0  ;;  %v7350_v34 = vpack.c.bf16 %v7343_v37, %v7343_v37  ;;  %v7345_v42 = vpop.f32.mrb[105].mxu1 }
0x137f   :  { %v8817_v59 = vadd.f32 %v8816_v46, %v8815_v21  ;;  %v8818_v3 = vpop.f32.mrb[110].mxu0  ;;  %v7351_v19 = vpack.c.bf16 %v7345_v42, %v7345_v42  ;;  %v7347_v30 = vpop.f32.mrb[106].mxu1 }
0x1380   :  { %v8819_v51 = vpop.f32.mrb[111].mxu0  ;;  %v7348_v36 = vpop.f32.mrb[107].mxu1 }
0x1381   :  { %v7081_v9 = vadd.f32 %v8839_v13, %v8817_v59  ;;  %7513 = vmatprep.mubr.bf16.mxu1 %v7351_v19 }
0x1382   :  { %7514 = vmatmul.mubr.bf16.vlgmr.msra.gmra.mrb[108].mxu1 %v7350_v34 }
0x1385   :  { %v7125_v17 = vpop.f32.mrb[112].mxu0 }
0x1386   :  { %v7127_v25 = vpop.f32.mrb[113].mxu0  ;;  %v7132_v40 = vpack.c.bf16 %v7125_v17, %v7125_v17 }
0x1387   :  { %v7133_v38 = vpack.c.bf16 %v7127_v25, %v7127_v25  ;;  %v7129_v14 = vpop.f32.mrb[114].mxu0 }
0x1388   :  { %v7130_v32 = vpop.f32.mrb[115].mxu0 }
0x1389   :  { %7295 = vmatprep.mubr.bf16.mxu0 %v7133_v38 }
0x138a   :  { %7296 = vmatmul.mubr.bf16.vlgmr.msra.gmra.mrb[116].mxu0 %v7132_v40 }
0x1455   :  { %v8881_v55 = vpop.f32.mrb[108].mxu1 }
0x1456   :  { %v8882_v49 = vpop.f32.mrb[109].mxu1 }
0x1457   :  { %v8883_v58 = vadd.f32 %v8882_v49, %v8881_v55  ;;  %v8884_v28 = vpop.f32.mrb[110].mxu1 }
0x1458   :  { %v8885_v31 = vpop.f32.mrb[111].mxu1 }
0x145d   :  { %v8859_v10 = vpop.f32.mrb[116].mxu0 }
0x145e   :  { %v8860_v56 = vpop.f32.mrb[117].mxu0 }
0x145f   :  { %v8861_v11 = vadd.f32 %v8860_v56, %v8859_v10  ;;  %v8862_v1 = vpop.f32.mrb[118].mxu0 }
0x1460   :  { %v8863_v48 = vpop.f32.mrb[119].mxu0 }
0x1461   :  { %v7303_v7 = vadd.f32 %v8861_v11, %v7081_v9 }
0x1463   :  { %v7521_v43 = vadd.f32 %v8883_v58, %v7303_v7 }
0x1465   :  { %v7522_v27 = vsub.f32 0.0, %v7521_v43 }
0x1467   :  { %v7523_v53 = vmul.f32 1.442695, %v7522_v27 }
0x1469   :  { %10095 = vpow2.f32 %v7523_v53 }
0x1473   :  { %v10096_v20 = vpop.eup %10095 }
0x1474   :  { %v7525_v52 = vadd.f32 1.0, %v10096_v20 }
0x1476   :  { %10097 = vrcp.f32 %v7525_v52 }
0x1480   :  { %v10098_v0 = vpop.eup %10097 }
0x1481   :  { %7529 = vst.msk [vmem:[%s13322_s22] sm:$0x3] %vm7528_vm5, %v10098_v0 }
0x1482   :  { %7534 = vsyncpa [#allocation3], 1 }
0x1483   :  { %7535 = vsyncpa [#allocation5], 1 }
0x1484   :  { %7536 = vsyncpa [#allocation8], 1 }
0x1485   :  { %7537 = vsyncpa [#allocation11], 1 }
0x1486   :  { %7538 = vsyncpa [#allocation14], 1 }
0x1487   :  { %7539 = vsyncpa [#allocation17], 1 }
0x1488   :  { %7540 = vsyncpa [#allocation20], 1 }

</bundles_post_ra>
